<compile_context>
chip_gen: v7x
topology: tpu7x:2x2x1
jax: 0.10.0
libtpu: 0.0.40
codegen_flags: <defaults>
</compile_context>

<pallas_src>
import functools

import numpy as np

import jax
import jax.numpy as jnp
from jax import lax
from jax.experimental import pallas as pl
from jax.experimental.pallas import tpu as pltpu

THRESHOLD_1 = 15.0
THRESHOLD_2 = 10.0   # training path only (not exercised by the eval forward)

C_IN, C1, C2 = 2, 30, 100     # channels: input, conv1 out, conv2 out
K1, K2 = 7, 5                 # conv kernel sizes


def _round_up(x, m):
    return ((x + m - 1) // m) * m


# ------------------------------- Pallas kernel -------------------------------

def _ctnn_fused_kernel(x1_ref, w1_ref, rp_ref, p_ref, w2_ref,
                       spk_ref, pot_ref, x2s_ref, *, tb, threshold):
    """Fused conv1 -> fire -> 2x2 maxpool -> pad(1) -> conv2 for TB time steps.

    x1_ref : (1, TB*Ho1, K1*Wp1*Cin)  bf16  K-stacked conv1 input rows
    w1_ref : (K1*Wp1*Cin, N1p)        bf16  stacked row-Toeplitz conv1 weights (resident)
    rp_ref : (TB*Hpp, TB*Ho1)         bf16  0/1 row-pool matrix (pad rows baked in)
    p_ref  : (N1p, WppC1p)            bf16  0/1 width/channel-pool matrix (pad cols baked in)
    w2_ref : (K2*WppC1p, N2p)         bf16  stacked row-Toeplitz conv2 weights (resident)
    spk_ref: (1, TB*Ho1, N1p)         bf16  layer-1 spikes (lanes: wo-major, chan-minor)
    pot_ref: (1, TB*Ho2, N2p)         f32   raw conv2 potentials
    x2s_ref: (TB*Ho2, K2*WppC1p)      bf16  scratch: K-stacked conv2 operand
    """
    hpp = rp_ref.shape[0] // tb
    wppc1 = p_ref.shape[1]
    kh2 = w2_ref.shape[0] // wppc1
    ho2 = pot_ref.shape[1] // tb

    # ---- conv1: single K-stacked GEMM covering all TB time steps (M=TB*Ho1, K=280) ----
    pot1 = jnp.dot(x1_ref[0], w1_ref[...], preferred_element_type=jnp.float32)

    # ---- sf.fire(pot, thr): spike = 1 where pot > thr (compare in f32) ----
    spk = jnp.where(pot1 > threshold, 1.0, 0.0)           # f32 {0,1}
    spk_bf = spk.astype(jnp.bfloat16)                      # exact
    spk_ref[0] = spk_bf

    # ---- sf.pooling(spk,2,2) + sf.pad(..,1): two 0/1 GEMMs + '>0' (spikes binary) ----
    rowsum = jnp.dot(rp_ref[...], spk_bf, preferred_element_type=jnp.float32)
    colsum = jnp.dot(rowsum.astype(jnp.bfloat16), p_ref[...],
                     preferred_element_type=jnp.float32)
    pp = jnp.where(colsum > 0.0, 1.0, 0.0)                 # (TB*Hpp, WppC1p), borders are 0

    # ---- stage conv2's K-stacked operand (kernel rows -> 128-aligned lane blocks) ----
    for t in range(tb):
        for i in range(kh2):
            blk = pp[t * hpp + i: t * hpp + i + ho2, :]
            x2s_ref[t * ho2:(t + 1) * ho2,
                    i * wppc1:(i + 1) * wppc1] = blk.astype(x2s_ref.dtype)

    # ---- conv2: single K-stacked GEMM (raw potentials; eval path has no fire here) ----
    pot_ref[0] = jnp.dot(x2s_ref[...], w2_ref[...],
                         preferred_element_type=jnp.float32)


# ----------------------- weight prep (hoisted to init) -----------------------

def _toeplitz(w_oihw, w_in, n_pad, row_pad=None):
    """(Cout, Cin, KH, KW) -> (KH, RP, n_pad) banded row-GEMM weights (numpy).

    T[i, (wo+j)*Cin + c, wo*Cout + n] = w[n, c, i, j] (zero elsewhere), so
      pot[ho, wo*Cout + n] = sum_i X[ho+i, :] @ T[i]
    equals the valid 2-D cross-correlation (PyTorch Conv2d) on (H, W*Cin) slabs.
    """
    w = np.asarray(jax.device_get(w_oihw), dtype=np.float32)
    cout, cin, kh, kw = w.shape
    wo = w_in - kw + 1
    rows = w_in * cin if row_pad is None else row_pad
    t = np.zeros((kh, rows, n_pad), dtype=np.float32)
    for i in range(kh):
        for j in range(kw):
            blk = w[:, :, i, j].T                       # (Cin, Cout)
            for o in range(wo):
                wp = o + j
                t[i, wp * cin:(wp + 1) * cin, o * cout:(o + 1) * cout] = blk
    return t


def init_params(key):
    """snn.Convolution(in, out, k, weight_mean, weight_std): weight ~ N(mean, std)."""
    k1, k2 = jax.random.split(key)
    w1 = 0.8 + 0.02 * jax.random.normal(k1, (C1, C_IN, K1, K1), dtype=jnp.float32)
    w2 = 0.8 + 0.05 * jax.random.normal(k2, (C2, C1, K2, K2), dtype=jnp.float32)
    return w1, w2


def prepare_params(w1, w2, H, W):
    """Once-per-model prep: stacked row-Toeplitz expansion, N padded to 512, bf16."""
    Wp1 = W + 4                           # width after sf.pad(2)
    Wo1 = Wp1 - K1 + 1                    # conv1 output width
    Wpp = Wo1 // 2 + 2                    # width after 2x2 pool + sf.pad(1)
    Wo2 = Wpp - K2 + 1                    # conv2 output width
    n1p = _round_up(Wo1 * C1, 128)        # 420 -> 512
    n2p = _round_up(Wo2 * C2, 128)        # 500 -> 512
    wppc1p = _round_up(Wpp * C1, 128)     # 270 -> 384 (aligned conv2 lane blocks)
    w1_t = _toeplitz(w1, Wp1, n1p)                          # (K1, Wp1*Cin, n1p)
    w1_t = jnp.asarray(w1_t.reshape(K1 * Wp1 * C_IN, n1p)).astype(jnp.bfloat16)
    w2_t = _toeplitz(w2, Wpp, n2p, row_pad=wppc1p)          # (K2, wppc1p, n2p)
    w2_t = jnp.asarray(w2_t.reshape(K2 * wppc1p, n2p)).astype(jnp.bfloat16)
    return w1_t, w2_t


def _pool_matrices(tb, ho1, wo1, hpp, n1pad, wppc1_pad):
    """0/1 matrices implementing maxpool(2,2)+pad(1) as left/right GEMMs (numpy)."""
    rp = np.zeros((tb * hpp, tb * ho1), np.float32)
    for t in range(tb):
        for a in range(ho1 // 2):
            rp[t * hpp + a + 1, t * ho1 + 2 * a] = 1.0
            rp[t * hpp + a + 1, t * ho1 + 2 * a + 1] = 1.0
    p = np.zeros((n1pad, wppc1_pad), np.float32)
    for wo in range(2 * (wo1 // 2)):
        for c in range(C1):
            p[wo * C1 + c, (wo // 2 + 1) * C1 + c] = 1.0
    return (jnp.asarray(rp).astype(jnp.bfloat16),
            jnp.asarray(p).astype(jnp.bfloat16))


# --------------------------------- forward -----------------------------------

def ctnn_forward(x_nchw, w1_toep, w2_toep):
    """Inference forward of CTNN. x_nchw: (T, 2, H, W). Returns (spk1, pot2) in NCHW."""
    T, cin, H, W = x_nchw.shape
    Hp1, Wp1 = H + 4, W + 4
    Ho1, Wo1 = Hp1 - K1 + 1, Wp1 - K1 + 1
    Hpp, Wpp = Ho1 // 2 + 2, Wo1 // 2 + 2
    Ho2, Wo2 = Hpp - K2 + 1, Wpp - K2 + 1
    N1, N2 = Wo1 * C1, Wo2 * C2
    KW1 = K1 * Wp1 * cin
    n1p = w1_toep.shape[1]
    n2p = w2_toep.shape[1]
    wppc1p = w2_toep.shape[0] // K2

    # time blocking: amortize grid overhead, keep >= 2 grid steps for v7x's 2 TCs
    tb = min(4, max(1, -(-T // 2)))
    Tp = -(-T // tb) * tb
    G = Tp // tb

    # sf.pad(2) + (wp, c) lane slabs + stack K1 kernel rows into the GEMM K dim
    # (tiny wrapper-side XLA gather; padded time steps are all-zero and sliced off).
    xp = jnp.pad(x_nchw, ((0, Tp - T), (0, 0), (2, 2), (2, 2)))
    xs = jnp.transpose(xp, (0, 2, 3, 1)).reshape(Tp, Hp1, Wp1 * cin)
    x1 = jnp.concatenate([xs[:, i:i + Ho1, :] for i in range(K1)], axis=-1)
    x1 = x1.reshape(G, tb * Ho1, KW1).astype(jnp.bfloat16)

    rp, pmat = _pool_matrices(tb, Ho1, Wo1, Hpp, n1p, wppc1p)

    flops = 2 * Tp * (Ho1 * KW1 * n1p + Hpp * Ho1 * n1p
                      + Hpp * n1p * wppc1p + Ho2 * K2 * wppc1p * n2p)
    bytes_accessed = (x1.size * 2 + w1_toep.size * 2 + w2_toep.size * 2
                      + rp.size * 2 + pmat.size * 2
                      + Tp * Ho1 * n1p * 2 + Tp * Ho2 * n2p * 4)

    kernel = functools.partial(_ctnn_fused_kernel, tb=tb, threshold=THRESHOLD_1)
    spk_raw, pot_raw = pl.pallas_call(
        kernel,
        out_shape=(jax.ShapeDtypeStruct((G, tb * Ho1, n1p), jnp.bfloat16),
                   jax.ShapeDtypeStruct((G, tb * Ho2, n2p), jnp.float32)),
        grid=(G,),
        in_specs=[
            pl.BlockSpec((1, tb * Ho1, KW1), lambda g: (g, 0, 0)),
            pl.BlockSpec((KW1, n1p), lambda g: (0, 0)),              # resident
            pl.BlockSpec((tb * Hpp, tb * Ho1), lambda g: (0, 0)),    # resident
            pl.BlockSpec((n1p, wppc1p), lambda g: (0, 0)),           # resident
            pl.BlockSpec((K2 * wppc1p, n2p), lambda g: (0, 0)),      # resident
        ],
        out_specs=(
            pl.BlockSpec((1, tb * Ho1, n1p), lambda g: (g, 0, 0)),
            pl.BlockSpec((1, tb * Ho2, n2p), lambda g: (g, 0, 0)),
        ),
        scratch_shapes=[pltpu.VMEM((tb * Ho2, K2 * wppc1p), jnp.bfloat16)],
        compiler_params=pltpu.CompilerParams(dimension_semantics=("parallel",)),
        cost_estimate=pl.CostEstimate(flops=flops, transcendentals=0,
                                      bytes_accessed=bytes_accessed),
    )(x1, w1_toep, rp, pmat, w2_toep)

    # single layout fix-up at the very end: lanes are (wo, channel), rows are (t, h)
    spk = spk_raw.reshape(Tp, Ho1, n1p)[:T, :, :N1].astype(jnp.float32)
    spk = jnp.transpose(spk.reshape(T, Ho1, Wo1, C1), (0, 3, 1, 2))
    pot = pot_raw.reshape(Tp, Ho2, n2p)[:T, :, :N2]
    pot = jnp.transpose(pot.reshape(T, Ho2, Wo2, C2), (0, 3, 1, 2))
    return spk, pot

# TODO(synk): training-path ops (sf.pointwise_inhibition, sf.get_k_winners, STDP
# updates) are winner-take-all plasticity bookkeeping not used by the eval forward;
# they are intentionally not implemented here.


# ------------------------ pure-JAX reference (checking) ----------------------

def _reference_forward(x_nchw, w1, w2):
    """f32 reference of the eval forward (used with the same bf16-rounded weights)."""
    dn = ("NCHW", "OIHW", "NCHW")
    xp = jnp.pad(x_nchw, ((0, 0), (0, 0), (2, 2), (2, 2)))
    pot1 = lax.conv_general_dilated(xp, w1, (1, 1), "VALID", dimension_numbers=dn,
                                    precision=lax.Precision.HIGHEST)
    spk1 = (pot1 > THRESHOLD_1).astype(jnp.float32)
    T, C, Hh, Ww = spk1.shape
    pooled = spk1.reshape(T, C, Hh // 2, 2, Ww // 2, 2).max(axis=(3, 5))
    pooled = jnp.pad(pooled, ((0, 0), (0, 0), (1, 1), (1, 1)))
    pot2 = lax.conv_general_dilated(pooled, w2, (1, 1), "VALID", dimension_numbers=dn,
                                    precision=lax.Precision.HIGHEST)
    return pot1, spk1, pot2


if __name__ == "__main__":
    key = jax.random.PRNGKey(0)
    kx, kwt = jax.random.split(key)
    w1, w2 = init_params(kwt)
    w1_t, w2_t = prepare_params(w1, w2, H=16, W=16)     # hoisted, once per model

    # (T=8 time steps, 2 channels, 16x16) binary spike-wave input
    x = (jax.random.uniform(kx, (8, 2, 16, 16)) < 0.3).astype(jnp.float32)

    spk, pot = jax.jit(ctnn_forward)(x, w1_t, w2_t)
    jax.block_until_ready((spk, pot))

    assert spk.shape == (8, 30, 14, 14), spk.shape
    assert pot.shape == (8, 100, 5, 5), pot.shape
    assert bool(jnp.all((spk == 0.0) | (spk == 1.0)))
    assert bool(jnp.all(jnp.isfinite(pot)))

    # correctness vs. a pure-JAX reference using the same bf16-rounded weights
    w1_r = w1.astype(jnp.bfloat16).astype(jnp.float32)
    w2_r = w2.astype(jnp.bfloat16).astype(jnp.float32)
    pot1_r, spk_r, pot2_r = jax.jit(_reference_forward)(x, w1_r, w2_r)
    # spikes must match wherever the layer-1 potential is not razor-close to threshold
    decisive = jnp.abs(pot1_r - THRESHOLD_1) > 1e-2
    assert bool(jnp.all(jnp.where(decisive, spk == spk_r, True)))
    if bool(jnp.all(spk == spk_r)):      # true unless a potential is marginal
        assert bool(jnp.allclose(pot, pot2_r, atol=1e-1, rtol=1e-3)), \
            float(jnp.max(jnp.abs(pot - pot2_r)))

    print("KERNEL_OK")
</pallas_src>

<mosaic_0001>
module attributes {stable_mosaic.version = 11 : i64} {
  func.func @_ctnn_fused_kernel(%arg0: i32, %arg1: memref<1x56x280xbf16, #tpu.memory_space<vmem>>, %arg2: memref<280x512xbf16, #tpu.memory_space<vmem>>, %arg3: memref<36x56xbf16, #tpu.memory_space<vmem>>, %arg4: memref<512x384xbf16, #tpu.memory_space<vmem>>, %arg5: memref<1920x512xbf16, #tpu.memory_space<vmem>>, %arg6: memref<1x56x512xbf16, #tpu.memory_space<vmem>>, %arg7: memref<1x20x512xf32, #tpu.memory_space<vmem>>, %arg8: memref<20x1920xbf16, #tpu.memory_space<vmem>>) attributes {dimension_semantics = [#tpu.dimension_semantics<parallel>], iteration_bounds = array<i64: 2>, scalar_prefetch = 0 : i64, scratch_operands = 1 : i64, tpu.core_type = #tpu.core_type<tc>, window_params = [{transform_indices = @transform_0, window_bounds = array<i64: 1, 56, 280>}, {pipeline_mode = #tpu.pipeline_mode<synchronous>, transform_indices = @transform_1, window_bounds = array<i64: 280, 512>}, {pipeline_mode = #tpu.pipeline_mode<synchronous>, transform_indices = @transform_2, window_bounds = array<i64: 36, 56>}, {pipeline_mode = #tpu.pipeline_mode<synchronous>, transform_indices = @transform_3, window_bounds = array<i64: 512, 384>}, {pipeline_mode = #tpu.pipeline_mode<synchronous>, transform_indices = @transform_4, window_bounds = array<i64: 1920, 512>}, {transform_indices = @transform_5, window_bounds = array<i64: 1, 56, 512>}, {transform_indices = @transform_6, window_bounds = array<i64: 1, 20, 512>}]} {
    %c0 = arith.constant 0 : index
    %c0_0 = arith.constant 0 : index
    %c0_1 = arith.constant 0 : index
    %0 = vector.load %arg1[%c0, %c0_0, %c0_1] : memref<1x56x280xbf16, #tpu.memory_space<vmem>>, vector<1x56x280xbf16>
    %1 = vector.shape_cast %0 : vector<1x56x280xbf16> to vector<56x280xbf16>
    %c0_2 = arith.constant 0 : index
    %c0_3 = arith.constant 0 : index
    %2 = vector.load %arg2[%c0_2, %c0_3] : memref<280x512xbf16, #tpu.memory_space<vmem>>, vector<280x512xbf16>
    %cst = arith.constant dense<0.000000e+00> : vector<56x512xf32>
    %3 = tpu.matmul %1, %2, %cst {dimension_numbers = #tpu.dot_dimension_numbers<[1], [0], [0], [1], [0, 0, 1, 1], [], []>} : vector<56x280xbf16>, vector<280x512xbf16>, vector<56x512xf32> -> vector<56x512xf32>
    %cst_4 = arith.constant 1.500000e+01 : f32
    %4 = vector.broadcast %cst_4 : f32 to vector<56x512xf32>
    %5 = arith.cmpf ogt, %3, %4 : vector<56x512xf32>
    %cst_5 = arith.constant 1.000000e+00 : f32
    %cst_6 = arith.constant 0.000000e+00 : f32
    %6 = vector.broadcast %cst_5 : f32 to vector<56x512xf32>
    %7 = vector.broadcast %cst_6 : f32 to vector<56x512xf32>
    %8 = arith.select %5, %6, %7 : vector<56x512xi1>, vector<56x512xf32>
    %9 = arith.truncf %8 : vector<56x512xf32> to vector<56x512xbf16>
    %c0_7 = arith.constant 0 : index
    %c0_8 = arith.constant 0 : index
    %c0_9 = arith.constant 0 : index
    %10 = vector.load %arg6[%c0_7, %c0_8, %c0_9] : memref<1x56x512xbf16, #tpu.memory_space<vmem>>, vector<1x56x512xbf16>
    %11 = vector.shape_cast %10 : vector<1x56x512xbf16> to vector<56x512xbf16>
    %12 = vector.shape_cast %9 : vector<56x512xbf16> to vector<1x56x512xbf16>
    tpu.vector_store %arg6[%c0_7, %c0_8, %c0_9], %12 {strides = array<i32>} : memref<1x56x512xbf16, #tpu.memory_space<vmem>>, vector<1x56x512xbf16>,
    %c0_10 = arith.constant 0 : index
    %c0_11 = arith.constant 0 : index
    %13 = vector.load %arg3[%c0_10, %c0_11] : memref<36x56xbf16, #tpu.memory_space<vmem>>, vector<36x56xbf16>
    %cst_12 = arith.constant dense<0.000000e+00> : vector<36x512xf32>
    %14 = tpu.matmul %13, %9, %cst_12 {dimension_numbers = #tpu.dot_dimension_numbers<[1], [0], [0], [1], [0, 0, 1, 1], [], []>} : vector<36x56xbf16>, vector<56x512xbf16>, vector<36x512xf32> -> vector<36x512xf32>
    %15 = arith.truncf %14 : vector<36x512xf32> to vector<36x512xbf16>
    %c0_13 = arith.constant 0 : index
    %c0_14 = arith.constant 0 : index
    %16 = vector.load %arg4[%c0_13, %c0_14] : memref<512x384xbf16, #tpu.memory_space<vmem>>, vector<512x384xbf16>
    %cst_15 = arith.constant dense<0.000000e+00> : vector<36x384xf32>
    %17 = tpu.matmul %15, %16, %cst_15 {dimension_numbers = #tpu.dot_dimension_numbers<[1], [0], [0], [1], [0, 0, 1, 1], [], []>} : vector<36x512xbf16>, vector<512x384xbf16>, vector<36x384xf32> -> vector<36x384xf32>
    %cst_16 = arith.constant 0.000000e+00 : f32
    %18 = vector.broadcast %cst_16 : f32 to vector<36x384xf32>
    %19 = arith.cmpf ogt, %17, %18 : vector<36x384xf32>
    %cst_17 = arith.constant 1.000000e+00 : f32
    %cst_18 = arith.constant 0.000000e+00 : f32
    %20 = vector.broadcast %cst_17 : f32 to vector<36x384xf32>
    %21 = vector.broadcast %cst_18 : f32 to vector<36x384xf32>
    %22 = arith.select %19, %20, %21 : vector<36x384xi1>, vector<36x384xf32>
    %23 = vector.extract_strided_slice %22 {offsets = [0, 0], sizes = [5, 384], strides = [1, 1]} : vector<36x384xf32> to vector<5x384xf32>
    %24 = arith.truncf %23 : vector<5x384xf32> to vector<5x384xbf16>
    %c0_19 = arith.constant 0 : index
    %c0_20 = arith.constant 0 : index
    %25 = vector.load %arg8[%c0_19, %c0_20] : memref<20x1920xbf16, #tpu.memory_space<vmem>>, vector<5x384xbf16>
    tpu.vector_store %arg8[%c0_19, %c0_20], %24 {strides = array<i32>} : memref<20x1920xbf16, #tpu.memory_space<vmem>>, vector<5x384xbf16>,
    %26 = vector.extract_strided_slice %22 {offsets = [1, 0], sizes = [5, 384], strides = [1, 1]} : vector<36x384xf32> to vector<5x384xf32>
    %27 = arith.truncf %26 : vector<5x384xf32> to vector<5x384xbf16>
    %c0_21 = arith.constant 0 : index
    %c384 = arith.constant 384 : index
    %28 = vector.load %arg8[%c0_21, %c384] : memref<20x1920xbf16, #tpu.memory_space<vmem>>, vector<5x384xbf16>
    tpu.vector_store %arg8[%c0_21, %c384], %27 {strides = array<i32>} : memref<20x1920xbf16, #tpu.memory_space<vmem>>, vector<5x384xbf16>,
    %29 = vector.extract_strided_slice %22 {offsets = [2, 0], sizes = [5, 384], strides = [1, 1]} : vector<36x384xf32> to vector<5x384xf32>
    %30 = arith.truncf %29 : vector<5x384xf32> to vector<5x384xbf16>
    %c0_22 = arith.constant 0 : index
    %c768 = arith.constant 768 : index
    %31 = vector.load %arg8[%c0_22, %c768] : memref<20x1920xbf16, #tpu.memory_space<vmem>>, vector<5x384xbf16>
    tpu.vector_store %arg8[%c0_22, %c768], %30 {strides = array<i32>} : memref<20x1920xbf16, #tpu.memory_space<vmem>>, vector<5x384xbf16>,
    %32 = vector.extract_strided_slice %22 {offsets = [3, 0], sizes = [5, 384], strides = [1, 1]} : vector<36x384xf32> to vector<5x384xf32>
    %33 = arith.truncf %32 : vector<5x384xf32> to vector<5x384xbf16>
    %c0_23 = arith.constant 0 : index
    %c1152 = arith.constant 1152 : index
    %34 = vector.load %arg8[%c0_23, %c1152] : memref<20x1920xbf16, #tpu.memory_space<vmem>>, vector<5x384xbf16>
    tpu.vector_store %arg8[%c0_23, %c1152], %33 {strides = array<i32>} : memref<20x1920xbf16, #tpu.memory_space<vmem>>, vector<5x384xbf16>,
    %35 = vector.extract_strided_slice %22 {offsets = [4, 0], sizes = [5, 384], strides = [1, 1]} : vector<36x384xf32> to vector<5x384xf32>
    %36 = arith.truncf %35 : vector<5x384xf32> to vector<5x384xbf16>
    %c0_24 = arith.constant 0 : index
    %c1536 = arith.constant 1536 : index
    %37 = vector.load %arg8[%c0_24, %c1536] : memref<20x1920xbf16, #tpu.memory_space<vmem>>, vector<5x384xbf16>
    tpu.vector_store %arg8[%c0_24, %c1536], %36 {strides = array<i32>} : memref<20x1920xbf16, #tpu.memory_space<vmem>>, vector<5x384xbf16>,
    %38 = vector.extract_strided_slice %22 {offsets = [9, 0], sizes = [5, 384], strides = [1, 1]} : vector<36x384xf32> to vector<5x384xf32>
    %39 = arith.truncf %38 : vector<5x384xf32> to vector<5x384xbf16>
    %c5 = arith.constant 5 : index
    %c0_25 = arith.constant 0 : index
    %40 = vector.load %arg8[%c5, %c0_25] : memref<20x1920xbf16, #tpu.memory_space<vmem>>, vector<5x384xbf16>
    tpu.vector_store %arg8[%c5, %c0_25], %39 {strides = array<i32>} : memref<20x1920xbf16, #tpu.memory_space<vmem>>, vector<5x384xbf16>,
    %41 = vector.extract_strided_slice %22 {offsets = [10, 0], sizes = [5, 384], strides = [1, 1]} : vector<36x384xf32> to vector<5x384xf32>
    %42 = arith.truncf %41 : vector<5x384xf32> to vector<5x384xbf16>
    %c5_26 = arith.constant 5 : index
    %c384_27 = arith.constant 384 : index
    %43 = vector.load %arg8[%c5_26, %c384_27] : memref<20x1920xbf16, #tpu.memory_space<vmem>>, vector<5x384xbf16>
    tpu.vector_store %arg8[%c5_26, %c384_27], %42 {strides = array<i32>} : memref<20x1920xbf16, #tpu.memory_space<vmem>>, vector<5x384xbf16>,
    %44 = vector.extract_strided_slice %22 {offsets = [11, 0], sizes = [5, 384], strides = [1, 1]} : vector<36x384xf32> to vector<5x384xf32>
    %45 = arith.truncf %44 : vector<5x384xf32> to vector<5x384xbf16>
    %c5_28 = arith.constant 5 : index
    %c768_29 = arith.constant 768 : index
    %46 = vector.load %arg8[%c5_28, %c768_29] : memref<20x1920xbf16, #tpu.memory_space<vmem>>, vector<5x384xbf16>
    tpu.vector_store %arg8[%c5_28, %c768_29], %45 {strides = array<i32>} : memref<20x1920xbf16, #tpu.memory_space<vmem>>, vector<5x384xbf16>,
    %47 = vector.extract_strided_slice %22 {offsets = [12, 0], sizes = [5, 384], strides = [1, 1]} : vector<36x384xf32> to vector<5x384xf32>
    %48 = arith.truncf %47 : vector<5x384xf32> to vector<5x384xbf16>
    %c5_30 = arith.constant 5 : index
    %c1152_31 = arith.constant 1152 : index
    %49 = vector.load %arg8[%c5_30, %c1152_31] : memref<20x1920xbf16, #tpu.memory_space<vmem>>, vector<5x384xbf16>
    tpu.vector_store %arg8[%c5_30, %c1152_31], %48 {strides = array<i32>} : memref<20x1920xbf16, #tpu.memory_space<vmem>>, vector<5x384xbf16>,
    %50 = vector.extract_strided_slice %22 {offsets = [13, 0], sizes = [5, 384], strides = [1, 1]} : vector<36x384xf32> to vector<5x384xf32>
    %51 = arith.truncf %50 : vector<5x384xf32> to vector<5x384xbf16>
    %c5_32 = arith.constant 5 : index
    %c1536_33 = arith.constant 1536 : index
    %52 = vector.load %arg8[%c5_32, %c1536_33] : memref<20x1920xbf16, #tpu.memory_space<vmem>>, vector<5x384xbf16>
    tpu.vector_store %arg8[%c5_32, %c1536_33], %51 {strides = array<i32>} : memref<20x1920xbf16, #tpu.memory_space<vmem>>, vector<5x384xbf16>,
    %53 = vector.extract_strided_slice %22 {offsets = [18, 0], sizes = [5, 384], strides = [1, 1]} : vector<36x384xf32> to vector<5x384xf32>
    %54 = arith.truncf %53 : vector<5x384xf32> to vector<5x384xbf16>
    %c10 = arith.constant 10 : index
    %c0_34 = arith.constant 0 : index
    %55 = vector.load %arg8[%c10, %c0_34] : memref<20x1920xbf16, #tpu.memory_space<vmem>>, vector<5x384xbf16>
    tpu.vector_store %arg8[%c10, %c0_34], %54 {strides = array<i32>} : memref<20x1920xbf16, #tpu.memory_space<vmem>>, vector<5x384xbf16>,
    %56 = vector.extract_strided_slice %22 {offsets = [19, 0], sizes = [5, 384], strides = [1, 1]} : vector<36x384xf32> to vector<5x384xf32>
    %57 = arith.truncf %56 : vector<5x384xf32> to vector<5x384xbf16>
    %c10_35 = arith.constant 10 : index
    %c384_36 = arith.constant 384 : index
    %58 = vector.load %arg8[%c10_35, %c384_36] : memref<20x1920xbf16, #tpu.memory_space<vmem>>, vector<5x384xbf16>
    tpu.vector_store %arg8[%c10_35, %c384_36], %57 {strides = array<i32>} : memref<20x1920xbf16, #tpu.memory_space<vmem>>, vector<5x384xbf16>,
    %59 = vector.extract_strided_slice %22 {offsets = [20, 0], sizes = [5, 384], strides = [1, 1]} : vector<36x384xf32> to vector<5x384xf32>
    %60 = arith.truncf %59 : vector<5x384xf32> to vector<5x384xbf16>
    %c10_37 = arith.constant 10 : index
    %c768_38 = arith.constant 768 : index
    %61 = vector.load %arg8[%c10_37, %c768_38] : memref<20x1920xbf16, #tpu.memory_space<vmem>>, vector<5x384xbf16>
    tpu.vector_store %arg8[%c10_37, %c768_38], %60 {strides = array<i32>} : memref<20x1920xbf16, #tpu.memory_space<vmem>>, vector<5x384xbf16>,
    %62 = vector.extract_strided_slice %22 {offsets = [21, 0], sizes = [5, 384], strides = [1, 1]} : vector<36x384xf32> to vector<5x384xf32>
    %63 = arith.truncf %62 : vector<5x384xf32> to vector<5x384xbf16>
    %c10_39 = arith.constant 10 : index
    %c1152_40 = arith.constant 1152 : index
    %64 = vector.load %arg8[%c10_39, %c1152_40] : memref<20x1920xbf16, #tpu.memory_space<vmem>>, vector<5x384xbf16>
    tpu.vector_store %arg8[%c10_39, %c1152_40], %63 {strides = array<i32>} : memref<20x1920xbf16, #tpu.memory_space<vmem>>, vector<5x384xbf16>,
    %65 = vector.extract_strided_slice %22 {offsets = [22, 0], sizes = [5, 384], strides = [1, 1]} : vector<36x384xf32> to vector<5x384xf32>
    %66 = arith.truncf %65 : vector<5x384xf32> to vector<5x384xbf16>
    %c10_41 = arith.constant 10 : index
    %c1536_42 = arith.constant 1536 : index
    %67 = vector.load %arg8[%c10_41, %c1536_42] : memref<20x1920xbf16, #tpu.memory_space<vmem>>, vector<5x384xbf16>
    tpu.vector_store %arg8[%c10_41, %c1536_42], %66 {strides = array<i32>} : memref<20x1920xbf16, #tpu.memory_space<vmem>>, vector<5x384xbf16>,
    %68 = vector.extract_strided_slice %22 {offsets = [27, 0], sizes = [5, 384], strides = [1, 1]} : vector<36x384xf32> to vector<5x384xf32>
    %69 = arith.truncf %68 : vector<5x384xf32> to vector<5x384xbf16>
    %c15 = arith.constant 15 : index
    %c0_43 = arith.constant 0 : index
    %70 = vector.load %arg8[%c15, %c0_43] : memref<20x1920xbf16, #tpu.memory_space<vmem>>, vector<5x384xbf16>
    tpu.vector_store %arg8[%c15, %c0_43], %69 {strides = array<i32>} : memref<20x1920xbf16, #tpu.memory_space<vmem>>, vector<5x384xbf16>,
    %71 = vector.extract_strided_slice %22 {offsets = [28, 0], sizes = [5, 384], strides = [1, 1]} : vector<36x384xf32> to vector<5x384xf32>
    %72 = arith.truncf %71 : vector<5x384xf32> to vector<5x384xbf16>
    %c15_44 = arith.constant 15 : index
    %c384_45 = arith.constant 384 : index
    %73 = vector.load %arg8[%c15_44, %c384_45] : memref<20x1920xbf16, #tpu.memory_space<vmem>>, vector<5x384xbf16>
    tpu.vector_store %arg8[%c15_44, %c384_45], %72 {strides = array<i32>} : memref<20x1920xbf16, #tpu.memory_space<vmem>>, vector<5x384xbf16>,
    %74 = vector.extract_strided_slice %22 {offsets = [29, 0], sizes = [5, 384], strides = [1, 1]} : vector<36x384xf32> to vector<5x384xf32>
    %75 = arith.truncf %74 : vector<5x384xf32> to vector<5x384xbf16>
    %c15_46 = arith.constant 15 : index
    %c768_47 = arith.constant 768 : index
    %76 = vector.load %arg8[%c15_46, %c768_47] : memref<20x1920xbf16, #tpu.memory_space<vmem>>, vector<5x384xbf16>
    tpu.vector_store %arg8[%c15_46, %c768_47], %75 {strides = array<i32>} : memref<20x1920xbf16, #tpu.memory_space<vmem>>, vector<5x384xbf16>,
    %77 = vector.extract_strided_slice %22 {offsets = [30, 0], sizes = [5, 384], strides = [1, 1]} : vector<36x384xf32> to vector<5x384xf32>
    %78 = arith.truncf %77 : vector<5x384xf32> to vector<5x384xbf16>
    %c15_48 = arith.constant 15 : index
    %c1152_49 = arith.constant 1152 : index
    %79 = vector.load %arg8[%c15_48, %c1152_49] : memref<20x1920xbf16, #tpu.memory_space<vmem>>, vector<5x384xbf16>
    tpu.vector_store %arg8[%c15_48, %c1152_49], %78 {strides = array<i32>} : memref<20x1920xbf16, #tpu.memory_space<vmem>>, vector<5x384xbf16>,
    %80 = vector.extract_strided_slice %22 {offsets = [31, 0], sizes = [5, 384], strides = [1, 1]} : vector<36x384xf32> to vector<5x384xf32>
    %81 = arith.truncf %80 : vector<5x384xf32> to vector<5x384xbf16>
    %c15_50 = arith.constant 15 : index
    %c1536_51 = arith.constant 1536 : index
    %82 = vector.load %arg8[%c15_50, %c1536_51] : memref<20x1920xbf16, #tpu.memory_space<vmem>>, vector<5x384xbf16>
    tpu.vector_store %arg8[%c15_50, %c1536_51], %81 {strides = array<i32>} : memref<20x1920xbf16, #tpu.memory_space<vmem>>, vector<5x384xbf16>,
    %c0_52 = arith.constant 0 : index
    %c0_53 = arith.constant 0 : index
    %83 = vector.load %arg8[%c0_52, %c0_53] : memref<20x1920xbf16, #tpu.memory_space<vmem>>, vector<20x1920xbf16>
    %c0_54 = arith.constant 0 : index
    %c0_55 = arith.constant 0 : index
    %84 = vector.load %arg5[%c0_54, %c0_55] : memref<1920x512xbf16, #tpu.memory_space<vmem>>, vector<1920x512xbf16>
    %cst_56 = arith.constant dense<0.000000e+00> : vector<20x512xf32>
    %85 = tpu.matmul %83, %84, %cst_56 {dimension_numbers = #tpu.dot_dimension_numbers<[1], [0], [0], [1], [0, 0, 1, 1], [], []>} : vector<20x1920xbf16>, vector<1920x512xbf16>, vector<20x512xf32> -> vector<20x512xf32>
    %c0_57 = arith.constant 0 : index
    %c0_58 = arith.constant 0 : index
    %c0_59 = arith.constant 0 : index
    %86 = vector.load %arg7[%c0_57, %c0_58, %c0_59] : memref<1x20x512xf32, #tpu.memory_space<vmem>>, vector<1x20x512xf32>
    %87 = vector.shape_cast %86 : vector<1x20x512xf32> to vector<20x512xf32>
    %88 = vector.shape_cast %85 : vector<20x512xf32> to vector<1x20x512xf32>
    tpu.vector_store %arg7[%c0_57, %c0_58, %c0_59], %88 {strides = array<i32>} : memref<1x20x512xf32, #tpu.memory_space<vmem>>, vector<1x20x512xf32>,
    return
  }
  func.func @transform_0(%arg0: i32) -> (i32, i32, i32) {
    %c0_i32 = arith.constant 0 : i32
    %c0_i32_0 = arith.constant 0 : i32
    %c0_i32_1 = arith.constant 0 : i32
    return %arg0, %c0_i32, %c0_i32_0 : i32, i32, i32
  }
  func.func @transform_1(%arg0: i32) -> (i32, i32) {
    %c0_i32 = arith.constant 0 : i32
    %c0_i32_0 = arith.constant 0 : i32
    %c0_i32_1 = arith.constant 0 : i32
    return %c0_i32, %c0_i32_0 : i32, i32
  }
  func.func @transform_2(%arg0: i32) -> (i32, i32) {
    %c0_i32 = arith.constant 0 : i32
    %c0_i32_0 = arith.constant 0 : i32
    %c0_i32_1 = arith.constant 0 : i32
    return %c0_i32, %c0_i32_0 : i32, i32
  }
  func.func @transform_3(%arg0: i32) -> (i32, i32) {
    %c0_i32 = arith.constant 0 : i32
    %c0_i32_0 = arith.constant 0 : i32
    %c0_i32_1 = arith.constant 0 : i32
    return %c0_i32, %c0_i32_0 : i32, i32
  }
  func.func @transform_4(%arg0: i32) -> (i32, i32) {
    %c0_i32 = arith.constant 0 : i32
    %c0_i32_0 = arith.constant 0 : i32
    %c0_i32_1 = arith.constant 0 : i32
    return %c0_i32, %c0_i32_0 : i32, i32
  }
  func.func @transform_5(%arg0: i32) -> (i32, i32, i32) {
    %c0_i32 = arith.constant 0 : i32
    %c0_i32_0 = arith.constant 0 : i32
    %c0_i32_1 = arith.constant 0 : i32
    return %arg0, %c0_i32, %c0_i32_0 : i32, i32, i32
  }
  func.func @transform_6(%arg0: i32) -> (i32, i32, i32) {
    %c0_i32 = arith.constant 0 : i32
    %c0_i32_0 = arith.constant 0 : i32
    %c0_i32_1 = arith.constant 0 : i32
    return %arg0, %c0_i32, %c0_i32_0 : i32, i32, i32
  }
}

</mosaic_0001>

<bundles_post_ra>
// kernel: ctnn_forward.1
= control target key start
LH: loop header
LB: loop body
LE: loop exit
PB: predicated region body
PF: predicated region fallthrough
CT: control target
= control target key end

     0   :  { %s8935_s21 = smov 0   ;;  %s11394_s0 = inlined_call_operand.vmem [shape: bf16[2,56,280], index: 0, kind: input, shape index: {}]   ;;  %s11395_s1 = inlined_call_operand.vmem [shape: bf16[280,512], index: 1, kind: input, shape index: {}]   ;;  %s11396_s2 = inlined_call_operand.vmem [shape: bf16[36,56], index: 2, kind: input, shape index: {}]   ;;  %s11397_s3 = inlined_call_operand.vmem [shape: bf16[512,384], index: 3, kind: input, shape index: {}]   ;;  %s11398_s4 = inlined_call_operand.vmem [shape: bf16[1920,512], index: 4, kind: input, shape index: {}]   ;;  %s11399_s5 = inlined_call_operand.vmem [shape: bf16[2,56,512], index: 5, kind: output, shape index: {0}]   ;;  %s11400_s6 = inlined_call_operand.vmem [shape: f32[2,20,512], index: 6, kind: output, shape index: {1}]  }
   0x1 LB: > { %s6813_s22 = sadd.s32 4294967295, %s8895_s21   ;;  %p6817_p0 = scmp.ge.s32.totalorder %s8895_s21, 1  ;;  %s8895_s21 = sphi %s8935_s21, %s17_s21  }
   0x2   : > { %p215_p1 = scmp.lt.s32.totalorder %s8895_s21, 3 }
   0x4   : > { %p216_p2 = pnand %p6817_p0, %p215_p1 }
   0x5   : > { %v7880_v0 = vld [vmem:[%s11395_s1 + $0x4] ss:$16 sps:$4 sm:$0xff] (!%p216_p2)   ;;  %v8897_v2 = vmov (!%p216_p2), 0   ;;  %p250_p3 = scmp.lt.s32.totalorder (!%p216_p2), %s6813_s22, 1  ;;  %v7884_v3 = vld [vmem:[%s11395_s1] ss:$16 sps:$4 sm:$0xff] (!%p216_p2)  }
   0x6   : > { %219 = sbr.rel (%p216_p2) target bundleno = 1510 (0x5e6), region = 40  ;;  %v7882_v1 = vld [vmem:[%s11395_s1 + $0x204] ss:$16 sps:$4 sm:$0xff] (!%p216_p2)   ;;  %884 = vmatprep.mubr.bf16.mxu1 (!%p216_p2), %v8897_v2  ;;  %781 = vmatprep.subr.bf16.mxu0 (!%p216_p2), %v7880_v0  ;;  %v7885_v4 = vld [vmem:[%s11395_s1 + $0x200] ss:$16 sps:$4 sm:$0xff] (!%p216_p2)   ;;  %vm768_vm0 = vcmask (!%p216_p2), 1043456  }
   0x7   : > { %852 = vmatprep.subr.bf16.mxu1 (!%p216_p2), %v7882_v1  ;;  %v7886_v5 = vld [vmem:[%s11395_s1 + $0x24] ss:$16 sps:$4 sm:$0xff] (!%p216_p2)   ;;  %782 = vmatpush1.bf16.msra.mxu0 (!%p216_p2), %v7884_v3  ;;  %v7889_v8 = vld [vmem:[%s11395_s1 + $0x20] ss:$16 sps:$4 sm:$0xff] (!%p216_p2)   ;;  %v7895_v12 = vld [vmem:[%s11395_s1 + $0xc] ss:$16 sps:$4 sm:$0xff] (!%p216_p2)  }
   0x8   : > { %v348_v6 = vld [vmem:[%s11395_s1 + $0x220] sm:$0xff] (!%p216_p2)  ;;  %853 = vmatpush1.bf16.msra.mxu1 (!%p216_p2), %v7885_v4  ;;  %783 = vmatprep.subr.bf16.mxu0 (!%p216_p2), %v7886_v5  ;;  %v7893_v13 = vld [vmem:[%s11395_s1 + $0x8] ss:$16 sps:$4 sm:$0xff] (!%p216_p2)   ;;  %vm755_vm1 = vcmask (!%p216_p2), 195584   ;;  %v7902_v17 = vld [vmem:[%s11395_s1 + $0x2c] ss:$16 sps:$4 sm:$0xff] (!%p216_p2)  }
   0x9   : > { %v6902_v7 = vcombine.high (!%p216_p2), %v348_v6, %v348_v6  ;;  %v6901_v9 = vcombine.low (!%p216_p2), %v348_v6, %v348_v6  ;;  %v7891_v10 = vld [vmem:[%s11395_s1 + $0x44] ss:$16 sps:$4 sm:$0xff] (!%p216_p2)   ;;  %v7896_v14 = vld [vmem:[%s11395_s1 + $0x40] ss:$16 sps:$4 sm:$0xff] (!%p216_p2)   ;;  %v7900_v18 = vld [vmem:[%s11395_s1 + $0x28] ss:$16 sps:$4 sm:$0xff] (!%p216_p2)  }
   0xa   : > { %v7898_v16 = vld [vmem:[%s11395_s1 + $0x64] ss:$16 sps:$4 sm:$0xff] (!%p216_p2)   ;;  %v7903_v19 = vld [vmem:[%s11395_s1 + $0x60] ss:$16 sps:$4 sm:$0xff] (!%p216_p2)   ;;  %v7908_v21 = vld [vmem:[%s11395_s1 + $0x4c] ss:$16 sps:$4 sm:$0xff] (!%p216_p2)  }
   0xb   : > { %6905 = vmatprep.subr.msk.bf16.mxu1 (!%p216_p2), %vm768_vm0, %v6902_v7  ;;  %v770_v11 = vsel (!%p216_p2), %vm768_vm0, %v6901_v9, 0  ;;  %784 = vmatpush1.bf16.msra.mxu0 (!%p216_p2), %v7889_v8  ;;  %v7904_v20 = vld [vmem:[%s11395_s1 + $0x84] ss:$16 sps:$4 sm:$0xff] (!%p216_p2)   ;;  %v7906_v22 = vld [vmem:[%s11395_s1 + $0x48] ss:$16 sps:$4 sm:$0xff] (!%p216_p2)  }
   0xc   : > { %855 = vmatpush1.bf16.msra.mxu1 (!%p216_p2), %v770_v11  ;;  %785 = vmatprep.subr.bf16.mxu0 (!%p216_p2), %v7891_v10  ;;  %v7909_v23 = vld [vmem:[%s11395_s1 + $0x80] ss:$16 sps:$4 sm:$0xff] (!%p216_p2)   ;;  %v7910_v24 = vld [vmem:[%s11395_s1 + $0xa4] ss:$16 sps:$4 sm:$0xff] (!%p216_p2)   ;;  %v7914_v25 = vld [vmem:[%s11395_s1 + $0x6c] ss:$16 sps:$4 sm:$0xff] (!%p216_p2)  }
   0xd   : > { %s11451_s22 = smov (!%p250_p3, %s6813_s22), 1  ;;  %923 = vmatprep.subr.bf16.mxu1 %v7895_v12  ;;  %v7912_v26 = vld [vmem:[%s11395_s1 + $0x68] ss:$16 sps:$4 sm:$0xff]   ;;  %v7915_v27 = vld [vmem:[%s11395_s1 + $0xa0] ss:$16 sps:$4 sm:$0xff]  }
   0xe   : > { %s7866_s15 = smul.u32 84, %s11451_s22  ;;  %v7916_v28 = vld [vmem:[%s11395_s1 + $0xc4] ss:$16 sps:$4 sm:$0xff]   ;;  %v7920_v29 = vld [vmem:[%s11395_s1 + $0x8c] ss:$16 sps:$4 sm:$0xff]  }
   0xf   : > { %786 = vmatpush1.bf16.msra.mxu0 %v7896_v14  ;;  %v7918_v30 = vld [vmem:[%s11395_s1 + $0x88] ss:$16 sps:$4 sm:$0xff]   ;;  %v7921_v31 = vld [vmem:[%s11395_s1 + $0xc0] ss:$16 sps:$4 sm:$0xff]   ;;  %v7922_v32 = vld [vmem:[%s11395_s1 + $0xe4] ss:$16 sps:$4 sm:$0xff]  }
  0x10   : > { %s8985_s26 = scalar_lea.vmem %s11394_s0, %s7866_s15  ;;  %787 = vmatprep.subr.bf16.mxu0 %v7898_v16  ;;  %v7926_v33 = vld [vmem:[%s11395_s1 + $0xac] ss:$16 sps:$4 sm:$0xff]   ;;  %v7924_v34 = vld [vmem:[%s11395_s1 + $0xa8] ss:$16 sps:$4 sm:$0xff]   ;;  %v7927_v35 = vld [vmem:[%s11395_s1 + $0xe0] ss:$16 sps:$4 sm:$0xff]  }
  0x11   : > { %v8988_v15 = vld [vmem:[%s8985_s26 + $0x8] ss:$12 sps:$4 sm:$0xff]   ;;  %v7932_v37 = vld [vmem:[%s11395_s1 + $0xcc] ss:$16 sps:$4 sm:$0xff]   ;;  %v7933_v39 = vld [vmem:[%s11395_s1 + $0x100] ss:$16 sps:$4 sm:$0xff]  }
  0x12   : > { %6906 = vmatmul.mubr.msk.bf16.vlgmr.msra.gmra.mrb[0].mxu1 %vm755_vm1, %v8988_v15  ;;  %v7928_v36 = vld [vmem:[%s11395_s1 + $0x104] ss:$16 sps:$4 sm:$0xff]   ;;  %v7930_v38 = vld [vmem:[%s11395_s1 + $0xc8] ss:$16 sps:$4 sm:$0xff]   ;;  %v7938_v41 = vld [vmem:[%s11395_s1 + $0xec] ss:$16 sps:$4 sm:$0xff]  }
  0x13   : > { %924 = vmatpush1.bf16.msra.mxu1 %v7893_v13  ;;  %894 = vmatprep.mubr.bf16.mxu1 %v8897_v2  ;;  %v7934_v40 = vld [vmem:[%s11395_s1 + $0x124] ss:$16 sps:$4 sm:$0xff]   ;;  %v9072_v42 = vld [vmem:[%s8985_s26 + $0x20] ss:$12 sps:$4 sm:$0xff]   ;;  %v7936_v43 = vld [vmem:[%s11395_s1 + $0xe8] ss:$16 sps:$4 sm:$0xff]  }
  0x14   : > { %925 = vmatprep.subr.bf16.mxu1 %v7902_v17  ;;  %788 = vmatpush1.bf16.msra.mxu0 %v7903_v19  ;;  %v7939_v44 = vld [vmem:[%s11395_s1 + $0x120] ss:$16 sps:$4 sm:$0xff]   ;;  %v7940_v45 = vld [vmem:[%s11395_s1 + $0x144] ss:$16 sps:$4 sm:$0xff]   ;;  %v7944_v46 = vld [vmem:[%s11395_s1 + $0x10c] ss:$16 sps:$4 sm:$0xff]  }
  0x15   : > { %789 = vmatprep.subr.bf16.mxu0 %v7904_v20  ;;  %v7942_v47 = vld [vmem:[%s11395_s1 + $0x108] ss:$16 sps:$4 sm:$0xff]   ;;  %v7945_v48 = vld [vmem:[%s11395_s1 + $0x140] ss:$16 sps:$4 sm:$0xff]   ;;  %v7946_v50 = vld [vmem:[%s11395_s1 + $0x164] ss:$16 sps:$4 sm:$0xff]  }
  0x16   : > { %v9096_v49 = vld [vmem:[%s8985_s26 + $0x38] ss:$12 sps:$4 sm:$0xff]   ;;  %v7950_v51 = vld [vmem:[%s11395_s1 + $0x12c] ss:$16 sps:$4 sm:$0xff]   ;;  %v7951_v53 = vld [vmem:[%s11395_s1 + $0x160] ss:$16 sps:$4 sm:$0xff]  }
  0x17   : > { %926 = vmatpush1.bf16.msra.mxu1 %v7900_v18  ;;  %v7948_v52 = vld [vmem:[%s11395_s1 + $0x128] ss:$16 sps:$4 sm:$0xff]   ;;  %v7952_v54 = vld [vmem:[%s11395_s1 + $0x184] ss:$16 sps:$4 sm:$0xff]   ;;  %v7957_v55 = vld [vmem:[%s11395_s1 + $0x14c] ss:$16 sps:$4 sm:$0xff]  }
  0x18   : > { %927 = vmatprep.subr.bf16.mxu1 %v7908_v21  ;;  %790 = vmatpush1.bf16.msra.mxu0 %v7909_v23  ;;  %v7980_v56 = vld [vmem:[%s8985_s26 + $0x4] ss:$12 sps:$4 sm:$0xff]   ;;  %v7955_v57 = vld [vmem:[%s11395_s1 + $0x148] ss:$16 sps:$4 sm:$0xff]   ;;  %v7963_v61 = vld [vmem:[%s11395_s1 + $0x16c] ss:$16 sps:$4 sm:$0xff]  }
  0x19   : > { %791 = vmatprep.subr.bf16.mxu0 %v7910_v24  ;;  %v7958_v58 = vld [vmem:[%s11395_s1 + $0x180] ss:$16 sps:$4 sm:$0xff]   ;;  %813 = vmatprep.mubr.bf16.mxu0 %v7980_v56  ;;  %v7959_v60 = vld [vmem:[%s11395_s1 + $0x1a4] ss:$16 sps:$4 sm:$0xff]   ;;  %v7961_v62 = vld [vmem:[%s11395_s1 + $0x168] ss:$16 sps:$4 sm:$0xff]  }
  0x1a   : > { %6907 = vmatmul.mubr.msk.bf16.gmra.mrb[4].mxu1 %vm755_vm1, %v9072_v42  ;;  %v9127_v59 = vld [vmem:[%s8985_s26 + $0x50] ss:$0 sps:$4 sm:$0xff]   ;;  %v7965_v0 = vld [vmem:[%s11395_s1 + $0x1c4] ss:$16 sps:$4 sm:$0xff]   ;;  %v7970_v1 = vld [vmem:[%s11395_s1 + $0x18c] ss:$16 sps:$4 sm:$0xff]  }
  0x1b   : > { %928 = vmatpush1.bf16.msra.mxu1 %v7906_v22  ;;  %904 = vmatprep.mubr.bf16.mxu1 %v8897_v2  ;;  %v7964_v63 = vld [vmem:[%s11395_s1 + $0x1a0] ss:$16 sps:$4 sm:$0xff]   ;;  %v7968_v3 = vld [vmem:[%s11395_s1 + $0x188] ss:$16 sps:$4 sm:$0xff]   ;;  %v7972_v5 = vld [vmem:[%s11395_s1 + $0x1e4] ss:$16 sps:$4 sm:$0xff]  }
  0x1c   : > { %929 = vmatprep.subr.bf16.mxu1 %v7914_v25  ;;  %792 = vmatpush1.bf16.msra.mxu0 %v7915_v27  ;;  %v7971_v4 = vld [vmem:[%s11395_s1 + $0x1c0] ss:$16 sps:$4 sm:$0xff]   ;;  %v7976_v6 = vld [vmem:[%s11395_s1 + $0x1ac] ss:$16 sps:$4 sm:$0xff]   ;;  %v7974_v7 = vld [vmem:[%s11395_s1 + $0x1a8] ss:$16 sps:$4 sm:$0xff]  }
  0x1d   : > { %793 = vmatprep.subr.bf16.mxu0 %v7916_v28  ;;  %v7977_v8 = vld [vmem:[%s11395_s1 + $0x1e0] ss:$16 sps:$4 sm:$0xff]   ;;  %v7984_v9 = vld [vmem:[%s11395_s1 + $0x1cc] ss:$16 sps:$4 sm:$0xff]   ;;  %v7982_v11 = vld [vmem:[%s11395_s1 + $0x1c8] ss:$16 sps:$4 sm:$0xff]  }
  0x1e   : > { %v7978_v10 = vld [vmem:[%s8985_s26] ss:$12 sps:$4 sm:$0xff]   ;;  %v7988_v12 = vld [vmem:[%s8985_s26 + $0x1c] ss:$12 sps:$4 sm:$0xff]   ;;  %v7990_v17 = vld [vmem:[%s8985_s26 + $0x18] ss:$12 sps:$4 sm:$0xff]  }
  0x1f   : > { %930 = vmatpush1.bf16.msra.mxu1 %v7912_v26  ;;  %v7987_v13 = vld [vmem:[%s11395_s1 + $0x1ec] ss:$16 sps:$4 sm:$0xff]   ;;  %v7985_v14 = vld [vmem:[%s11395_s1 + $0x1e8] ss:$16 sps:$4 sm:$0xff]   ;;  %v7991_v19 = vld [vmem:[%s8985_s26 + $0x34] ss:$12 sps:$4 sm:$0xff]  }
  0x20   : > { %931 = vmatprep.subr.bf16.mxu1 %v7920_v29  ;;  %794 = vmatpush1.bf16.msra.mxu0 %v7921_v31  ;;  %v7998_v16 = vld [vmem:[%s11395_s1 + $0x20c] ss:$16 sps:$4 sm:$0xff]   ;;  %v7996_v20 = vld [vmem:[%s11395_s1 + $0x208] ss:$16 sps:$4 sm:$0xff]   ;;  %s7868_s13 = smul.u32 96, %s11451_s22 }
  0x21   : > { %795 = vmatprep.subr.bf16.mxu0 %v7922_v32  ;;  %v349_v18 = vld [vmem:[%s11395_s1 + $0x228] sm:$0xff]  ;;  %v7993_v24 = vld [vmem:[%s8985_s26 + $0x30] ss:$12 sps:$4 sm:$0xff]  }
  0x22   : > { %6908 = vmatmul.mubr.msk.bf16.gmra.mrb[8].mxu1 %vm755_vm1, %v9096_v49  ;;  %v6904_v21 = vcombine.high %v349_v18, %v349_v18  ;;  %v6903_v22 = vcombine.low %v349_v18, %v349_v18  ;;  %v278_v23 = vld [vmem:[%s8985_s26 + $0x48] sm:$0xff]  ;;  %s7867_s26 = smul.u32 112, %s11451_s22 }
  0x23   : > { %932 = vmatpush1.bf16.msra.mxu1 %v7918_v30  ;;  %914 = vmatprep.mubr.bf16.mxu1 %v8897_v2  ;;  %v6831_v26 = vcombine.high %v278_v23, %v278_v23  ;;  %v6830_v27 = vcombine.low %v278_v23, %v278_v23 }
  0x24   : > { %933 = vmatprep.subr.bf16.mxu1 %v7926_v33  ;;  %796 = vmatpush1.bf16.msra.mxu0 %v7927_v35  ;;  %v776_v25 = vsel %vm768_vm0, %v6903_v22, 0  ;;  %s9223_s18 = scalar_lea.vmem %s11399_s5, %s7867_s26  ;;  %s264_s26 = scalar_lea.vmem %s11400_s6, %s7868_s13 }
  0x25   : > { %797 = vmatprep.subr.bf16.mxu0 %v7928_v36 }
  0x27   : > { %934 = vmatpush1.bf16.msra.mxu1 %v7924_v34 }
  0x28   : > { %935 = vmatprep.subr.bf16.mxu1 %v7932_v37  ;;  %798 = vmatpush1.bf16.msra.mxu0 %v7933_v39 }
  0x29   : > { %799 = vmatprep.subr.bf16.mxu0 %v7934_v40 }
  0x2a   : > { %6909 = vmatmul.mubr.msk.bf16.gmra.mrb[12].mxu1 %vm755_vm1, %v9127_v59 }
  0x2b   : > { %936 = vmatpush1.bf16.msra.mxu1 %v7930_v38  ;;  %955 = vmatprep.mubr.bf16.mxu1 %v7980_v56 }
  0x2c   : > { %937 = vmatprep.subr.bf16.mxu1 %v7938_v41  ;;  %800 = vmatpush1.bf16.msra.mxu0 %v7939_v44 }
  0x2d   : > { %801 = vmatprep.subr.bf16.mxu0 %v7940_v45 }
  0x2f   : > { %938 = vmatpush1.bf16.msra.mxu1 %v7936_v43 }
  0x30   : > { %939 = vmatprep.subr.bf16.mxu1 %v7944_v46  ;;  %802 = vmatpush1.bf16.msra.mxu0 %v7945_v48 }
  0x31   : > { %803 = vmatprep.subr.bf16.mxu0 %v7946_v50  ;;  %v8898_v50 = vmov 0.0  }
  0x33   : > { %940 = vmatpush1.bf16.msra.mxu1 %v7942_v47 }
  0x34   : > { %941 = vmatprep.subr.bf16.mxu1 %v7950_v51  ;;  %804 = vmatpush1.bf16.msra.mxu0 %v7951_v53 }
  0x35   : > { %805 = vmatprep.subr.bf16.mxu0 %v7952_v54 }
  0x37   : > { %942 = vmatpush1.bf16.msra.mxu1 %v7948_v52 }
  0x38   : > { %943 = vmatprep.subr.bf16.mxu1 %v7957_v55  ;;  %806 = vmatpush1.bf16.msra.mxu0 %v7958_v58 }
  0x39   : > { %807 = vmatprep.subr.bf16.mxu0 %v7959_v60 }
  0x3b   : > { %944 = vmatpush1.bf16.msra.mxu1 %v7955_v57 }
  0x3c   : > { %945 = vmatprep.subr.bf16.mxu1 %v7963_v61  ;;  %808 = vmatpush1.bf16.msra.mxu0 %v7964_v63 }
  0x3d   : > { %809 = vmatprep.subr.bf16.mxu0 %v7965_v0 }
  0x3f   : > { %946 = vmatpush1.bf16.msra.mxu1 %v7961_v62 }
  0x40   : > { %947 = vmatprep.subr.bf16.mxu1 %v7970_v1  ;;  %810 = vmatpush1.bf16.msra.mxu0 %v7971_v4 }
  0x41   : > { %811 = vmatprep.subr.bf16.mxu0 %v7972_v5 }
  0x43   : > { %948 = vmatpush1.bf16.msra.mxu1 %v7968_v3 }
  0x44   : > { %949 = vmatprep.subr.bf16.mxu1 %v7976_v6  ;;  %812 = vmatpush1.bf16.msra.mxu0 %v7977_v8 }
  0x47   : > { %950 = vmatpush1.bf16.msra.mxu1 %v7974_v7  ;;  %814 = vmatmul.mubr.bf16.vlgmr.msra.gmra.mrb[0].mxu0 %v7978_v10 }
  0x48   : > { %951 = vmatprep.subr.bf16.mxu1 %v7984_v9  ;;  %823 = vmatprep.mubr.bf16.mxu0 %v7988_v12 }
  0x4b   : > { %952 = vmatpush1.bf16.msra.mxu1 %v7982_v11 }
  0x4c   : > { %953 = vmatprep.subr.bf16.mxu1 %v7987_v13 }
  0x4f   : > { %954 = vmatpush1.bf16.msra.mxu1 %v7985_v14  ;;  %824 = vmatmul.mubr.bf16.gmra.mrb[4].mxu0 %v7990_v17 }
  0x50   : > { %994 = vmatprep.subr.bf16.mxu1 %v7998_v16  ;;  %833 = vmatprep.mubr.bf16.mxu0 %v7991_v19 }
  0x52   : > { %956 = vmatmul.mubr.bf16.vlgmr.msra.gmra.mrb[16].mxu1 %v7978_v10 }
  0x53   : > { %965 = vmatprep.mubr.bf16.mxu1 %v7988_v12  ;;  %995 = vmatpush1.bf16.msra.mxu1 %v7996_v20 }
  0x54   : > { %6910 = vmatprep.subr.msk.bf16.mxu1 %vm768_vm0, %v6904_v21 }
  0x57   : > { %997 = vmatpush1.bf16.msra.mxu1 %v776_v25  ;;  %834 = vmatmul.mubr.bf16.gmra.mrb[8].mxu0 %v7993_v24 }
  0x58   : > { %843 = vmatprep.mubr.bf16.mxu0 %v6831_v26 }
  0x5a   : > { %966 = vmatmul.mubr.bf16.gmra.mrb[20].mxu1 %v7990_v17 }
  0x5b   : > { %975 = vmatprep.mubr.bf16.mxu1 %v7991_v19 }
  0x5f   : > { %844 = vmatmul.mubr.bf16.gmra.mrb[12].mxu0 %v6830_v27 }
  0x60   : > { %1295 = vmatprep.mubr.bf16.mxu0 %v8897_v2 }
  0x62   : > { %976 = vmatmul.mubr.bf16.gmra.mrb[24].mxu1 %v7993_v24 }
  0x63   : > { %985 = vmatprep.mubr.bf16.mxu1 %v6831_v26 }
  0x6a   : > { %986 = vmatmul.mubr.bf16.gmra.mrb[28].mxu1 %v6830_v27 }
  0x6b   : > { %1026 = vmatprep.mubr.bf16.mxu1 %v8897_v2 }
  0x72   : > { %6911 = vmatmul.mubr.msk.bf16.vlgmr.msra.gmra.mrb[16].mxu1 %vm755_vm1, %v8988_v15 }
  0x73   : > { %1036 = vmatprep.mubr.bf16.mxu1 %v8897_v2 }
  0x7a   : > { %6912 = vmatmul.mubr.msk.bf16.gmra.mrb[20].mxu1 %vm755_vm1, %v9072_v42 }
  0x7b   : > { %1046 = vmatprep.mubr.bf16.mxu1 %v8897_v2 }
  0x82   : > { %6913 = vmatmul.mubr.msk.bf16.gmra.mrb[24].mxu1 %vm755_vm1, %v9096_v49 }
  0x83   : > { %1056 = vmatprep.mubr.bf16.mxu1 %v8897_v2 }
  0x8a   : > { %6914 = vmatmul.mubr.msk.bf16.gmra.mrb[28].mxu1 %vm755_vm1, %v9127_v59  ;;  %v8899_v59 = vmov 1.0|1.0  }
  0x8b   : > { %1356 = vmatprep.mubr.bf16.mxu1 %v8897_v2 }
  0xe5   : > { %v886_v28 = vpop.f32.mrb[0].mxu1 }
  0xe6   : > { %v888_v29 = vpop.f32.mrb[1].mxu1 }
  0xe7   : > { %v890_v15 = vpop.f32.mrb[2].mxu1 }
  0xe8   : > { %v892_v30 = vpop.f32.mrb[3].mxu1 }
  0xed   : > { %v896_v31 = vpop.f32.mrb[4].mxu1 }
  0xee   : > { %v898_v32 = vpop.f32.mrb[5].mxu1 }
  0xef   : > { %v900_v33 = vpop.f32.mrb[6].mxu1 }
  0xf0   : > { %v902_v34 = vpop.f32.mrb[7].mxu1 }
  0xf5   : > { %v906_v35 = vpop.f32.mrb[8].mxu1 }
  0xf6   : > { %v908_v36 = vpop.f32.mrb[9].mxu1 }
  0xf7   : > { %v9210_v37 = vpop.f32.mrb[10].mxu1 }
  0xf8   : > { %v9212_v38 = vpop.f32.mrb[11].mxu1 }
  0xfd   : > { %v9214_v39 = vpop.f32.mrb[12].mxu1 }
  0xfe   : > { %v9216_v40 = vpop.f32.mrb[13].mxu1 }
  0xff   : > { %v920_v41 = vpop.f32.mrb[14].mxu1 }
 0x100   : > { %v921_v42 = vpop.f32.mrb[15].mxu1  ;;  %v8012_v41 = vld [vmem:[%s11397_s3 + $0x34] ss:$12 sps:$4 sm:$0xff]  }
 0x11a   : > { %v815_v43 = vpop.f32.mrb[0].mxu0 }
 0x11b   : > { %v887_v44 = vadd.f32 %v886_v28, %v815_v43  ;;  %v817_v45 = vpop.f32.mrb[1].mxu0  ;;  %v9283_v43 = vld [vmem:[%s11396_s2 + $0x8] sm:$0xff]  }
 0x11c   : > { %v889_v46 = vadd.f32 %v888_v29, %v817_v45  ;;  %v819_v47 = vpop.f32.mrb[2].mxu0  ;;  %v8010_v45 = vld [vmem:[%s11397_s3 + $0x30] ss:$12 sps:$4 sm:$0xff]  }
 0x11d   : > { %vm1065_vm2 = vcmp.gt.f32.partialorder %v887_v44, 15.0  ;;  %v891_v48 = vadd.f32 %v890_v15, %v819_v47  ;;  %v821_v49 = vpop.f32.mrb[3].mxu0 }
 0x11e   : > { %v1093_v51 = vsel %vm1065_vm2, 1.0, %v8898_v50  ;;  %vm1066_vm3 = vcmp.gt.f32.partialorder %v889_v46, 15.0  ;;  %v893_v52 = vadd.f32 %v892_v30, %v821_v49 }
 0x11f   : > { %v1094_v53 = vsel %vm1066_vm3, 1.0, %v8898_v50  ;;  %vm1069_vm4 = vcmp.gt.f32.partialorder %v891_v48, 15.0  ;;  %v8015_v48 = vld [vmem:[%s11397_s3 + $0x4c] ss:$12 sps:$4 sm:$0xff]  }
 0x120   : > { %v7606_v54 = vpack.c.bf16 %v1094_v53, %v1093_v51  ;;  %v1097_v55 = vsel %vm1069_vm4, 1.0, %v8898_v50  ;;  %vm6934_vm5 = vmpackc.low %vm1069_vm4, %vm1065_vm2  ;;  %vm1070_vm6 = vcmp.gt.f32.partialorder %v893_v52, 15.0 }
 0x121   : > { %v1098_v56 = vsel %vm1070_vm6, 1.0, %v8898_v50  ;;  %vm6932_vm7 = vmpackc.low %vm1070_vm6, %vm1066_vm3 }
 0x122   : > { %1209 = vst [vmem:[%s9223_s18] sm:$0xff] %v7606_v54  ;;  %v7608_v57 = vpack.c.bf16 %v1098_v56, %v1097_v55  ;;  %v825_v58 = vpop.f32.mrb[4].mxu0  ;;  %6933 = vmatprep.subr.msk.bf16.mxu0 %vm6932_vm7, %v8899_v59  ;;  %vm1241_vm7 = vcmask 457728   ;;  %v8013_v55 = vld [vmem:[%s11397_s3 + $0x48] ss:$12 sps:$4 sm:$0xff]  }
 0x123   : > { %v897_v60 = vadd.f32 %v896_v31, %v825_v58  ;;  %v827_v61 = vpop.f32.mrb[5].mxu0  ;;  %6935 = vmatpush1.bf16.msk.msra.mxu0 %vm6934_vm5, %v8899_v59 }
 0x124   : > { %1211 = vst [vmem:[%s9223_s18 + $0x10] sm:$0xff] %v7608_v57  ;;  %v899_v62 = vadd.f32 %v898_v32, %v827_v61  ;;  %v829_v63 = vpop.f32.mrb[6].mxu0  ;;  %v8018_v57 = vld [vmem:[%s11397_s3 + $0x64] ss:$12 sps:$4 sm:$0xff]  }
 0x125   : > { %vm1073_vm8 = vcmp.gt.f32.partialorder %v897_v60, 15.0  ;;  %v901_v0 = vadd.f32 %v900_v33, %v829_v63  ;;  %v831_v1 = vpop.f32.mrb[7].mxu0  ;;  %v9311_v60 = vld [vmem:[%s11396_s2 + $0x10] ss:$0 sps:$4 sm:$0x33]  }
 0x126   : > { %v1101_v3 = vsel %vm1073_vm8, 1.0, %v8898_v50  ;;  %vm1074_vm9 = vcmp.gt.f32.partialorder %v899_v62, 15.0  ;;  %v903_v4 = vadd.f32 %v902_v34, %v831_v1  ;;  %v8016_v62 = vld [vmem:[%s11397_s3 + $0x60] ss:$12 sps:$4 sm:$0xff]   ;;  %v8021_v1 = vld [vmem:[%s11397_s3 + $0x7c] ss:$12 sps:$4 sm:$0xff]  }
 0x127   : > { %v1102_v5 = vsel %vm1074_vm9, 1.0, %v8898_v50  ;;  %vm1077_vm10 = vcmp.gt.f32.partialorder %v901_v0, 15.0 }
 0x128   : > { %v7610_v6 = vpack.c.bf16 %v1102_v5, %v1101_v3  ;;  %v1105_v7 = vsel %vm1077_vm10, 1.0, %v8898_v50  ;;  %vm6938_vm11 = vmpackc.low %vm1077_vm10, %vm1073_vm8  ;;  %vm1078_vm12 = vcmp.gt.f32.partialorder %v903_v4, 15.0 }
 0x129   : > { %v1106_v8 = vsel %vm1078_vm12, 1.0, %v8898_v50  ;;  %vm6936_vm13 = vmpackc.low %vm1078_vm12, %vm1074_vm9 }
 0x12a   : > { %1213 = vst [vmem:[%s9223_s18 + $0x20] sm:$0xff] %v7610_v6  ;;  %v7612_v9 = vpack.c.bf16 %v1106_v8, %v1105_v7  ;;  %v835_v10 = vpop.f32.mrb[8].mxu0  ;;  %6937 = vmatprep.subr.msk.bf16.mxu0 %vm6936_vm13, %v8899_v59  ;;  %v8019_v8 = vld [vmem:[%s11397_s3 + $0x78] ss:$12 sps:$4 sm:$0xff]  }
 0x12b   : > { %v907_v11 = vadd.f32 %v906_v35, %v835_v10  ;;  %v837_v12 = vpop.f32.mrb[9].mxu0  ;;  %6939 = vmatpush1.bf16.msk.msra.mxu0 %vm6938_vm11, %v8899_v59  ;;  %v8006_v35 = vld [vmem:[%s11397_s3 + $0x4] ss:$12 sps:$4 sm:$0xff]   ;;  %v8024_v10 = vld [vmem:[%s11397_s3 + $0x94] ss:$12 sps:$4 sm:$0xff]  }
 0x12c   : > { %1215 = vst [vmem:[%s9223_s18 + $0x30] sm:$0xff] %v7612_v9  ;;  %v909_v13 = vadd.f32 %v908_v36, %v837_v12  ;;  %v839_v14 = vpop.f32.mrb[10].mxu0 }
 0x12d   : > { %vm1081_vm14 = vcmp.gt.f32.partialorder %v907_v11, 15.0  ;;  %v911_v16 = vadd.f32 %v9210_v37, %v839_v14  ;;  %v841_v17 = vpop.f32.mrb[11].mxu0  ;;  %v9263_v37 = vld [vmem:[%s11396_s2] sm:$0xff]  }
 0x12e   : > { %v1109_v18 = vsel %vm1081_vm14, 1.0, %v8898_v50  ;;  %vm1082_vm15 = vcmp.gt.f32.partialorder %v909_v13, 15.0  ;;  %v913_v19 = vadd.f32 %v9212_v38, %v841_v17  ;;  %v8004_v38 = vld [vmem:[%s11397_s3] ss:$12 sps:$4 sm:$0xff]   ;;  %v8022_v13 = vld [vmem:[%s11397_s3 + $0x90] ss:$12 sps:$4 sm:$0xff]  }
 0x12f   : > { %v1110_v20 = vsel %vm1082_vm15, 1.0, %v8898_v50  ;;  %vm1085_vm1 = vcmp.gt.f32.partialorder %v911_v16, 15.0  ;;  %v8027_v17 = vld [vmem:[%s11397_s3 + $0xac] ss:$12 sps:$4 sm:$0xff]  }
 0x130   : > { %v7614_v21 = vpack.c.bf16 %v1110_v20, %v1109_v18  ;;  %v1113_v22 = vsel %vm1085_vm1, 1.0, %v8898_v50  ;;  %vm6942_vm2 = vmpackc.low %vm1085_vm1, %vm1081_vm14  ;;  %vm1086_vm3 = vcmp.gt.f32.partialorder %v913_v19, 15.0 }
 0x131   : > { %v1114_v23 = vsel %vm1086_vm3, 1.0, %v8898_v50  ;;  %vm6940_vm4 = vmpackc.low %vm1086_vm3, %vm1082_vm15 }
 0x132   : > { %1217 = vst [vmem:[%s9223_s18 + $0x40] sm:$0xff] %v7614_v21  ;;  %v7616_v24 = vpack.c.bf16 %v1114_v23, %v1113_v22  ;;  %v845_v25 = vpop.f32.mrb[12].mxu0  ;;  %6941 = vmatprep.subr.msk.bf16.mxu0 %vm6940_vm4, %v8899_v59  ;;  %v8025_v23 = vld [vmem:[%s11397_s3 + $0xa8] ss:$12 sps:$4 sm:$0xff]  }
 0x133   : > { %v917_v26 = vadd.f32 %v9214_v39, %v845_v25  ;;  %v847_v27 = vpop.f32.mrb[13].mxu0  ;;  %6943 = vmatpush1.bf16.msk.msra.mxu0 %vm6942_vm2, %v8899_v59  ;;  %v8009_v39 = vld [vmem:[%s11397_s3 + $0x1c] ss:$12 sps:$4 sm:$0xff]   ;;  %v8030_v25 = vld [vmem:[%s11397_s3 + $0xc4] ss:$12 sps:$4 sm:$0xff]  }
 0x134   : > { %1219 = vst [vmem:[%s9223_s18 + $0x50] sm:$0xff] %v7616_v24  ;;  %v919_v28 = vadd.f32 %v9216_v40, %v847_v27  ;;  %v849_v29 = vpop.f32.mrb[14].mxu0  ;;  %v8007_v40 = vld [vmem:[%s11397_s3 + $0x18] ss:$12 sps:$4 sm:$0xff]  }
 0x135   : > { %vm1089_vm5 = vcmp.gt.f32.partialorder %v917_v26, 15.0  ;;  %v850_v15 = vpop.f32.mrb[15].mxu0 }
 0x136   : > { %v1117_v30 = vsel %vm1089_vm5, 1.0, %v8898_v50  ;;  %vm1090_vm6 = vcmp.gt.f32.partialorder %v919_v28, 15.0  ;;  %v8028_v28 = vld [vmem:[%s11397_s3 + $0xc0] ss:$12 sps:$4 sm:$0xff]  }
 0x137   : > { %v1133_v31 = vpack.c.bf16 %v1117_v30, %v1117_v30  ;;  %v1118_v32 = vsel %vm1090_vm6, 1.0, %v8898_v50 }
 0x138   : > { %v1134_v33 = vpack.c.bf16 %v1118_v32, %v1118_v32  ;;  %v7618_v34 = vpack.c.bf16 %v1118_v32, %v1117_v30  ;;  %v8035_v30 = vld [vmem:[%s11397_s3 + $0xdc] ss:$12 sps:$4 sm:$0xff]  }
 0x139   : > { %v1252_v36 = vsel %vm768_vm0, %v1133_v31, 0 }
 0x13a   : > { %1221 = vst [vmem:[%s9223_s18 + $0x60] sm:$0xff] %v7618_v34  ;;  %6944 = vmatprep.subr.msk.bf16.mxu0 %vm768_vm0, %v1134_v33 }
 0x13b   : > { %1270 = vmatpush1.bf16.msra.mxu0 %v1252_v36 }
 0x13c   : > { %2037 = vmatprep.subr.bf16.mxu0 %v8006_v35  ;;  %v8031_v35 = vld [vmem:[%s11397_s3 + $0xc8] ss:$12 sps:$4 sm:$0xff]  }
 0x13e   : > { %6945 = vmatmul.mubr.msk.bf16.vlgmr.msra.gmra.mrb[16].mxu0 %vm1241_vm7, %v9263_v37 }
 0x13f   : > { %1305 = vmatprep.mubr.bf16.mxu0 %v8897_v2  ;;  %2038 = vmatpush1.bf16.msra.mxu0 %v8004_v38  ;;  %v8033_v38 = vld [vmem:[%s11397_s3 + $0xd8] ss:$12 sps:$4 sm:$0xff]  }
 0x140   : > { %2039 = vmatprep.subr.bf16.mxu0 %v8009_v39  ;;  %v8040_v39 = vld [vmem:[%s11397_s3 + $0xf4] ss:$12 sps:$4 sm:$0xff]  }
 0x143   : > { %2040 = vmatpush1.bf16.msra.mxu0 %v8007_v40  ;;  %v8032_v40 = vld [vmem:[%s11397_s3 + $0x8] ss:$12 sps:$4 sm:$0xff]  }
 0x144   : > { %2041 = vmatprep.subr.bf16.mxu0 %v8012_v41  ;;  %v8036_v41 = vld [vmem:[%s11397_s3 + $0xe0] ss:$12 sps:$4 sm:$0xff]  }
 0x145   : > { %v1028_v42 = vpop.f32.mrb[16].mxu1 }
 0x146   : > { %vm1067_vm8 = vcmp.gt.f32.partialorder %v1028_v42, 15.0  ;;  %v1030_v44 = vpop.f32.mrb[17].mxu1  ;;  %6946 = vmatmul.mubr.msk.bf16.gmra.mrb[20].mxu0 %vm1241_vm7, %v9283_v43  ;;  %v8038_v42 = vld [vmem:[%s11397_s3 + $0xf0] ss:$12 sps:$4 sm:$0xff]  }
 0x147   : > { %v1095_v46 = vsel %vm1067_vm8, 1.0, %v8898_v50  ;;  %vm1068_vm9 = vcmp.gt.f32.partialorder %v1030_v44, 15.0  ;;  %v1032_v47 = vpop.f32.mrb[18].mxu1  ;;  %1315 = vmatprep.mubr.bf16.mxu0 %v8897_v2  ;;  %2042 = vmatpush1.bf16.msra.mxu0 %v8010_v45  ;;  %v8045_v44 = vld [vmem:[%s11397_s3 + $0x10c] ss:$12 sps:$4 sm:$0xff]  }
 0x148   : > { %v1096_v49 = vsel %vm1068_vm9, 1.0, %v8898_v50  ;;  %vm1071_vm10 = vcmp.gt.f32.partialorder %v1032_v47, 15.0  ;;  %v1034_v51 = vpop.f32.mrb[19].mxu1  ;;  %2043 = vmatprep.subr.bf16.mxu0 %v8015_v48  ;;  %v8037_v45 = vld [vmem:[%s11397_s3 + $0x20] ss:$12 sps:$4 sm:$0xff]  }
 0x149   : > { %v7607_v52 = vpack.c.bf16 %v1096_v49, %v1095_v46  ;;  %v1099_v53 = vsel %vm1071_vm10, 1.0, %v8898_v50  ;;  %vm6950_vm11 = vmpackc.low %vm1071_vm10, %vm1067_vm8  ;;  %vm1072_vm12 = vcmp.gt.f32.partialorder %v1034_v51, 15.0  ;;  %v8041_v46 = vld [vmem:[%s11397_s3 + $0xf8] ss:$12 sps:$4 sm:$0xff]   ;;  %v8046_v49 = vld [vmem:[%s11397_s3 + $0x110] ss:$12 sps:$4 sm:$0xff]  }
 0x14a   : > { %v1100_v54 = vsel %vm1072_vm12, 1.0, %v8898_v50  ;;  %vm6948_vm13 = vmpackc.low %vm1072_vm12, %vm1068_vm9  ;;  %v8050_v47 = vld [vmem:[%s11397_s3 + $0x124] ss:$12 sps:$4 sm:$0xff]   ;;  %v8048_v51 = vld [vmem:[%s11397_s3 + $0x120] ss:$12 sps:$4 sm:$0xff]  }
 0x14b   : > { %1210 = vst [vmem:[%s9223_s18 + $0x8] sm:$0xff] %v7607_v52  ;;  %v7609_v56 = vpack.c.bf16 %v1100_v54, %v1099_v53  ;;  %6949 = vmatprep.subr.msk.bf16.mxu1 %vm6948_vm13, %v8899_v59  ;;  %2044 = vmatpush1.bf16.msra.mxu0 %v8013_v55  ;;  %v8042_v48 = vld [vmem:[%s11397_s3 + $0x38] ss:$12 sps:$4 sm:$0xff]   ;;  %v8055_v52 = vld [vmem:[%s11397_s3 + $0x13c] ss:$12 sps:$4 sm:$0xff]  }
 0x14c   : > { %6951 = vmatpush1.bf16.msk.msra.mxu1 %vm6950_vm11, %v8899_v59  ;;  %2045 = vmatprep.subr.bf16.mxu0 %v8018_v57  ;;  %v8047_v53 = vld [vmem:[%s11397_s3 + $0x50] ss:$12 sps:$4 sm:$0xff]   ;;  %v8051_v54 = vld [vmem:[%s11397_s3 + $0x128] ss:$12 sps:$4 sm:$0xff]   ;;  %v8056_v57 = vld [vmem:[%s11397_s3 + $0x140] ss:$12 sps:$4 sm:$0xff]  }
 0x14d   : > { %1212 = vst [vmem:[%s9223_s18 + $0x18] sm:$0xff] %v7609_v56  ;;  %v1038_v58 = vpop.f32.mrb[20].mxu1  ;;  %v8060_v55 = vld [vmem:[%s11397_s3 + $0x154] ss:$12 sps:$4 sm:$0xff]  }
 0x14e   : > { %vm1075_vm14 = vcmp.gt.f32.partialorder %v1038_v58, 15.0  ;;  %v1040_v61 = vpop.f32.mrb[21].mxu1  ;;  %6947 = vmatmul.mubr.msk.bf16.gmra.mrb[24].mxu0 %vm1241_vm7, %v9311_v60  ;;  %v8052_v56 = vld [vmem:[%s11397_s3 + $0x68] ss:$12 sps:$4 sm:$0xff]   ;;  %v8058_v58 = vld [vmem:[%s11397_s3 + $0x150] ss:$12 sps:$4 sm:$0xff]  }
 0x14f   : > { %v1103_v63 = vsel %vm1075_vm14, 1.0, %v8898_v50  ;;  %vm1076_vm15 = vcmp.gt.f32.partialorder %v1040_v61, 15.0  ;;  %v1042_v0 = vpop.f32.mrb[22].mxu1  ;;  %2046 = vmatpush1.bf16.msra.mxu0 %v8016_v62  ;;  %v8057_v61 = vld [vmem:[%s11397_s3 + $0x80] ss:$12 sps:$4 sm:$0xff]  }
 0x150   : > { %v1104_v3 = vsel %vm1076_vm15, 1.0, %v8898_v50  ;;  %vm1079_vm1 = vcmp.gt.f32.partialorder %v1042_v0, 15.0  ;;  %v1044_v4 = vpop.f32.mrb[23].mxu1  ;;  %2047 = vmatprep.subr.bf16.mxu0 %v8021_v1  ;;  %v8061_v62 = vld [vmem:[%s11397_s3 + $0x158] ss:$12 sps:$4 sm:$0xff]  }
 0x151   : > { %v7611_v5 = vpack.c.bf16 %v1104_v3, %v1103_v63  ;;  %v1107_v6 = vsel %vm1079_vm1, 1.0, %v8898_v50  ;;  %vm6954_vm2 = vmpackc.low %vm1079_vm1, %vm1075_vm14  ;;  %vm1080_vm3 = vcmp.gt.f32.partialorder %v1044_v4, 15.0  ;;  %v8062_v63 = vld [vmem:[%s11397_s3 + $0x98] ss:$12 sps:$4 sm:$0xff]   ;;  %v8063_v0 = vld [vmem:[%s11397_s3 + $0x168] ss:$12 sps:$4 sm:$0xff]  }
 0x152   : > { %v1108_v7 = vsel %vm1080_vm3, 1.0, %v8898_v50  ;;  %vm6952_vm4 = vmpackc.low %vm1080_vm3, %vm1076_vm15  ;;  %v8066_v1 = vld [vmem:[%s11397_s3 + $0x170] ss:$12 sps:$4 sm:$0xff]   ;;  %vm2398_vm3 = vcmask 1045508  }
 0x153   : > { %1214 = vst [vmem:[%s9223_s18 + $0x28] sm:$0xff] %v7611_v5  ;;  %v7613_v9 = vpack.c.bf16 %v1108_v7, %v1107_v6  ;;  %6953 = vmatprep.subr.msk.bf16.mxu1 %vm6952_vm4, %v8899_v59  ;;  %2048 = vmatpush1.bf16.msra.mxu0 %v8019_v8  ;;  %v8067_v3 = vld [vmem:[%s11397_s3 + $0xb0] ss:$12 sps:$4 sm:$0xff]   ;;  %v8074_v5 = vld [vmem:[%s11397_s3 + $0x248] ss:$12 sps:$4 sm:$0xff]   ;;  %vm2435_vm4 = vcmask 1043458  }
 0x154   : > { %6955 = vmatpush1.bf16.msk.msra.mxu1 %vm6954_vm2, %v8899_v59  ;;  %2049 = vmatprep.subr.bf16.mxu0 %v8024_v10  ;;  %v8070_v4 = vld [vmem:[%s11397_s3 + $0x184] ss:$12 sps:$4 sm:$0xff]   ;;  %vm2397_vm2 = vcmask 1041408  }
 0x155   : > { %1216 = vst [vmem:[%s9223_s18 + $0x38] sm:$0xff] %v7613_v9  ;;  %v1048_v11 = vpop.f32.mrb[24].mxu1 }
 0x156   : > { %vm1083_vm5 = vcmp.gt.f32.partialorder %v1048_v11, 15.0  ;;  %v1050_v12 = vpop.f32.mrb[25].mxu1 }
 0x157   : > { %v1111_v14 = vsel %vm1083_vm5, 1.0, %v8898_v50  ;;  %vm1084_vm6 = vcmp.gt.f32.partialorder %v1050_v12, 15.0  ;;  %v1052_v16 = vpop.f32.mrb[26].mxu1  ;;  %2050 = vmatpush1.bf16.msra.mxu0 %v8022_v13  ;;  %v8068_v12 = vld [vmem:[%s11397_s3 + $0x180] ss:$12 sps:$4 sm:$0xff]  }
 0x158   : > { %v1112_v18 = vsel %vm1084_vm6, 1.0, %v8898_v50  ;;  %vm1087_vm8 = vcmp.gt.f32.partialorder %v1052_v16, 15.0  ;;  %v1054_v19 = vpop.f32.mrb[27].mxu1  ;;  %2051 = vmatprep.subr.bf16.mxu0 %v8027_v17  ;;  %v8078_v13 = vld [vmem:[%s11397_s3 + $0x188] ss:$12 sps:$4 sm:$0xff]  }
 0x159   : > { %v7615_v20 = vpack.c.bf16 %v1112_v18, %v1111_v14  ;;  %v1115_v21 = vsel %vm1087_vm8, 1.0, %v8898_v50  ;;  %vm6958_vm9 = vmpackc.low %vm1087_vm8, %vm1083_vm5  ;;  %vm1088_vm10 = vcmp.gt.f32.partialorder %v1054_v19, 15.0  ;;  %v8073_v14 = vld [vmem:[%s11397_s3 + $0x19c] ss:$12 sps:$4 sm:$0xff]   ;;  %v8079_v16 = vld [vmem:[%s11397_s3 + $0x260] ss:$12 sps:$4 sm:$0xff]  }
 0x15a   : > { %v1116_v22 = vsel %vm1088_vm10, 1.0, %v8898_v50  ;;  %vm6956_vm11 = vmpackc.low %vm1088_vm10, %vm1084_vm6  ;;  %v8071_v17 = vld [vmem:[%s11397_s3 + $0x198] ss:$12 sps:$4 sm:$0xff]   ;;  %v8083_v18 = vld [vmem:[%s11397_s3 + $0x1a0] ss:$12 sps:$4 sm:$0xff]   ;;  %vm2576_vm6 = vcmask 1043457  }
 0x15b   : > { %1218 = vst [vmem:[%s9223_s18 + $0x48] sm:$0xff] %v7615_v20  ;;  %v7617_v24 = vpack.c.bf16 %v1116_v22, %v1115_v21  ;;  %6957 = vmatprep.subr.msk.bf16.mxu1 %vm6956_vm11, %v8899_v59  ;;  %2052 = vmatpush1.bf16.msra.mxu0 %v8025_v23  ;;  %v8077_v20 = vld [vmem:[%s11397_s3 + $0x1b4] ss:$12 sps:$4 sm:$0xff]   ;;  %v8084_v21 = vld [vmem:[%s11397_s3 + $0x278] ss:$12 sps:$4 sm:$0xff]  }
 0x15c   : > { %6959 = vmatpush1.bf16.msk.msra.mxu1 %vm6958_vm9, %v8899_v59  ;;  %2053 = vmatprep.subr.bf16.mxu0 %v8030_v25  ;;  %vm2436_vm5 = vsmask.f32 7946  ;;  %vm2577_vm8 = vsmask.f32 3328  ;;  %vm9823_vm9 = vmor %vm2397_vm2, %vm2398_vm3  ;;  %vm2512_vm10 = vsmask.f32 256 }
 0x15d   : > { %1220 = vst [vmem:[%s9223_s18 + $0x58] sm:$0xff] %v7617_v24  ;;  %v1058_v26 = vpop.f32.mrb[28].mxu1  ;;  %vm2513_vm11 = vsmask.f32 4368  ;;  %vm2729_vm2 = vcmask 1043459  }
 0x15e   : > { %vm1091_vm12 = vcmp.gt.f32.partialorder %v1058_v26, 15.0  ;;  %v1060_v27 = vpop.f32.mrb[29].mxu1  ;;  %v8075_v26 = vld [vmem:[%s11397_s3 + $0x1b0] ss:$12 sps:$4 sm:$0xff]   ;;  %vm2730_vm3 = vsmask.f32 7950 }
 0x15f   : > { %v1119_v29 = vsel %vm1091_vm12, 1.0, %v8898_v50  ;;  %vm1092_vm13 = vcmp.gt.f32.partialorder %v1060_v27, 15.0  ;;  %v1062_v15 = vpop.f32.mrb[30].mxu1  ;;  %2054 = vmatpush1.bf16.msra.mxu0 %v8028_v28  ;;  %v8088_v27 = vld [vmem:[%s11397_s3 + $0x1b8] ss:$12 sps:$4 sm:$0xff]  }
 0x160   : > { %v1135_v59 = vpack.c.bf16 %v1119_v29, %v1119_v29  ;;  %v1120_v31 = vsel %vm1092_vm13, 1.0, %v8898_v50  ;;  %v1063_v32 = vpop.f32.mrb[31].mxu1  ;;  %2055 = vmatprep.subr.bf16.mxu0 %v8035_v30  ;;  %v8089_v15 = vld [vmem:[%s11397_s3 + $0x290] ss:$12 sps:$4 sm:$0xff]   ;;  %v8080_v30 = vld [vmem:[%s11397_s3 + $0x1c8] ss:$12 sps:$4 sm:$0xff]   ;;  %vm9837_vm13 = vmand %vm2435_vm4, %vm2436_vm5 }
 0x161   : > { %v1136_v33 = vpack.c.bf16 %v1120_v31, %v1120_v31  ;;  %v7619_v34 = vpack.c.bf16 %v1120_v31, %v1119_v29  ;;  %v8082_v29 = vld [vmem:[%s11397_s3 + $0x1cc] ss:$12 sps:$4 sm:$0xff]   ;;  %v8087_v32 = vld [vmem:[%s11397_s3 + $0x1e4] ss:$12 sps:$4 sm:$0xff]   ;;  %vm2648_vm12 = vsmask.f32 6416 }
 0x162   : > { %v1258_v36 = vsel %vm768_vm0, %v1135_v59, 0  ;;  %v8093_v59 = vld [vmem:[%s11397_s3 + $0x1d0] ss:$12 sps:$4 sm:$0xff]   ;;  %vm2317_vm4 = vcmask 1046532  }
 0x163   : > { %1222 = vst [vmem:[%s9223_s18 + $0x68] sm:$0xff] %v7619_v34  ;;  %6960 = vmatprep.subr.msk.bf16.mxu1 %vm768_vm0, %v1136_v33  ;;  %2056 = vmatpush1.bf16.msra.mxu0 %v8033_v38  ;;  %v8094_v33 = vld [vmem:[%s11397_s3 + $0x2a8] ss:$12 sps:$4 sm:$0xff]   ;;  %vm11401_vm0 = vcmask 1042432  }
 0x164   : > { %1331 = vmatpush1.bf16.msra.mxu1 %v1258_v36  ;;  %2057 = vmatprep.subr.bf16.mxu0 %v8040_v39 }
 0x165   : > { %7644 = vmatprep.subr.bf16.mxu1 %v8031_v35 }
 0x167   : > { %6961 = vmatmul.mubr.msk.bf16.vlgmr.msra.gmra.mrb[32].mxu1 %vm1241_vm7, %v9263_v37  ;;  %2058 = vmatpush1.bf16.msra.mxu0 %v8038_v42  ;;  %v8043_v37 = vld [vmem:[%s11397_s3 + $0x108] ss:$12 sps:$4 sm:$0xff]  }
 0x168   : > { %1366 = vmatprep.mubr.bf16.mxu1 %v8897_v2  ;;  %7645 = vmatpush3.bf16.msra.mxu1 %v8032_v40  ;;  %v8085_v40 = vld [vmem:[%s11397_s3 + $0x1e0] ss:$12 sps:$4 sm:$0xff]   ;;  %v8092_v42 = vld [vmem:[%s11397_s3 + $0x1fc] ss:$12 sps:$4 sm:$0xff]  }
 0x169   : > { %7646 = vmatprep.subr.bf16.mxu1 %v8036_v41  ;;  %2059 = vmatprep.subr.bf16.mxu0 %v8045_v44  ;;  %v8098_v41 = vld [vmem:[%s11397_s3 + $0x1e8] ss:$12 sps:$4 sm:$0xff]   ;;  %v8099_v44 = vld [vmem:[%s11397_s3 + $0x2c0] ss:$12 sps:$4 sm:$0xff]  }
 0x16b   : > { %2060 = vmatpush1.bf16.msra.mxu0 %v8043_v37  ;;  %v8097_v37 = vld [vmem:[%s11397_s3 + $0x214] ss:$12 sps:$4 sm:$0xff]  }
 0x16c   : > { %7647 = vmatpush3.bf16.msra.mxu1 %v8037_v45  ;;  %2061 = vmatprep.subr.bf16.mxu0 %v8050_v47  ;;  %v8090_v45 = vld [vmem:[%s11397_s3 + $0x1f8] ss:$12 sps:$4 sm:$0xff]  }
 0x16d   : > { %7648 = vmatprep.subr.bf16.mxu1 %v8041_v46  ;;  %v8103_v46 = vld [vmem:[%s11397_s3 + $0x200] ss:$12 sps:$4 sm:$0xff]   ;;  %v8104_v47 = vld [vmem:[%s11397_s3 + $0x2d8] ss:$12 sps:$4 sm:$0xff]  }
 0x16f   : > { %6962 = vmatmul.mubr.msk.bf16.gmra.mrb[36].mxu1 %vm1241_vm7, %v9283_v43  ;;  %2062 = vmatpush1.bf16.msra.mxu0 %v8048_v51  ;;  %v8053_v43 = vld [vmem:[%s11397_s3 + $0x138] ss:$12 sps:$4 sm:$0xff]  }
 0x170   : > { %1376 = vmatprep.mubr.bf16.mxu1 %v8897_v2  ;;  %7649 = vmatpush3.bf16.msra.mxu1 %v8042_v48  ;;  %v8095_v48 = vld [vmem:[%s11397_s3 + $0x210] ss:$12 sps:$4 sm:$0xff]   ;;  %v8102_v51 = vld [vmem:[%s11397_s3 + $0x22c] ss:$12 sps:$4 sm:$0xff]  }
 0x171   : > { %7650 = vmatprep.subr.bf16.mxu1 %v8046_v49  ;;  %2063 = vmatprep.subr.bf16.mxu0 %v8055_v52  ;;  %v8108_v49 = vld [vmem:[%s11397_s3 + $0x218] ss:$12 sps:$4 sm:$0xff]   ;;  %v8109_v52 = vld [vmem:[%s11397_s3 + $0x2f0] ss:$12 sps:$4 sm:$0xff]  }
 0x173   : > { %2064 = vmatpush1.bf16.msra.mxu0 %v8053_v43  ;;  %v8107_v43 = vld [vmem:[%s11397_s3 + $0x244] ss:$12 sps:$4 sm:$0xff]  }
 0x174   : > { %7651 = vmatpush3.bf16.msra.mxu1 %v8047_v53  ;;  %2065 = vmatprep.subr.bf16.mxu0 %v8060_v55  ;;  %v8100_v53 = vld [vmem:[%s11397_s3 + $0x228] ss:$12 sps:$4 sm:$0xff]   ;;  %v8105_v55 = vld [vmem:[%s11397_s3 + $0x240] ss:$12 sps:$4 sm:$0xff]  }
 0x175   : > { %7652 = vmatprep.subr.bf16.mxu1 %v8051_v54  ;;  %v8113_v54 = vld [vmem:[%s11397_s3 + $0x230] ss:$12 sps:$4 sm:$0xff]  }
 0x177   : > { %6963 = vmatmul.mubr.msk.bf16.gmra.mrb[40].mxu1 %vm1241_vm7, %v9311_v60  ;;  %2066 = vmatpush1.bf16.msra.mxu0 %v8058_v58  ;;  %v8065_v60 = vld [vmem:[%s11397_s3 + $0x16c] ss:$12 sps:$4 sm:$0xff]   ;;  %vm2315_vm7 = vsmask.f32 2304 }
 0x178   : > { %7653 = vmatpush3.bf16.msra.mxu1 %v8052_v56  ;;  %2067 = vmatprep.subr.bf16.mxu0 %v8065_v60  ;;  %v8112_v56 = vld [vmem:[%s11397_s3 + $0x25c] ss:$12 sps:$4 sm:$0xff]   ;;  %vm9810_vm15 = vmand %vm11401_vm0, %vm2315_vm7 }
 0x179   : > { %7654 = vmatprep.subr.bf16.mxu1 %v8056_v57  ;;  %vm9897_vm0 = vmor %vm2315_vm7, %vm2648_vm12 }
 0x17a   : > { %vm9914_vm7 = vmand %vm2729_vm2, %vm2730_vm3  ;;  %vm11421_vm3 = vcmask 1040384  }
 0x17b   : > { %2068 = vmatpush1.bf16.msra.mxu0 %v8063_v0  ;;  %v8116_v0 = vld [vmem:[%s11397_s3 + $0x274] ss:$12 sps:$4 sm:$0xff]  }
 0x17c   : > { %7655 = vmatpush3.bf16.msra.mxu1 %v8057_v61  ;;  %2098 = vmatprep.subr.bf16.mxu0 %v8070_v4  ;;  %v8119_v4 = vld [vmem:[%s11397_s3 + $0x28c] ss:$12 sps:$4 sm:$0xff]  }
 0x17d   : > { %7656 = vmatprep.subr.bf16.mxu1 %v8061_v62  ;;  %v8110_v62 = vld [vmem:[%s11397_s3 + $0x258] ss:$12 sps:$4 sm:$0xff]  }
 0x180   : > { %7657 = vmatpush3.bf16.msra.mxu1 %v8062_v63 }
 0x181   : > { %7658 = vmatprep.subr.bf16.mxu1 %v8066_v1 }
 0x184   : > { %7659 = vmatpush3.bf16.msra.mxu1 %v8067_v3  ;;  %v8114_v3 = vld [vmem:[%s11397_s3 + $0x270] ss:$12 sps:$4 sm:$0xff]  }
 0x185   : > { %7678 = vmatprep.subr.bf16.mxu1 %v8074_v5 }
 0x211   : > { %v1297_v6 = vpop.f32.mrb[16].mxu0 }
 0x212   : > { %v1299_v7 = vpop.f32.mrb[17].mxu0 }
 0x213   : > { %v1301_v8 = vpop.f32.mrb[18].mxu0 }
 0x214   : > { %v1385_v9 = vpack.c.bf16 %v1301_v8, %v1297_v6  ;;  %v1303_v10 = vpop.f32.mrb[19].mxu0  ;;  %v8117_v8 = vld [vmem:[%s11397_s3 + $0x288] ss:$12 sps:$4 sm:$0xff]  }
 0x215   : > { %v1386_v11 = vpack.c.bf16 %v1303_v10, %v1299_v7 }
 0x217   : > { %2069 = vmatprep.mubr.bf16.mxu0 %v1386_v11  ;;  %2191 = vmatprep.mubr.bf16.mxu1 %v1386_v11  ;;  %v8122_v11 = vld [vmem:[%s11397_s3 + $0x2a4] ss:$12 sps:$4 sm:$0xff]  }
 0x218   : > { %2070 = vmatmul.mubr.bf16.vlgmr.msra.gmra.mrb[28].mxu0 %v1385_v9  ;;  %2192 = vmatmul.mubr.bf16.vlgmr.msra.gmra.mrb[44].mxu1 %v1385_v9 }
 0x219   : > { %2099 = vmatpush1.bf16.msra.mxu0 %v8068_v12  ;;  %7679 = vmatpush3.bf16.msra.mxu1 %v8078_v13  ;;  %v1307_v19 = vpop.f32.mrb[20].mxu0  ;;  %v8120_v13 = vld [vmem:[%s11397_s3 + $0x2a0] ss:$12 sps:$4 sm:$0xff]  }
 0x21a   : > { %2100 = vmatprep.subr.bf16.mxu0 %v8073_v14  ;;  %7680 = vmatprep.subr.bf16.mxu1 %v8079_v16  ;;  %v1309_v22 = vpop.f32.mrb[21].mxu0  ;;  %v8125_v14 = vld [vmem:[%s11397_s3 + $0x2bc] ss:$12 sps:$4 sm:$0xff]  }
 0x21b   : > { %v1311_v23 = vpop.f32.mrb[22].mxu0 }
 0x21c   : > { %v1389_v24 = vpack.c.bf16 %v1311_v23, %v1307_v19  ;;  %v1313_v25 = vpop.f32.mrb[23].mxu0  ;;  %v8123_v19 = vld [vmem:[%s11397_s3 + $0x2b8] ss:$12 sps:$4 sm:$0xff]  }
 0x21d   : > { %2101 = vmatpush1.bf16.msra.mxu0 %v8071_v17  ;;  %7681 = vmatpush3.bf16.msra.mxu1 %v8083_v18  ;;  %v1390_v28 = vpack.c.bf16 %v1313_v25, %v1309_v22  ;;  %v8128_v22 = vld [vmem:[%s11397_s3 + $0x2d4] ss:$12 sps:$4 sm:$0xff]   ;;  %v8131_v25 = vld [vmem:[%s11397_s3 + $0x2ec] ss:$12 sps:$4 sm:$0xff]  }
 0x21e   : > { %2102 = vmatprep.subr.bf16.mxu0 %v8077_v20  ;;  %7682 = vmatprep.subr.bf16.mxu1 %v8084_v21 }
 0x21f   : > { %2199 = vmatprep.mubr.bf16.mxu1 %v1390_v28  ;;  %2079 = vmatprep.mubr.bf16.mxu0 %v1390_v28  ;;  %v8134_v28 = vld [vmem:[%s11398_s4 + $0x4] ss:$16 sps:$4 sm:$0xff]  }
 0x220   : > { %2200 = vmatmul.mubr.bf16.gmra.mrb[48].mxu1 %v1389_v24  ;;  %2080 = vmatmul.mubr.bf16.gmra.mrb[32].mxu0 %v1389_v24  ;;  %v8126_v24 = vld [vmem:[%s11397_s3 + $0x2d0] ss:$12 sps:$4 sm:$0xff]  }
 0x221   : > { %2103 = vmatpush1.bf16.msra.mxu0 %v8075_v26  ;;  %7683 = vmatpush3.bf16.msra.mxu1 %v8088_v27  ;;  %v1317_v31 = vpop.f32.mrb[24].mxu0  ;;  %v8129_v26 = vld [vmem:[%s11397_s3 + $0x2e8] ss:$12 sps:$4 sm:$0xff]   ;;  %v8132_v27 = vld [vmem:[%s11398_s4] ss:$16 sps:$4 sm:$0xff]  }
 0x222   : > { %2104 = vmatprep.subr.bf16.mxu0 %v8082_v29  ;;  %7684 = vmatprep.subr.bf16.mxu1 %v8089_v15  ;;  %v1319_v34 = vpop.f32.mrb[25].mxu0  ;;  %v1393_v38 = vpack.c.bf16 %v1317_v31, %v1317_v31  ;;  %v8135_v29 = vld [vmem:[%s11398_s4 + $0x8] ss:$16 sps:$4 sm:$0xff]   ;;  %v8137_v15 = vld [vmem:[%s11398_s4 + $0xc] ss:$16 sps:$4 sm:$0xff]  }
 0x223   : > { %v1394_v35 = vpack.c.bf16 %v1319_v34, %v1319_v34  ;;  %v1321_v36 = vpop.f32.mrb[26].mxu0  ;;  %v8141_v31 = vld [vmem:[%s11398_s4 + $0x28] ss:$16 sps:$4 sm:$0xff]   ;;  %v8149_v34 = vld [vmem:[%s11398_s4 + $0x4c] ss:$16 sps:$4 sm:$0xff]  }
 0x224   : > { %v1322_v39 = vpop.f32.mrb[27].mxu0  ;;  %v8147_v36 = vld [vmem:[%s11398_s4 + $0x48] ss:$16 sps:$4 sm:$0xff]  }
 0x225   : > { %2105 = vmatpush1.bf16.msra.mxu0 %v8080_v30  ;;  %7685 = vmatpush3.bf16.msra.mxu1 %v8093_v59  ;;  %v8138_v30 = vld [vmem:[%s11398_s4 + $0x20] ss:$16 sps:$4 sm:$0xff]   ;;  %v8140_v59 = vld [vmem:[%s11398_s4 + $0x24] ss:$16 sps:$4 sm:$0xff]   ;;  %v8155_v39 = vld [vmem:[%s11398_s4 + $0x6c] ss:$16 sps:$4 sm:$0xff]  }
 0x226   : > { %2106 = vmatprep.subr.bf16.mxu0 %v8087_v32  ;;  %7686 = vmatprep.subr.bf16.mxu1 %v8094_v33  ;;  %v8143_v32 = vld [vmem:[%s11398_s4 + $0x2c] ss:$16 sps:$4 sm:$0xff]   ;;  %v8146_v33 = vld [vmem:[%s11398_s4 + $0x44] ss:$16 sps:$4 sm:$0xff]  }
 0x227   : > { %2207 = vmatprep.mubr.bf16.mxu1 %v1394_v35  ;;  %2089 = vmatprep.mubr.bf16.mxu0 %v1394_v35  ;;  %v8144_v35 = vld [vmem:[%s11398_s4 + $0x40] ss:$16 sps:$4 sm:$0xff]  }
 0x228   : > { %2208 = vmatmul.mubr.bf16.gmra.mrb[52].mxu1 %v1393_v38  ;;  %2090 = vmatmul.mubr.bf16.gmra.mrb[36].mxu0 %v1393_v38  ;;  %v8152_v38 = vld [vmem:[%s11398_s4 + $0x64] ss:$16 sps:$4 sm:$0xff]  }
 0x229   : > { %2107 = vmatpush1.bf16.msra.mxu0 %v8085_v40  ;;  %7687 = vmatpush3.bf16.msra.mxu1 %v8098_v41  ;;  %v8150_v40 = vld [vmem:[%s11398_s4 + $0x60] ss:$16 sps:$4 sm:$0xff]   ;;  %v8153_v41 = vld [vmem:[%s11398_s4 + $0x68] ss:$16 sps:$4 sm:$0xff]  }
 0x22a   : > { %2108 = vmatprep.subr.bf16.mxu0 %v8092_v42  ;;  %7688 = vmatprep.subr.bf16.mxu1 %v8099_v44  ;;  %v8158_v42 = vld [vmem:[%s11398_s4 + $0x84] ss:$16 sps:$4 sm:$0xff]   ;;  %v8161_v44 = vld [vmem:[%s11398_s4 + $0x8c] ss:$16 sps:$4 sm:$0xff]  }
 0x22d   : > { %2109 = vmatpush1.bf16.msra.mxu0 %v8090_v45  ;;  %7689 = vmatpush3.bf16.msra.mxu1 %v8103_v46  ;;  %v8156_v45 = vld [vmem:[%s11398_s4 + $0x80] ss:$16 sps:$4 sm:$0xff]   ;;  %v8159_v46 = vld [vmem:[%s11398_s4 + $0x88] ss:$16 sps:$4 sm:$0xff]  }
 0x22e   : > { %2110 = vmatprep.subr.bf16.mxu0 %v8097_v37  ;;  %7690 = vmatprep.subr.bf16.mxu1 %v8104_v47  ;;  %v8164_v37 = vld [vmem:[%s11398_s4 + $0xa4] ss:$16 sps:$4 sm:$0xff]   ;;  %v8167_v47 = vld [vmem:[%s11398_s4 + $0xac] ss:$16 sps:$4 sm:$0xff]  }
 0x231   : > { %2111 = vmatpush1.bf16.msra.mxu0 %v8095_v48  ;;  %7691 = vmatpush3.bf16.msra.mxu1 %v8108_v49  ;;  %v8162_v48 = vld [vmem:[%s11398_s4 + $0xa0] ss:$16 sps:$4 sm:$0xff]   ;;  %v8165_v49 = vld [vmem:[%s11398_s4 + $0xa8] ss:$16 sps:$4 sm:$0xff]  }
 0x232   : > { %2112 = vmatprep.subr.bf16.mxu0 %v8102_v51  ;;  %7692 = vmatprep.subr.bf16.mxu1 %v8109_v52  ;;  %v8170_v51 = vld [vmem:[%s11398_s4 + $0xc4] ss:$16 sps:$4 sm:$0xff]   ;;  %v8168_v52 = vld [vmem:[%s11398_s4 + $0xc0] ss:$16 sps:$4 sm:$0xff]  }
 0x235   : > { %2113 = vmatpush1.bf16.msra.mxu0 %v8100_v53  ;;  %7693 = vmatpush3.bf16.msra.mxu1 %v8113_v54  ;;  %v8171_v53 = vld [vmem:[%s11398_s4 + $0xc8] ss:$16 sps:$4 sm:$0xff]   ;;  %v8173_v54 = vld [vmem:[%s11398_s4 + $0xcc] ss:$16 sps:$4 sm:$0xff]  }
 0x236   : > { %2114 = vmatprep.subr.bf16.mxu0 %v8107_v43  ;;  %5897 = vmatprep.subr.bf16.mxu1 %v8134_v28  ;;  %v8176_v43 = vld [vmem:[%s11398_s4 + $0xe4] ss:$16 sps:$4 sm:$0xff]   ;;  %v8225_v28 = vld [vmem:[%s11398_s4 + $0x1e8] ss:$16 sps:$4 sm:$0xff]  }
 0x239   : > { %2115 = vmatpush1.bf16.msra.mxu0 %v8105_v55  ;;  %v8179_v55 = vld [vmem:[%s11398_s4 + $0xec] ss:$16 sps:$4 sm:$0xff]  }
 0x23a   : > { %v1358_v57 = vpop.f32.mrb[32].mxu1  ;;  %2116 = vmatprep.subr.bf16.mxu0 %v8112_v56  ;;  %v8174_v56 = vld [vmem:[%s11398_s4 + $0xe0] ss:$16 sps:$4 sm:$0xff]  }
 0x23b   : > { %v1360_v58 = vpop.f32.mrb[33].mxu1 }
 0x23c   : > { %v1362_v61 = vpop.f32.mrb[34].mxu1 }
 0x23d   : > { %v1387_v63 = vpack.c.bf16 %v1362_v61, %v1358_v57  ;;  %v1364_v60 = vpop.f32.mrb[35].mxu1  ;;  %2117 = vmatpush1.bf16.msra.mxu0 %v8110_v62  ;;  %v8177_v57 = vld [vmem:[%s11398_s4 + $0xe8] ss:$16 sps:$4 sm:$0xff]   ;;  %v8185_v61 = vld [vmem:[%s11398_s4 + $0x10c] ss:$16 sps:$4 sm:$0xff]  }
 0x23e   : > { %v1388_v1 = vpack.c.bf16 %v1364_v60, %v1360_v58  ;;  %2118 = vmatprep.subr.bf16.mxu0 %v8116_v0  ;;  %v8182_v58 = vld [vmem:[%s11398_s4 + $0x104] ss:$16 sps:$4 sm:$0xff]   ;;  %v8180_v62 = vld [vmem:[%s11398_s4 + $0x100] ss:$16 sps:$4 sm:$0xff]   ;;  %v8191_v0 = vld [vmem:[%s11398_s4 + $0x12c] ss:$16 sps:$4 sm:$0xff]  }
 0x23f   : > { %v8188_v60 = vld [vmem:[%s11398_s4 + $0x124] ss:$16 sps:$4 sm:$0xff]  }
 0x240   : > { %2247 = vmatprep.mubr.bf16.mxu1 %v1388_v1  ;;  %2130 = vmatprep.mubr.bf16.mxu0 %v1388_v1  ;;  %v8186_v1 = vld [vmem:[%s11398_s4 + $0x120] ss:$16 sps:$4 sm:$0xff]  }
 0x241   : > { %2248 = vmatmul.mubr.bf16.vlgmr.msra.gmra.mrb[56].mxu1 %v1387_v63  ;;  %2119 = vmatpush1.bf16.msra.mxu0 %v8114_v3  ;;  %v8189_v3 = vld [vmem:[%s11398_s4 + $0x128] ss:$16 sps:$4 sm:$0xff]  }
 0x242   : > { %v1368_v5 = vpop.f32.mrb[36].mxu1  ;;  %2120 = vmatprep.subr.bf16.mxu0 %v8119_v4  ;;  %5898 = vmatpush1.bf16.msra.mxu1 %v8132_v27  ;;  %v8194_v4 = vld [vmem:[%s11398_s4 + $0x144] ss:$16 sps:$4 sm:$0xff]   ;;  %v8222_v27 = vld [vmem:[%s11398_s4 + $0x1e0] ss:$16 sps:$4 sm:$0xff]  }
 0x243   : > { %v1370_v6 = vpop.f32.mrb[37].mxu1  ;;  %5899 = vmatprep.subr.bf16.mxu1 %v8140_v59 }
 0x244   : > { %v1372_v7 = vpop.f32.mrb[38].mxu1 }
 0x245   : > { %v1391_v9 = vpack.c.bf16 %v1372_v7, %v1368_v5  ;;  %v1374_v10 = vpop.f32.mrb[39].mxu1  ;;  %2121 = vmatpush1.bf16.msra.mxu0 %v8117_v8  ;;  %v8197_v5 = vld [vmem:[%s11398_s4 + $0x14c] ss:$16 sps:$4 sm:$0xff]   ;;  %v8195_v7 = vld [vmem:[%s11398_s4 + $0x148] ss:$16 sps:$4 sm:$0xff]  }
 0x246   : > { %v1392_v12 = vpack.c.bf16 %v1374_v10, %v1370_v6  ;;  %2122 = vmatprep.subr.bf16.mxu0 %v8122_v11  ;;  %5900 = vmatpush1.bf16.msra.mxu1 %v8138_v30  ;;  %v8192_v6 = vld [vmem:[%s11398_s4 + $0x140] ss:$16 sps:$4 sm:$0xff]   ;;  %v8200_v8 = vld [vmem:[%s11398_s4 + $0x164] ss:$16 sps:$4 sm:$0xff]   ;;  %v8201_v11 = vld [vmem:[%s11398_s4 + $0x168] ss:$16 sps:$4 sm:$0xff]  }
 0x247   : > { %5901 = vmatprep.subr.bf16.mxu1 %v8146_v33  ;;  %v8198_v10 = vld [vmem:[%s11398_s4 + $0x160] ss:$16 sps:$4 sm:$0xff]  }
 0x248   : > { %2255 = vmatprep.mubr.bf16.mxu1 %v1392_v12 }
 0x249   : > { %2256 = vmatmul.mubr.bf16.gmra.mrb[60].mxu1 %v1391_v9  ;;  %2123 = vmatpush1.bf16.msra.mxu0 %v8120_v13  ;;  %v8209_v13 = vld [vmem:[%s11398_s4 + $0x18c] ss:$16 sps:$4 sm:$0xff]  }
 0x24a   : > { %v1378_v16 = vpop.f32.mrb[40].mxu1  ;;  %2124 = vmatprep.subr.bf16.mxu0 %v8125_v14  ;;  %5902 = vmatpush1.bf16.msra.mxu1 %v8144_v35  ;;  %v8204_v14 = vld [vmem:[%s11398_s4 + $0x180] ss:$16 sps:$4 sm:$0xff]  }
 0x24b   : > { %v1380_v17 = vpop.f32.mrb[41].mxu1  ;;  %v1395_v21 = vpack.c.bf16 %v1378_v16, %v1378_v16  ;;  %5903 = vmatprep.subr.bf16.mxu1 %v8152_v38  ;;  %v8207_v16 = vld [vmem:[%s11398_s4 + $0x188] ss:$16 sps:$4 sm:$0xff]  }
 0x24c   : > { %v1396_v18 = vpack.c.bf16 %v1380_v17, %v1380_v17  ;;  %v1382_v20 = vpop.f32.mrb[42].mxu1  ;;  %v8212_v17 = vld [vmem:[%s11398_s4 + $0x1a4] ss:$16 sps:$4 sm:$0xff]  }
 0x24d   : > { %v1383_v23 = vpop.f32.mrb[43].mxu1  ;;  %2125 = vmatpush1.bf16.msra.mxu0 %v8123_v19  ;;  %v8213_v19 = vld [vmem:[%s11398_s4 + $0x1a8] ss:$16 sps:$4 sm:$0xff]   ;;  %v8215_v20 = vld [vmem:[%s11398_s4 + $0x1ac] ss:$16 sps:$4 sm:$0xff]  }
 0x24e   : > { %2263 = vmatprep.mubr.bf16.mxu1 %v1396_v18  ;;  %2126 = vmatprep.subr.bf16.mxu0 %v8128_v22  ;;  %v8221_v22 = vld [vmem:[%s11398_s4 + $0x1cc] ss:$16 sps:$4 sm:$0xff]   ;;  %v8216_v23 = vld [vmem:[%s11398_s4 + $0x1c0] ss:$16 sps:$4 sm:$0xff]  }
 0x24f   : > { %5904 = vmatpush1.bf16.msra.mxu1 %v8150_v40 }
 0x250   : > { %5905 = vmatprep.subr.bf16.mxu1 %v8158_v42 }
 0x251   : > { %2264 = vmatmul.mubr.bf16.gmra.mrb[64].mxu1 %v1395_v21  ;;  %2127 = vmatpush1.bf16.msra.mxu0 %v8126_v24  ;;  %v8219_v24 = vld [vmem:[%s11398_s4 + $0x1c8] ss:$16 sps:$4 sm:$0xff]  }
 0x252   : > { %2128 = vmatprep.subr.bf16.mxu0 %v8131_v25  ;;  %v8224_v25 = vld [vmem:[%s11398_s4 + $0x1e4] ss:$16 sps:$4 sm:$0xff]  }
 0x253   : > { %5906 = vmatpush1.bf16.msra.mxu1 %v8156_v45 }
 0x254   : > { %5907 = vmatprep.subr.bf16.mxu1 %v8164_v37 }
 0x255   : > { %2129 = vmatpush1.bf16.msra.mxu0 %v8129_v26  ;;  %v8227_v26 = vld [vmem:[%s11398_s4 + $0x1ec] ss:$16 sps:$4 sm:$0xff]  }
 0x256   : > { %6305 = vmatprep.subr.bf16.mxu0 %v8137_v15  ;;  %v8236_v15 = vld [vmem:[%s11398_s4 + $0x20c] ss:$16 sps:$4 sm:$0xff]  }
 0x257   : > { %5908 = vmatpush1.bf16.msra.mxu1 %v8162_v48 }
 0x258   : > { %2131 = vmatmul.mubr.bf16.vlgmr.msra.gmra.mrb[28].mxu0 %v1387_v63  ;;  %5909 = vmatprep.subr.bf16.mxu1 %v8170_v51  ;;  %v8183_v63 = vld [vmem:[%s11398_s4 + $0x108] ss:$16 sps:$4 sm:$0xff]  }
 0x259   : > { %2140 = vmatprep.mubr.bf16.mxu0 %v1392_v12  ;;  %6306 = vmatpush1.bf16.msra.mxu0 %v8135_v29  ;;  %v8206_v12 = vld [vmem:[%s11398_s4 + $0x184] ss:$16 sps:$4 sm:$0xff]  }
 0x25a   : > { %6307 = vmatprep.subr.bf16.mxu0 %v8143_v32  ;;  %v8233_v29 = vld [vmem:[%s11398_s4 + $0x204] ss:$16 sps:$4 sm:$0xff]  }
 0x25b   : > { %5910 = vmatpush1.bf16.msra.mxu1 %v8168_v52 }
 0x25c   : > { %5911 = vmatprep.subr.bf16.mxu1 %v8176_v43 }
 0x25d   : > { %6308 = vmatpush1.bf16.msra.mxu0 %v8141_v31 }
 0x25e   : > { %6309 = vmatprep.subr.bf16.mxu0 %v8149_v34 }
 0x25f   : > { %5912 = vmatpush1.bf16.msra.mxu1 %v8174_v56 }
 0x260   : > { %2141 = vmatmul.mubr.bf16.gmra.mrb[32].mxu0 %v1391_v9  ;;  %5913 = vmatprep.subr.bf16.mxu1 %v8182_v58  ;;  %v8203_v9 = vld [vmem:[%s11398_s4 + $0x16c] ss:$16 sps:$4 sm:$0xff]  }
 0x261   : > { %2150 = vmatprep.mubr.bf16.mxu0 %v1396_v18  ;;  %6310 = vmatpush1.bf16.msra.mxu0 %v8147_v36  ;;  %v8210_v18 = vld [vmem:[%s11398_s4 + $0x1a0] ss:$16 sps:$4 sm:$0xff]  }
 0x262   : > { %6311 = vmatprep.subr.bf16.mxu0 %v8155_v39 }
 0x263   : > { %5914 = vmatpush1.bf16.msra.mxu1 %v8180_v62 }
 0x264   : > { %5915 = vmatprep.subr.bf16.mxu1 %v8188_v60 }
 0x265   : > { %6312 = vmatpush1.bf16.msra.mxu0 %v8153_v41 }
 0x266   : > { %6313 = vmatprep.subr.bf16.mxu0 %v8161_v44 }
 0x267   : > { %5916 = vmatpush1.bf16.msra.mxu1 %v8186_v1 }
 0x268   : > { %2151 = vmatmul.mubr.bf16.gmra.mrb[36].mxu0 %v1395_v21  ;;  %5917 = vmatprep.subr.bf16.mxu1 %v8194_v4  ;;  %v8218_v21 = vld [vmem:[%s11398_s4 + $0x1c4] ss:$16 sps:$4 sm:$0xff]  }
 0x269   : > { %6314 = vmatpush1.bf16.msra.mxu0 %v8159_v46 }
 0x26a   : > { %6315 = vmatprep.subr.bf16.mxu0 %v8167_v47 }
 0x26b   : > { %5918 = vmatpush1.bf16.msra.mxu1 %v8192_v6 }
 0x26c   : > { %5919 = vmatprep.subr.bf16.mxu1 %v8200_v8 }
 0x26d   : > { %6316 = vmatpush1.bf16.msra.mxu0 %v8165_v49 }
 0x26e   : > { %6317 = vmatprep.subr.bf16.mxu0 %v8173_v54 }
 0x26f   : > { %5920 = vmatpush1.bf16.msra.mxu1 %v8198_v10 }
 0x270   : > { %5921 = vmatprep.subr.bf16.mxu1 %v8206_v12 }
 0x271   : > { %6318 = vmatpush1.bf16.msra.mxu0 %v8171_v53 }
 0x272   : > { %6319 = vmatprep.subr.bf16.mxu0 %v8179_v55 }
 0x273   : > { %5922 = vmatpush1.bf16.msra.mxu1 %v8204_v14 }
 0x274   : > { %5923 = vmatprep.subr.bf16.mxu1 %v8212_v17 }
 0x275   : > { %6320 = vmatpush1.bf16.msra.mxu0 %v8177_v57  ;;  %v2324_v57 = vld [vmem:[#allocation2 + $0x8] sm:$0x7] }
 0x276   : > { %6321 = vmatprep.subr.bf16.mxu0 %v8185_v61  ;;  %v2362_v61 = vld [vmem:[#allocation2 + $0x20] sm:$0x7] }
 0x277   : > { %5924 = vmatpush1.bf16.msra.mxu1 %v8210_v18  ;;  %v2413_v18 = vld [vmem:[#allocation2 + $0x38] sm:$0x7] }
 0x278   : > { %5925 = vmatprep.subr.bf16.mxu1 %v8218_v21 }
 0x279   : > { %6322 = vmatpush1.bf16.msra.mxu0 %v8183_v63 }
 0x27a   : > { %6323 = vmatprep.subr.bf16.mxu0 %v8191_v0 }
 0x27b   : > { %5926 = vmatpush1.bf16.msra.mxu1 %v8216_v23 }
 0x27c   : > { %5927 = vmatprep.subr.bf16.mxu1 %v8224_v25  ;;  %v2350_v25 = vld [vmem:[#allocation2 + $0x14] sm:$0x7] }
 0x27d   : > { %6324 = vmatpush1.bf16.msra.mxu0 %v8189_v3 }
 0x27e   : > { %6325 = vmatprep.subr.bf16.mxu0 %v8197_v5 }
 0x27f   : > { %5928 = vmatpush1.bf16.msra.mxu1 %v8222_v27 }
 0x280   : > { %5948 = vmatprep.subr.bf16.mxu1 %v8233_v29 }
 0x281   : > { %6326 = vmatpush1.bf16.msra.mxu0 %v8195_v7 }
 0x282   : > { %6327 = vmatprep.subr.bf16.mxu0 %v8203_v9 }
 0x285   : > { %6328 = vmatpush1.bf16.msra.mxu0 %v8201_v11 }
 0x286   : > { %6329 = vmatprep.subr.bf16.mxu0 %v8209_v13 }
 0x289   : > { %6330 = vmatpush1.bf16.msra.mxu0 %v8207_v16 }
 0x28a   : > { %6331 = vmatprep.subr.bf16.mxu0 %v8215_v20 }
 0x28d   : > { %6332 = vmatpush1.bf16.msra.mxu0 %v8213_v19 }
 0x28e   : > { %6333 = vmatprep.subr.bf16.mxu0 %v8221_v22 }
 0x291   : > { %6334 = vmatpush1.bf16.msra.mxu0 %v8219_v24 }
 0x292   : > { %6335 = vmatprep.subr.bf16.mxu0 %v8227_v26 }
 0x295   : > { %6336 = vmatpush1.bf16.msra.mxu0 %v8225_v28 }
 0x296   : > { %6356 = vmatprep.subr.bf16.mxu0 %v8236_v15 }
 0x2eb   : > { %v7660_v30 = vpop.f32.mrb[44].mxu1 }
 0x2ec   : > { %v7661_v59 = vpop.f32.mrb[45].mxu1 }
 0x2ed   : > { %v7662_v31 = vadd.f32 %v7661_v59, %v7660_v30  ;;  %v7663_v32 = vpop.f32.mrb[46].mxu1  ;;  %v2378_v30 = vld [vmem:[#allocation2 + $0x2c] sm:$0x7] }
 0x2ee   : > { %v7664_v33 = vpop.f32.mrb[47].mxu1 }
 0x2ef   : > { %v7665_v34 = vadd.f32 %v7664_v33, %v7663_v32 }
 0x2f3   : > { %v7666_v35 = vpop.f32.mrb[48].mxu1 }
 0x2f4   : > { %v7667_v36 = vpop.f32.mrb[49].mxu1 }
 0x2f5   : > { %v7668_v38 = vadd.f32 %v7667_v36, %v7666_v35  ;;  %v7669_v39 = vpop.f32.mrb[50].mxu1 }
 0x2f6   : > { %v7670_v40 = vpop.f32.mrb[51].mxu1 }
 0x2f7   : > { %v9803_v41 = vadd.f32 %v7670_v40, %v7669_v39 }
 0x2fb   : > { %v7672_v42 = vpop.f32.mrb[52].mxu1 }
 0x2fc   : > { %v7673_v44 = vpop.f32.mrb[53].mxu1 }
 0x2fd   : > { %v9805_v45 = vadd.f32 %v7673_v44, %v7672_v42  ;;  %v7675_v46 = vpop.f32.mrb[54].mxu1 }
 0x2fe   : > { %v7676_v37 = vpop.f32.mrb[55].mxu1 }
 0x314   : > { %v7694_v47 = vpop.f32.mrb[56].mxu1 }
 0x315   : > { %v7695_v48 = vpop.f32.mrb[57].mxu1 }
 0x316   : > { %v7696_v49 = vadd.f32 %v7695_v48, %v7694_v47  ;;  %v7697_v51 = vpop.f32.mrb[58].mxu1 }
 0x317   : > { %v7698_v52 = vpop.f32.mrb[59].mxu1 }
 0x318   : > { %v2250_v53 = vadd.f32 %v7696_v49, %v7662_v31  ;;  %v7699_v54 = vadd.f32 %v7698_v52, %v7697_v51  ;;  %v2586_v51 = vld [vmem:[#allocation2 + $0x44] sm:$0xe] }
 0x31a   : > { %vm2273_vm14 = vcmp.gt.f32.partialorder %v2250_v53, 0.0  ;;  %v2253_v43 = vadd.f32 %v7699_v54, %v7665_v34 }
 0x31b   : > { %v2288_v55 = vsel %vm2273_vm14, 1.0, %v8898_v50 }
 0x31c   : > { %v7621_v58 = vpack.c.bf16 %v2288_v55, %v2288_v55  ;;  %vm2276_vm1 = vcmp.gt.f32.partialorder %v2253_v43, 0.0  ;;  %v7700_v62 = vpop.f32.mrb[60].mxu1 }
 0x31d   : > { %v2291_v63 = vsel %vm2276_vm1, 1.0, %v8898_v50  ;;  %v7701_v60 = vpop.f32.mrb[61].mxu1  ;;  %vm9855_vm1 = vmand %vm2576_vm6, %vm2577_vm8  ;;  %vm2804_vm6 = vcmask 1044484   ;;  %vm2318_vm8 = vsmask.f32 6400 }
 0x31e   : > { %v2325_v0 = vsel %vm9810_vm15, %v7621_v58, %v2324_v57  ;;  %v2337_v1 = vshrl.u32 %v7621_v58, 16  ;;  %v2340_v3 = vshll.u32 %v7621_v58, 16  ;;  %v7063_v4 = vrot.slane %v7621_v58, 9  ;;  %v7703_v5 = vpop.f32.mrb[62].mxu1  ;;  %vm9951_vm2 = vmand %vm2317_vm4, %vm2318_vm8 }
 0x31f   : > { %2326 = vst [vmem:[#allocation2 + $0x8] sm:$0x7] %v2325_v0  ;;  %v7069_v6 = vrot.slane %v7621_v58, 10  ;;  %v9817_v7 = vpack.c.bf16 %v2291_v63, %v2291_v63  ;;  %v7702_v8 = vadd.f32 %v7701_v60, %v7700_v62  ;;  %v7704_v9 = vpop.f32.mrb[63].mxu1 }
 0x320   : > { %v2339_v10 = vrot.slane %v2337_v1, 4  ;;  %v2342_v11 = vrot.slane %v2340_v3, 5  ;;  %v2363_v12 = vsel %vm9810_vm15, %v7063_v4, %v2362_v61  ;;  %v2369_v13 = vrot.slane %v2337_v1, 5 }
 0x321   : > { %2364 = vst [vmem:[#allocation2 + $0x20] sm:$0x7] %v2363_v12  ;;  %v2370_v16 = vrot.slane %v2340_v3, 6  ;;  %v2406_v17 = vrot.slane %v9817_v7, 6  ;;  %v2459_v19 = vshrl.u32 %v9817_v7, 16  ;;  %v2462_v20 = vshll.u32 %v9817_v7, 16 }
 0x322   : > { %v2343_v21 = vor.u32 %v2342_v11, %v2339_v10  ;;  %v2481_v22 = vrot.slane %v9817_v7, 7  ;;  %v2258_v23 = vadd.f32 %v7702_v8, %v7668_v38  ;;  %v7705_v24 = vadd.f32 %v7704_v9, %v7703_v5  ;;  %v2707_v9 = vld [vmem:[#allocation2 + $0x74] sm:$0xe]  ;;  %v2612_v11 = vld [vmem:[#allocation2 + $0x50] sm:$0xe] }
 0x323   : > { %v2371_v26 = vor.u32 %v2370_v16, %v2369_v13  ;;  %v2407_v27 = vsel %vm9823_vm9, %v7069_v6, %v2406_v17  ;;  %v2430_v28 = vrot.slane %v2406_v17, 4  ;;  %v2461_v29 = vrot.slane %v2459_v19, 6 }
 0x324   : > { %v2344_v15 = vrot.slane %v2343_v21, 4  ;;  %v2414_v59 = vsel %vm9810_vm15, %v2407_v27, %v2413_v18  ;;  %v2464_v32 = vrot.slane %v2462_v20, 7  ;;  %v2483_v33 = vrot.slane %v2481_v22, 4  ;;  %v7706_v34 = vpop.f32.mrb[64].mxu1 }
 0x325   : > { %v2372_v35 = vrot.slane %v2371_v26, 4  ;;  %2415 = vst [vmem:[#allocation2 + $0x38] sm:$0x7] %v2414_v59  ;;  %2449 = vst [vmem:[#allocation2 + $0x44] sm:$0x1] %v2430_v28  ;;  %v9841_v36 = vrot.slane %v2459_v19, 7  ;;  %v2261_v38 = vadd.f32 %v7705_v24, %v9803_v41 }
 0x326   : > { %vm2279_vm14 = vcmp.gt.f32.partialorder %v2258_v23, 0.0  ;;  %v7707_v39 = vpop.f32.mrb[65].mxu1  ;;  %v2351_v40 = vsel %vm9810_vm15, %v2344_v15, %v2350_v25  ;;  %v2445_v42 = vld [vmem:[#allocation2 + $0x8] sm:$0xc]  ;;  %v9846_v44 = vor.u32 %v2464_v32, %v2461_v29  ;;  %2495 = vst [vmem:[#allocation2 + $0x5c] sm:$0x1] %v2483_v33 }
 0x327   : > { %v2294_v46 = vsel %vm2279_vm14, 1.0, %v8898_v50  ;;  %v7708_v37 = vadd.f32 %v7707_v39, %v7706_v34  ;;  %v7709_v47 = vpop.f32.mrb[66].mxu1  ;;  %2352 = vst [vmem:[#allocation2 + $0x14] sm:$0x7] %v2351_v40  ;;  %v2379_v48 = vsel %vm9810_vm15, %v2372_v35, %v2378_v30  ;;  %v2446_v49 = vsel %vm9837_vm13, %v2406_v17, %v2445_v42  ;;  %vm9891_vm14 = vmor %vm2512_vm10, %vm2513_vm11  ;;  %v8231_v33 = vld [vmem:[%s11398_s4 + $0x200] ss:$16 sps:$4 sm:$0xff]  }
 0x328   : > { %v7710_v52 = vpop.f32.mrb[67].mxu1  ;;  %2380 = vst [vmem:[#allocation2 + $0x2c] sm:$0x7] %v2379_v48  ;;  %2447 = vst [vmem:[#allocation2 + $0x8] sm:$0xc] %v2446_v49  ;;  %v2467_v53 = vrot.slane %v9846_v44, 4  ;;  %v9860_v43 = vpack.c.bf16 %v2294_v46, %v2294_v46  ;;  %v2528_v61 = vor.u32 %v9841_v36, %v2462_v20 }
 0x329   : > { %v2491_v54 = vld [vmem:[#allocation2 + $0x20] sm:$0xc]  ;;  %vm2282_vm5 = vcmp.gt.f32.partialorder %v2261_v38, 0.0  ;;  %v2266_v55 = vadd.f32 %v7708_v37, %v9805_v45  ;;  %v2534_v60 = vrot.slane %v9841_v36, 4  ;;  %v11414_v23 = vmov 0 }
 0x32a   : > { %v2492_v57 = vsel %vm9837_vm13, %v2481_v22, %v2491_v54  ;;  %v2297_v58 = vsel %vm2282_vm5, 1.0, %v8898_v50  ;;  %2479 = vst [vmem:[#allocation2 + $0x50] sm:$0x1] %v2467_v53  ;;  %v2536_v62 = vshll.u32 %v9860_v43, 16  ;;  %2562 = vst [vmem:[#allocation2 + $0x74] sm:$0x1] %v9860_v43  ;;  %v2587_v45 = vsel %vm9855_vm1, %v9860_v43, %v2586_v51 }
 0x32b   : > { %2493 = vst [vmem:[#allocation2 + $0x20] sm:$0xc] %v2492_v57  ;;  %v2599_v63 = vshrl.u32 %v9860_v43, 16  ;;  %2588 = vst [vmem:[#allocation2 + $0x44] sm:$0xe] %v2587_v45  ;;  %v7085_v0 = vrot.slane %v9860_v43, 10  ;;  %v9875_v1 = vpack.c.bf16 %v2297_v58, %v2297_v58 }
 0x32c   : > { %vm2285_vm5 = vcmp.gt.f32.partialorder %v2266_v55, 0.0  ;;  %v2558_v3 = vld [vmem:[#allocation2 + $0x38] sm:$0xc]  ;;  %v2604_v5 = vrot.slane %v2536_v62, 5  ;;  %v2674_v8 = vrot.slane %v2536_v62, 6  ;;  %v2132_v22 = vpop.f32.mrb[28].mxu0  ;;  %v2538_v40 = vsel %vm9891_vm14, %v2534_v60, %v2536_v62 }
 0x32d   : > { %v2601_v4 = vrot.slane %v2599_v63, 4  ;;  %v2671_v6 = vrot.slane %v2599_v63, 5  ;;  %v2559_v10 = vsel %vm9837_vm13, %v9817_v7, %v2558_v3  ;;  %v2638_v12 = vrot.slane %v9875_v1, 5  ;;  %v2134_v29 = vpop.f32.mrb[29].mxu0  ;;  %v2691_v36 = vld [vmem:[#allocation2 + $0x68] sm:$0xe] }
 0x32e   : > { %v9882_v13 = vshrl.u32 %v9875_v1, 16  ;;  %v9885_v16 = vshll.u32 %v9875_v1, 16  ;;  %v2475_v17 = vld [vmem:[#allocation2 + $0x14] sm:$0xc]  ;;  %2560 = vst [vmem:[#allocation2 + $0x38] sm:$0xc] %v2559_v10 }
 0x32f   : > { %v2605_v18 = vor.u32 %v2604_v5, %v2601_v4  ;;  %v2675_v19 = vor.u32 %v2674_v8, %v2671_v6  ;;  %v2700_v20 = vrot.slane %v9875_v1, 6  ;;  %v2807_v21 = vrot.slane %v9875_v1, 7  ;;  %v2546_v25 = vld [vmem:[#allocation2 + $0x2c] sm:$0xc]  ;;  %v9918_v34 = vpop.f32.mrb[30].mxu0 }
 0x330   : > { %v11415_v23 = vsel %vm9897_vm0, 4294967295, %v11414_v23  ;;  %v2476_v24 = vsel %vm9837_vm13, %v9846_v44, %v2475_v17  ;;  %v2680_v26 = vrot.slane %v9882_v13, 5  ;;  %v2683_v27 = vrot.slane %v9885_v16, 6  ;;  %v2138_v42 = vpop.f32.mrb[31].mxu0  ;;  %2550 = vst [vmem:[#allocation2 + $0x68] sm:$0x1] %v2538_v40 }
 0x331   : > { %v2300_v28 = vsel %vm2285_vm5, 1.0, %v8898_v50  ;;  %2477 = vst [vmem:[#allocation2 + $0x14] sm:$0xc] %v2476_v24  ;;  %v2547_v15 = vsel %vm9837_vm13, %v2528_v61, %v2546_v25  ;;  %v2606_v30 = vrot.slane %v2605_v18, 4  ;;  %v2676_v59 = vrot.slane %v2675_v19, 4  ;;  %vm9941_vm5 = vmor %vm11421_vm3, %vm2804_vm6 }
 0x332   : > { %v2701_v32 = vsel %vm9823_vm9, %v7085_v0, %v2700_v20  ;;  %2548 = vst [vmem:[#allocation2 + $0x2c] sm:$0xc] %v2547_v15  ;;  %v2684_v35 = vor.u32 %v2683_v27, %v2680_v26  ;;  %v2724_v39 = vrot.slane %v2700_v20, 4  ;;  %v2739_v46 = vld [vmem:[#allocation2 + $0x44] sm:$0x8]  ;;  %v7643_v37 = vpack.c.bf16 %v2300_v28, %v2300_v28 }
 0x333   : > { %v2708_v38 = vsel %vm9855_vm1, %v2701_v32, %v2707_v9  ;;  %v2613_v44 = vsel %vm9855_vm1, %v2606_v30, %v2612_v11  ;;  %v2770_v47 = vrot.slane %v9885_v16, 7  ;;  %v2783_v48 = vrot.slane %v9882_v13, 6  ;;  %v2645_v45 = vld [vmem:[#allocation2 + $0x5c] sm:$0xe]  ;;  %v2142_v8 = vpop.f32.mrb[32].mxu0 }
 0x334   : > { %2709 = vst [vmem:[#allocation2 + $0x74] sm:$0xe] %v2708_v38  ;;  %vm11418_vm10 = vcmask 1042432   ;;  %2614 = vst [vmem:[#allocation2 + $0x50] sm:$0xe] %v2613_v44  ;;  %v7083_v51 = vrot.slane %v9860_v43, 9  ;;  %v2685_v52 = vsel %vm9897_vm0, %v2676_v59, %v2684_v35  ;;  %v2740_v53 = vsel %vm9914_vm7, %v2700_v20, %v2739_v46 }
 0x335   : > { %vm9930_vm11 = vmor %vm11418_vm10, %vm2317_vm4  ;;  %2743 = vst [vmem:[#allocation2 + $0x80] sm:$0x3] %v2724_v39  ;;  %v2811_v55 = vrot.slane %v2807_v21, 4  ;;  %v2692_v43 = vsel %vm9855_vm1, %v2685_v52, %v2691_v36  ;;  %v2784_v57 = vor.u32 %v2783_v48, %v2770_v47  ;;  %v2787_v58 = vshll.u32 %v7643_v37, 16  ;;  %v2144_v18 = vpop.f32.mrb[33].mxu0 }
 0x336   : > { %2741 = vst [vmem:[#allocation2 + $0x44] sm:$0x8] %v2740_v53  ;;  %v2812_v61 = vrot.slane %v7643_v37, 7  ;;  %2863 = vst [vmem:[#allocation2 + $0xb0] sm:$0x3] %v7643_v37  ;;  %v11428_v63 = vmov 0  ;;  %v2639_v0 = vsel %vm9930_vm11, %v7083_v51, %v2638_v12 }
 0x337   : > { %2693 = vst [vmem:[#allocation2 + $0x68] sm:$0xe] %v2692_v43  ;;  %vm11426_vm6 = vsmask.f32 5392  ;;  %vm11427_vm3 = vsmask.f32 1280  ;;  %vm9973_vm4 = vmor %vm9951_vm2, %vm9810_vm15  ;;  %v2646_v17 = vsel %vm9855_vm1, %v2639_v0, %v2645_v45 }
 0x338   : > { %vm9957_vm10 = vmor %vm11427_vm3, %vm11426_vm6  ;;  %v2835_v60 = vshrl.u32 %v7643_v37, 16  ;;  %vm2271_vm12 = vcmp.gt.f32.partialorder %v2132_v22, 0.0  ;;  %vm2272_vm0 = vcmp.gt.f32.partialorder %v2134_v29, 0.0  ;;  %v2785_v3 = vrot.slane %v2784_v57, 4  ;;  %v2321_v12 = vld [vmem:[#allocation2] sm:$0x77] }
 0x339   : > { %v11429_v63 = vsel %vm9957_vm10, 4294967295, %v11428_v63  ;;  %v2789_v4 = vrot.slane %v2787_v58, 7  ;;  %v2813_v5 = vsel %vm9941_vm5, %v2811_v55, %v2812_v61  ;;  %v2286_v6 = vsel %vm2271_vm12, 1.0, %v8898_v50  ;;  %2647 = vst [vmem:[#allocation2 + $0x5c] sm:$0xe] %v2646_v17  ;;  %v9983_v56 = vpop.f32.mrb[34].mxu0 }
 0x33a   : > { %2825 = vst [vmem:[#allocation2 + $0x98] sm:$0x3] %v2813_v5  ;;  %v2837_v9 = vrot.slane %v2835_v60, 7  ;;  %v2287_v10 = vsel %vm2272_vm0, 1.0, %v8898_v50  ;;  %vm2274_vm8 = vcmp.gt.f32.partialorder %v9918_v34, 0.0  ;;  %v7093_v20 = vrot.slane %v9882_v13, 11 }
 0x33b   : > { %v2790_v19 = vsel %vm9957_vm10, %v2785_v3, %v2789_v4  ;;  %v7620_v22 = vpack.c.bf16 %v2287_v10, %v2286_v6  ;;  %vm2275_vm0 = vcmp.gt.f32.partialorder %v2138_v42, 0.0  ;;  %v2859_v24 = vld [vmem:[#allocation2 + $0x74] sm:$0x8]  ;;  %v2289_v26 = vsel %vm2274_vm8, 1.0, %v8898_v50  ;;  %v9987_v28 = vpop.f32.mrb[35].mxu0 }
 0x33c   : > { %2802 = vst [vmem:[#allocation2 + $0x8c] sm:$0x3] %v2790_v19  ;;  %v2838_v25 = vor.u32 %v2837_v9, %v2787_v58  ;;  %v2290_v27 = vsel %vm2275_vm0, 1.0, %v8898_v50  ;;  %vm2277_vm15 = vcmp.gt.f32.partialorder %v2142_v8, 0.0  ;;  %v2860_v29 = vsel %vm9914_vm7, %v9875_v1, %v2859_v24  ;;  %v2798_v13 = vld [vmem:[#allocation2 + $0x50] sm:$0x8] }
 0x33d   : > { %v2322_v15 = vsel %vm9973_vm4, %v7620_v22, %v2321_v12  ;;  %v2328_v30 = vshrl.u32 %v7620_v22, 16  ;;  %v2331_v59 = vshll.u32 %v7620_v22, 16  ;;  %v2359_v32 = vld [vmem:[#allocation2 + $0x18] sm:$0x77]  ;;  %2861 = vst [vmem:[#allocation2 + $0x74] sm:$0x8] %v2860_v29  ;;  %v2799_v34 = vsel %vm9914_vm7, %v2770_v47, %v2798_v13 }
 0x33e   : > { %v2839_v35 = vsel %vm9891_vm14, %v7093_v20, %v2838_v25  ;;  %2323 = vst [vmem:[#allocation2] sm:$0x77] %v2322_v15  ;;  %v7062_v36 = vrot.slane %v7620_v22, 9  ;;  %vm2278_vm12 = vcmp.gt.f32.partialorder %v2144_v18, 0.0  ;;  %v2847_v38 = vld [vmem:[#allocation2 + $0x68] sm:$0x8]  ;;  %v10003_v51 = vpack.c.bf16 %v2290_v27, %v2289_v26 }
 0x33f   : > { %2800 = vst [vmem:[#allocation2 + $0x50] sm:$0x8] %v2799_v34  ;;  %2851 = vst [vmem:[#allocation2 + $0xa4] sm:$0x3] %v2839_v35  ;;  %v2330_v39 = vrot.slane %v2328_v30, 4  ;;  %v2333_v40 = vrot.slane %v2331_v59, 5  ;;  %v2848_v46 = vsel %vm9914_vm7, %v9885_v16, %v2847_v38 }
 0x340   : > { %v2365_v42 = vrot.slane %v2328_v30, 5  ;;  %v2366_v44 = vrot.slane %v2331_v59, 6  ;;  %v2347_v37 = vld [vmem:[#allocation2 + $0xc] sm:$0x77]  ;;  %v2360_v47 = vsel %vm9973_vm4, %v7062_v36, %v2359_v32  ;;  %v2375_v48 = vld [vmem:[#allocation2 + $0x24] sm:$0x77] }
 0x341   : > { %vm11432_vm2 = vsmask.f32 7962  ;;  %vm11433_vm6 = vcmask 1047558   ;;  %v2292_v53 = vsel %vm2277_vm15, 1.0, %v8898_v50  ;;  %2849 = vst [vmem:[#allocation2 + $0x68] sm:$0x8] %v2848_v46  ;;  %v2334_v55 = vor.u32 %v2333_v40, %v2330_v39 }
 0x342   : > { %vm10007_vm3 = vmand %vm11433_vm6, %vm11432_vm2  ;;  %2361 = vst [vmem:[#allocation2 + $0x18] sm:$0x77] %v2360_v47  ;;  %v2367_v16 = vor.u32 %v2366_v44, %v2365_v42  ;;  %v7068_v43 = vrot.slane %v7620_v22, 10  ;;  %v2410_v57 = vld [vmem:[#allocation2 + $0x30] sm:$0x77]  ;;  %v2293_v58 = vsel %vm2278_vm12, 1.0, %v8898_v50 }
 0x343   : > { %vm11436_vm8 = vsmask.f32 7424  ;;  %vm11437_vm0 = vcmask 1047557   ;;  %vm2732_vm2 = vcmask 1047559   ;;  %v2152_v62 = vpop.f32.mrb[36].mxu0  ;;  %v2402_v45 = vrot.slane %v10003_v51, 6  ;;  %vm10029_vm15 = vmor %vm10007_vm3, %vm9837_vm13 }
 0x344   : > { %vm10017_vm10 = vmand %vm11437_vm0, %vm11436_vm8  ;;  %v2451_v60 = vshrl.u32 %v10003_v51, 16  ;;  %v2454_v0 = vshll.u32 %v10003_v51, 16  ;;  %v2480_v3 = vrot.slane %v10003_v51, 7  ;;  %v2154_v4 = vpop.f32.mrb[37].mxu0  ;;  %v2335_v5 = vrot.slane %v2334_v55, 4 }
 0x345   : > { %v2368_v6 = vrot.slane %v2367_v16, 4  ;;  %v10033_v9 = vpack.c.bf16 %v2293_v58, %v2292_v53  ;;  %vm2280_vm12 = vcmp.gt.f32.partialorder %v9983_v56, 0.0  ;;  %v2156_v10 = vpop.f32.mrb[38].mxu0  ;;  %v2403_v12 = vsel %vm9823_vm9, %v7068_v43, %v2402_v45  ;;  %vm10042_vm6 = vmor %vm10017_vm10, %vm9855_vm1  ;;  %v2583_v20 = vld [vmem:[#allocation2 + $0x3c] sm:$0xee] }
 0x346   : > { %v2429_v17 = vrot.slane %v2402_v45, 4  ;;  %v2453_v18 = vrot.slane %v2451_v60, 6  ;;  %v2456_v19 = vrot.slane %v2454_v0, 7  ;;  %v2157_v22 = vpop.f32.mrb[39].mxu0  ;;  %v2348_v24 = vsel %vm9973_vm4, %v2335_v5, %v2347_v37  ;;  %v2442_v27 = vld [vmem:[#allocation2] sm:$0xcc] }
 0x347   : > { %v2376_v25 = vsel %vm9973_vm4, %v2368_v6, %v2375_v48  ;;  %v2411_v26 = vsel %vm9973_vm4, %v2403_v12, %v2410_v57  ;;  %v2482_v29 = vrot.slane %v2480_v3, 4  ;;  %2561 = vst [vmem:[#allocation2 + $0x6c] sm:$0x11] %v10033_v9  ;;  %2349 = vst [vmem:[#allocation2 + $0xc] sm:$0x77] %v2348_v24  ;;  %v2443_v41 = vsel %vm10029_vm15, %v2402_v45, %v2442_v27 }
 0x348   : > { %2377 = vst [vmem:[#allocation2 + $0x24] sm:$0x77] %v2376_v25  ;;  %2412 = vst [vmem:[#allocation2 + $0x30] sm:$0x77] %v2411_v26  ;;  %v2457_v13 = vor.u32 %v2456_v19, %v2453_v18  ;;  %v2518_v15 = vrot.slane %v2451_v60, 7  ;;  %v2531_v30 = vshll.u32 %v10033_v9, 16  ;;  %v2584_v11 = vsel %vm10042_vm6, %v10033_v9, %v2583_v20 }
 0x349   : > { %2448 = vst [vmem:[#allocation2 + $0x3c] sm:$0x11] %v2429_v17  ;;  %2444 = vst [vmem:[#allocation2] sm:$0xcc] %v2443_v41  ;;  %v2590_v59 = vshrl.u32 %v10033_v9, 16  ;;  %v2295_v32 = vsel %vm2280_vm12, 1.0, %v8898_v50 }
 0x34a   : > { %2494 = vst [vmem:[#allocation2 + $0x54] sm:$0x11] %v2482_v29  ;;  %vm2733_vm13 = vsmask.f32 7966  ;;  %v2466_v34 = vrot.slane %v2457_v13, 4  ;;  %v2529_v36 = vrot.slane %v2518_v15, 4  ;;  %v2521_v53 = vor.u32 %v2518_v15, %v2454_v0 }
 0x34b   : > { %v2488_v35 = vld [vmem:[#allocation2 + $0x18] sm:$0xcc]  ;;  %2585 = vst [vmem:[#allocation2 + $0x3c] sm:$0xee] %v2584_v11  ;;  %v2595_v38 = vrot.slane %v2531_v30, 5  ;;  %v7082_v39 = vrot.slane %v10033_v9, 9  ;;  %vm10076_vm3 = vmand %vm2732_vm2, %vm2733_vm13 }
 0x34c   : > { %v2489_v40 = vsel %vm10029_vm15, %v2480_v3, %v2488_v35  ;;  %v2592_v42 = vrot.slane %v2590_v59, 4  ;;  %v2653_v44 = vrot.slane %v2590_v59, 5  ;;  %v2656_v46 = vrot.slane %v2531_v30, 6  ;;  %2478 = vst [vmem:[#allocation2 + $0x48] sm:$0x11] %v2466_v34  ;;  %vm10097_vm8 = vmor %vm10076_vm3, %vm9914_vm7 }
 0x34d   : > { %2490 = vst [vmem:[#allocation2 + $0x18] sm:$0xcc] %v2489_v40  ;;  %v2533_v56 = vsel %vm9891_vm14, %v2529_v36, %v2531_v30  ;;  %vm2281_vm1 = vcmp.gt.f32.partialorder %v9987_v28, 0.0  ;;  %vm2283_vm10 = vcmp.gt.f32.partialorder %v2152_v62, 0.0  ;;  %vm2284_vm4 = vcmp.gt.f32.partialorder %v2154_v4, 0.0 }
 0x34e   : > { %2549 = vst [vmem:[#allocation2 + $0x60] sm:$0x11] %v2533_v56  ;;  %v2596_v37 = vor.u32 %v2595_v38, %v2592_v42  ;;  %v2657_v47 = vor.u32 %v2656_v46, %v2653_v44  ;;  %v2296_v48 = vsel %vm2281_vm1, 1.0, %v8898_v50  ;;  %v2298_v52 = vsel %vm2283_vm10, 1.0, %v8898_v50  ;;  %v2609_v55 = vld [vmem:[#allocation2 + $0x48] sm:$0xee] }
 0x34f   : > { %v7084_v16 = vrot.slane %v10033_v9, 10  ;;  %v10072_v43 = vpack.c.bf16 %v2296_v48, %v2295_v32  ;;  %v2299_v28 = vsel %vm2284_vm4, 1.0, %v8898_v50  ;;  %v2472_v58 = vld [vmem:[#allocation2 + $0xc] sm:$0xcc]  ;;  %v2543_v61 = vld [vmem:[#allocation2 + $0x24] sm:$0xcc] }
 0x350   : > { %v2555_v62 = vld [vmem:[#allocation2 + $0x30] sm:$0xcc]  ;;  %v7642_v45 = vpack.c.bf16 %v2299_v28, %v2298_v52  ;;  %v2473_v60 = vsel %vm10029_vm15, %v2457_v13, %v2472_v58  ;;  %v2544_v0 = vsel %vm10029_vm15, %v2521_v53, %v2543_v61  ;;  %v2597_v4 = vrot.slane %v2596_v37, 4  ;;  %v2688_v29 = vld [vmem:[#allocation2 + $0x60] sm:$0xee] }
 0x351   : > { %v2556_v3 = vsel %vm10029_vm15, %v10003_v51, %v2555_v62  ;;  %v2642_v5 = vld [vmem:[#allocation2 + $0x54] sm:$0xee]  ;;  %2474 = vst [vmem:[#allocation2 + $0xc] sm:$0xcc] %v2473_v60  ;;  %2545 = vst [vmem:[#allocation2 + $0x24] sm:$0xcc] %v2544_v0 }
 0x352   : > { %2557 = vst [vmem:[#allocation2 + $0x30] sm:$0xcc] %v2556_v3  ;;  %v2658_v50 = vrot.slane %v2657_v47, 4  ;;  %v2634_v6 = vrot.slane %v10072_v43, 5  ;;  %v2660_v9 = vshrl.u32 %v10072_v43, 16  ;;  %v10091_v10 = vshll.u32 %v10072_v43, 16 }
 0x353   : > { %v2736_v51 = vld [vmem:[#allocation2 + $0x3c] sm:$0x88]  ;;  %2862 = vst [vmem:[#allocation2 + $0xa8] sm:$0x33] %v7642_v45  ;;  %v2610_v12 = vsel %vm10042_vm6, %v2597_v4, %v2609_v55  ;;  %v2696_v17 = vrot.slane %v10072_v43, 6  ;;  %v2806_v19 = vrot.slane %v10072_v43, 7 }
 0x354   : > { %v2704_v18 = vld [vmem:[#allocation2 + $0x6c] sm:$0xee]  ;;  %v2777_v20 = vshll.u32 %v7642_v45, 16  ;;  %2611 = vst [vmem:[#allocation2 + $0x48] sm:$0xee] %v2610_v12  ;;  %v2635_v22 = vsel %vm9930_vm11, %v7082_v39, %v2634_v6  ;;  %v2662_v24 = vrot.slane %v2660_v9, 5  ;;  %vm11448_vm11 = vnez %v11415_v23 }
 0x355   : > { %v2665_v25 = vrot.slane %v10091_v10, 6  ;;  %v2766_v26 = vrot.slane %v10091_v10, 7  ;;  %v2643_v27 = vsel %vm10042_vm6, %v2635_v22, %v2642_v5  ;;  %v2697_v41 = vsel %vm9823_vm9, %v7084_v16, %v2696_v17  ;;  %v2821_v59 = vld [vmem:[#allocation2 + $0x5c] sm:$0x8]  ;;  %v8234_v54 = vld [vmem:[%s11398_s4 + $0x208] ss:$16 sps:$4 sm:$0xff]  }
 0x356   : > { %v2723_v13 = vrot.slane %v2696_v17, 4  ;;  %v2737_v15 = vsel %vm10097_vm8, %v2696_v17, %v2736_v51  ;;  %2644 = vst [vmem:[#allocation2 + $0x54] sm:$0xee] %v2643_v27  ;;  %v2705_v49 = vsel %vm10042_vm6, %v2697_v41, %v2704_v18  ;;  %v2773_v11 = vrot.slane %v2660_v9, 6  ;;  %v8240_v7 = vld [vmem:[%s11398_s4 + $0x224] ss:$16 sps:$4 sm:$0xff]  }
 0x357   : > { %v2666_v30 = vor.u32 %v2665_v25, %v2662_v24  ;;  %2738 = vst [vmem:[#allocation2 + $0x3c] sm:$0x88] %v2737_v15  ;;  %2706 = vst [vmem:[#allocation2 + $0x6c] sm:$0xee] %v2705_v49  ;;  %v2808_v32 = vrot.slane %v2806_v19, 4  ;;  %v2809_v34 = vrot.slane %v7642_v45, 7  ;;  %v2822_v39 = vsel %vm9914_vm7, %v2807_v21, %v2821_v59 }
 0x358   : > { %2742 = vst [vmem:[#allocation2 + $0x78] sm:$0x33] %v2723_v13  ;;  %v2828_v35 = vshrl.u32 %v7642_v45, 16  ;;  %v2774_v36 = vor.u32 %v2773_v11, %v2766_v26  ;;  %v2779_v38 = vrot.slane %v2777_v20, 7  ;;  %2823 = vst [vmem:[#allocation2 + $0x5c] sm:$0x8] %v2822_v39  ;;  %vm11449_vm9 = vnez %v11429_v63 }
 0x359   : > { %v2667_v14 = vsel %vm11448_vm11, %v2658_v50, %v2666_v30  ;;  %v2810_v42 = vsel %vm9941_vm5, %v2808_v32, %v2809_v34  ;;  %v7092_v56 = vrot.slane %v2660_v9, 11  ;;  %v8243_v57 = vld [vmem:[%s11398_s4 + $0x22c] ss:$16 sps:$4 sm:$0xff]   ;;  %v8241_v62 = vld [vmem:[%s11398_s4 + $0x228] ss:$16 sps:$4 sm:$0xff]  }
 0x35a   : > { %v2689_v40 = vsel %vm10042_vm6, %v2667_v14, %v2688_v29  ;;  %v2830_v44 = vrot.slane %v2828_v35, 7  ;;  %v2775_v46 = vrot.slane %v2774_v36, 4  ;;  %2824 = vst [vmem:[#allocation2 + $0x90] sm:$0x33] %v2810_v42  ;;  %v8246_v45 = vld [vmem:[%s11398_s4 + $0x244] ss:$16 sps:$4 sm:$0xff]  }
 0x35b   : > { %2690 = vst [vmem:[#allocation2 + $0x60] sm:$0xee] %v2689_v40  ;;  %v2795_v23 = vld [vmem:[#allocation2 + $0x48] sm:$0x88]  ;;  %v8244_v0 = vld [vmem:[%s11398_s4 + $0x240] ss:$16 sps:$4 sm:$0xff]  }
 0x35c   : > { %v2831_v37 = vor.u32 %v2830_v44, %v2777_v20  ;;  %v2780_v1 = vsel %vm11449_vm9, %v2775_v46, %v2779_v38  ;;  %v2796_v21 = vsel %vm10097_vm8, %v2766_v26, %v2795_v23  ;;  %v8249_v60 = vld [vmem:[%s11398_s4 + $0x24c] ss:$16 sps:$4 sm:$0xff]   ;;  %v8247_v3 = vld [vmem:[%s11398_s4 + $0x248] ss:$16 sps:$4 sm:$0xff]   ;;  %v8256_v5 = vld [vmem:[%s11398_s4 + $0x264] ss:$16 sps:$4 sm:$0xff]  }
 0x35d   : > { %v2818_v31 = vld [vmem:[#allocation2 + $0x54] sm:$0x88]  ;;  %2797 = vst [vmem:[#allocation2 + $0x48] sm:$0x88] %v2796_v21  ;;  %2801 = vst [vmem:[#allocation2 + $0x84] sm:$0x33] %v2780_v1 }
 0x35e   : > { %v2832_v47 = vsel %vm9891_vm14, %v7092_v56, %v2831_v37  ;;  %v8228_v48 = vld [vmem:[#allocation2] ss:$60 sps:$4 sm:$0xff]   ;;  %v2819_v63 = vsel %vm10097_vm8, %v2806_v19, %v2818_v31  ;;  %v2856_v52 = vld [vmem:[#allocation2 + $0x6c] sm:$0x88]  ;;  %v8262_v8 = vld [vmem:[%s11398_s4 + $0x284] ss:$16 sps:$4 sm:$0xff]  }
 0x35f   : > { %2850 = vst [vmem:[#allocation2 + $0x9c] sm:$0x33] %v2832_v47  ;;  %v8230_v53 = vld [vmem:[#allocation2 + $0x4] ss:$60 sps:$4 sm:$0xff]   ;;  %v2880_v55 = vld [vmem:[#allocation2 + $0x78] sm:$0x33]  ;;  %v2857_v16 = vsel %vm10097_vm8, %v10072_v43, %v2856_v52 }
 0x360   : > { %2820 = vst [vmem:[#allocation2 + $0x54] sm:$0x88] %v2819_v63  ;;  %2858 = vst [vmem:[#allocation2 + $0x6c] sm:$0x88] %v2857_v16  ;;  %5929 = vmatprep.mubr.bf16.mxu1 %v8230_v53  ;;  %6337 = vmatprep.mubr.bf16.mxu0 %v8230_v53  ;;  %v7110_v58 = vcombine.high %v2880_v55, %v2880_v55  ;;  %v8238_v43 = vld [vmem:[%s11398_s4 + $0x220] ss:$16 sps:$4 sm:$0xff]   ;;  %v7109_v4 = vcombine.low %v2880_v55, %v2880_v55 }
 0x361   : > { %5930 = vmatmul.mubr.bf16.vlgmr.msra.gmra.mrb[68].mxu1 %v8228_v48  ;;  %6338 = vmatmul.mubr.bf16.vlgmr.msra.gmra.mrb[40].mxu0 %v8228_v48  ;;  %v8259_v50 = vld [vmem:[%s11398_s4 + $0x26c] ss:$16 sps:$4 sm:$0xff]   ;;  %v8254_v9 = vld [vmem:[%s11398_s4 + $0x260] ss:$16 sps:$4 sm:$0xff]   ;;  %v8263_v17 = vld [vmem:[%s11398_s4 + $0x288] ss:$16 sps:$4 sm:$0xff]  }
 0x362   : > { %v2844_v28 = vld [vmem:[#allocation2 + $0x60] sm:$0x88]  ;;  %5949 = vmatpush1.bf16.msra.mxu1 %v8231_v33  ;;  %6357 = vmatpush1.bf16.msra.mxu0 %v8234_v54  ;;  %v8265_v51 = vld [vmem:[%s11398_s4 + $0x28c] ss:$16 sps:$4 sm:$0xff]   ;;  %v8269_v22 = vld [vmem:[%s11398_s4 + $0x2a8] ss:$16 sps:$4 sm:$0xff]  }
 0x363   : > { %v2845_v61 = vsel %vm10097_vm8, %v10091_v10, %v2844_v28  ;;  %5939 = vmatprep.mubr.bf16.mxu1 %v7110_v58  ;;  %6347 = vmatprep.mubr.bf16.mxu0 %v7110_v58  ;;  %v8257_v10 = vld [vmem:[%s11398_s4 + $0x268] ss:$16 sps:$4 sm:$0xff]   ;;  %v8260_v12 = vld [vmem:[%s11398_s4 + $0x280] ss:$16 sps:$4 sm:$0xff]   ;;  %v8268_v18 = vld [vmem:[%s11398_s4 + $0x2a4] ss:$16 sps:$4 sm:$0xff]  }
 0x364   : > { %2846 = vst [vmem:[#allocation2 + $0x60] sm:$0x88] %v2845_v61  ;;  %5950 = vmatprep.subr.bf16.mxu1 %v8240_v7  ;;  %6358 = vmatprep.subr.bf16.mxu0 %v8243_v57  ;;  %v8253_v6 = vld [vmem:[#allocation2 + $0xc] ss:$60 sps:$4 sm:$0xff]   ;;  %v8266_v20 = vld [vmem:[%s11398_s4 + $0x2a0] ss:$16 sps:$4 sm:$0xff]  }
 0x365   : > { %v8271_v19 = vld [vmem:[%s11398_s4 + $0x2ac] ss:$16 sps:$4 sm:$0xff]   ;;  %v8274_v24 = vld [vmem:[%s11398_s4 + $0x2c4] ss:$16 sps:$4 sm:$0xff]   ;;  %v8272_v26 = vld [vmem:[%s11398_s4 + $0x2c0] ss:$16 sps:$4 sm:$0xff]  }
 0x366   : > { %5951 = vmatpush1.bf16.msra.mxu1 %v8238_v43  ;;  %6359 = vmatpush1.bf16.msra.mxu0 %v8241_v62  ;;  %v8277_v25 = vld [vmem:[%s11398_s4 + $0x2cc] ss:$16 sps:$4 sm:$0xff]   ;;  %v8275_v27 = vld [vmem:[%s11398_s4 + $0x2c8] ss:$16 sps:$4 sm:$0xff]   ;;  %v8280_v29 = vld [vmem:[%s11398_s4 + $0x2e4] ss:$16 sps:$4 sm:$0xff]  }
 0x367   : > { %5952 = vmatprep.subr.bf16.mxu1 %v8246_v45  ;;  %6360 = vmatprep.subr.bf16.mxu0 %v8249_v60  ;;  %v8283_v41 = vld [vmem:[%s11398_s4 + $0x2ec] ss:$16 sps:$4 sm:$0xff]   ;;  %v8278_v13 = vld [vmem:[%s11398_s4 + $0x2e0] ss:$16 sps:$4 sm:$0xff]   ;;  %v8281_v15 = vld [vmem:[%s11398_s4 + $0x2e8] ss:$16 sps:$4 sm:$0xff]  }
 0x368   : > { %v8286_v30 = vld [vmem:[%s11398_s4 + $0x304] ss:$16 sps:$4 sm:$0xff]   ;;  %v8289_v49 = vld [vmem:[%s11398_s4 + $0x30c] ss:$16 sps:$4 sm:$0xff]   ;;  %v8284_v11 = vld [vmem:[%s11398_s4 + $0x300] ss:$16 sps:$4 sm:$0xff]  }
 0x369   : > { %5940 = vmatmul.mubr.bf16.gmra.mrb[72].mxu1 %v7109_v4  ;;  %6348 = vmatmul.mubr.bf16.gmra.mrb[44].mxu0 %v7109_v4  ;;  %v8287_v59 = vld [vmem:[%s11398_s4 + $0x308] ss:$16 sps:$4 sm:$0xff]   ;;  %v8292_v32 = vld [vmem:[%s11398_s4 + $0x324] ss:$16 sps:$4 sm:$0xff]   ;;  %v8295_v34 = vld [vmem:[%s11398_s4 + $0x32c] ss:$16 sps:$4 sm:$0xff]  }
 0x36a   : > { %5953 = vmatpush1.bf16.msra.mxu1 %v8244_v0  ;;  %6361 = vmatpush1.bf16.msra.mxu0 %v8247_v3  ;;  %v8290_v35 = vld [vmem:[%s11398_s4 + $0x320] ss:$16 sps:$4 sm:$0xff]   ;;  %v8293_v14 = vld [vmem:[%s11398_s4 + $0x328] ss:$16 sps:$4 sm:$0xff]   ;;  %v8298_v36 = vld [vmem:[%s11398_s4 + $0x344] ss:$16 sps:$4 sm:$0xff]  }
 0x36b   : > { %5980 = vmatprep.mubr.bf16.mxu1 %v8253_v6  ;;  %6388 = vmatprep.mubr.bf16.mxu0 %v8253_v6  ;;  %v8301_v38 = vld [vmem:[%s11398_s4 + $0x34c] ss:$16 sps:$4 sm:$0xff]   ;;  %v8296_v39 = vld [vmem:[%s11398_s4 + $0x340] ss:$16 sps:$4 sm:$0xff]   ;;  %v8299_v40 = vld [vmem:[%s11398_s4 + $0x348] ss:$16 sps:$4 sm:$0xff]  }
 0x36c   : > { %5954 = vmatprep.subr.bf16.mxu1 %v8256_v5  ;;  %6362 = vmatprep.subr.bf16.mxu0 %v8259_v50  ;;  %v8304_v42 = vld [vmem:[%s11398_s4 + $0x364] ss:$16 sps:$4 sm:$0xff]   ;;  %v8307_v44 = vld [vmem:[%s11398_s4 + $0x36c] ss:$16 sps:$4 sm:$0xff]   ;;  %v8302_v46 = vld [vmem:[%s11398_s4 + $0x360] ss:$16 sps:$4 sm:$0xff]  }
 0x36d   : > { %v8305_v23 = vld [vmem:[%s11398_s4 + $0x368] ss:$16 sps:$4 sm:$0xff]   ;;  %v8310_v56 = vld [vmem:[%s11398_s4 + $0x384] ss:$16 sps:$4 sm:$0xff]   ;;  %v8313_v37 = vld [vmem:[%s11398_s4 + $0x38c] ss:$16 sps:$4 sm:$0xff]  }
 0x36e   : > { %5955 = vmatpush1.bf16.msra.mxu1 %v8254_v9  ;;  %6363 = vmatpush1.bf16.msra.mxu0 %v8257_v10  ;;  %v8308_v1 = vld [vmem:[%s11398_s4 + $0x380] ss:$16 sps:$4 sm:$0xff]   ;;  %v8311_v21 = vld [vmem:[%s11398_s4 + $0x388] ss:$16 sps:$4 sm:$0xff]   ;;  %v8316_v33 = vld [vmem:[%s11398_s4 + $0x3a4] ss:$16 sps:$4 sm:$0xff]  }
 0x36f   : > { %5956 = vmatprep.subr.bf16.mxu1 %v8262_v8  ;;  %6364 = vmatprep.subr.bf16.mxu0 %v8265_v51  ;;  %v8319_v54 = vld [vmem:[%s11398_s4 + $0x3ac] ss:$16 sps:$4 sm:$0xff]   ;;  %v8314_v31 = vld [vmem:[%s11398_s4 + $0x3a0] ss:$16 sps:$4 sm:$0xff]   ;;  %v8317_v47 = vld [vmem:[%s11398_s4 + $0x3a8] ss:$16 sps:$4 sm:$0xff]  }
 0x370   : > { %v8322_v48 = vld [vmem:[%s11398_s4 + $0x3c4] ss:$16 sps:$4 sm:$0xff]   ;;  %v8325_v63 = vld [vmem:[%s11398_s4 + $0x3cc] ss:$16 sps:$4 sm:$0xff]   ;;  %v8320_v52 = vld [vmem:[%s11398_s4 + $0x3c0] ss:$16 sps:$4 sm:$0xff]  }
 0x371   : > { %v8323_v53 = vld [vmem:[%s11398_s4 + $0x3c8] ss:$16 sps:$4 sm:$0xff]   ;;  %v8328_v55 = vld [vmem:[%s11398_s4 + $0x3e4] ss:$16 sps:$4 sm:$0xff]   ;;  %v8331_v16 = vld [vmem:[%s11398_s4 + $0x3ec] ss:$16 sps:$4 sm:$0xff]  }
 0x372   : > { %5957 = vmatpush1.bf16.msra.mxu1 %v8260_v12  ;;  %6365 = vmatpush1.bf16.msra.mxu0 %v8263_v17  ;;  %v8326_v7 = vld [vmem:[%s11398_s4 + $0x3e0] ss:$16 sps:$4 sm:$0xff]   ;;  %v8329_v57 = vld [vmem:[%s11398_s4 + $0x3e8] ss:$16 sps:$4 sm:$0xff]   ;;  %v8334_v28 = vld [vmem:[%s11398_s4 + $0x404] ss:$16 sps:$4 sm:$0xff]  }
 0x373   : > { %5958 = vmatprep.subr.bf16.mxu1 %v8268_v18  ;;  %6366 = vmatprep.subr.bf16.mxu0 %v8271_v19  ;;  %v8337_v58 = vld [vmem:[%s11398_s4 + $0x40c] ss:$16 sps:$4 sm:$0xff]   ;;  %v2881_v61 = vld [vmem:[#allocation2 + $0x80] sm:$0x33]  ;;  %v8335_v45 = vld [vmem:[%s11398_s4 + $0x408] ss:$16 sps:$4 sm:$0xff]  }
 0x374   : > { %v8332_v43 = vld [vmem:[%s11398_s4 + $0x400] ss:$16 sps:$4 sm:$0xff]   ;;  %v8251_v62 = vld [vmem:[#allocation2 + $0x8] ss:$60 sps:$4 sm:$0xff]   ;;  %v7112_v60 = vcombine.high %v2881_v61, %v2881_v61  ;;  %v8344_v3 = vld [vmem:[%s11398_s4 + $0x42c] ss:$16 sps:$4 sm:$0xff]   ;;  %v7111_v10 = vcombine.low %v2881_v61, %v2881_v61 }
 0x375   : > { %v8341_v0 = vld [vmem:[%s11398_s4 + $0x424] ss:$16 sps:$4 sm:$0xff]   ;;  %v8339_v4 = vld [vmem:[%s11398_s4 + $0x420] ss:$16 sps:$4 sm:$0xff]   ;;  %v8342_v5 = vld [vmem:[%s11398_s4 + $0x428] ss:$16 sps:$4 sm:$0xff]  }
 0x376   : > { %5959 = vmatpush1.bf16.msra.mxu1 %v8266_v20  ;;  %6367 = vmatpush1.bf16.msra.mxu0 %v8269_v22  ;;  %v8348_v50 = vld [vmem:[%s11398_s4 + $0x444] ss:$16 sps:$4 sm:$0xff]   ;;  %v8351_v6 = vld [vmem:[%s11398_s4 + $0x44c] ss:$16 sps:$4 sm:$0xff]   ;;  %v8346_v9 = vld [vmem:[%s11398_s4 + $0x440] ss:$16 sps:$4 sm:$0xff]  }
 0x377   : > { %5960 = vmatprep.subr.bf16.mxu1 %v8274_v24  ;;  %6368 = vmatprep.subr.bf16.mxu0 %v8277_v25  ;;  %v8349_v8 = vld [vmem:[%s11398_s4 + $0x448] ss:$16 sps:$4 sm:$0xff]   ;;  %v8354_v51 = vld [vmem:[#allocation2 + $0x14] ss:$60 sps:$4 sm:$0xff]   ;;  %v8360_v17 = vld [vmem:[%s11398_s4 + $0x46c] ss:$16 sps:$4 sm:$0xff]  }
 0x378   : > { %v8357_v12 = vld [vmem:[%s11398_s4 + $0x464] ss:$16 sps:$4 sm:$0xff]   ;;  %v8355_v18 = vld [vmem:[%s11398_s4 + $0x460] ss:$16 sps:$4 sm:$0xff]   ;;  %v8358_v19 = vld [vmem:[%s11398_s4 + $0x468] ss:$16 sps:$4 sm:$0xff]  }
 0x379   : > { %v8363_v20 = vld [vmem:[%s11398_s4 + $0x484] ss:$16 sps:$4 sm:$0xff]   ;;  %v8366_v22 = vld [vmem:[%s11398_s4 + $0x48c] ss:$16 sps:$4 sm:$0xff]   ;;  %v8361_v24 = vld [vmem:[%s11398_s4 + $0x480] ss:$16 sps:$4 sm:$0xff]  }
 0x37a   : > { %5961 = vmatpush1.bf16.msra.mxu1 %v8272_v26  ;;  %6369 = vmatpush1.bf16.msra.mxu0 %v8275_v27  ;;  %v8364_v25 = vld [vmem:[%s11398_s4 + $0x488] ss:$16 sps:$4 sm:$0xff]   ;;  %v8369_v26 = vld [vmem:[%s11398_s4 + $0x4a4] ss:$16 sps:$4 sm:$0xff]   ;;  %v8372_v27 = vld [vmem:[%s11398_s4 + $0x4ac] ss:$16 sps:$4 sm:$0xff]  }
 0x37b   : > { %5962 = vmatprep.subr.bf16.mxu1 %v8280_v29  ;;  %6370 = vmatprep.subr.bf16.mxu0 %v8283_v41  ;;  %v8367_v29 = vld [vmem:[%s11398_s4 + $0x4a0] ss:$16 sps:$4 sm:$0xff]   ;;  %v8370_v41 = vld [vmem:[%s11398_s4 + $0x4a8] ss:$16 sps:$4 sm:$0xff]   ;;  %v8429_v61 = vld [vmem:[%s11398_s4 + $0x5e4] ss:$16 sps:$4 sm:$0xff]  }
 0x37e   : > { %5963 = vmatpush1.bf16.msra.mxu1 %v8278_v13  ;;  %6371 = vmatpush1.bf16.msra.mxu0 %v8281_v15  ;;  %v8375_v13 = vld [vmem:[%s11398_s4 + $0x4c4] ss:$16 sps:$4 sm:$0xff]   ;;  %v8378_v15 = vld [vmem:[%s11398_s4 + $0x4cc] ss:$16 sps:$4 sm:$0xff]  }
 0x37f   : > { %5964 = vmatprep.subr.bf16.mxu1 %v8286_v30  ;;  %6372 = vmatprep.subr.bf16.mxu0 %v8289_v49  ;;  %v8373_v30 = vld [vmem:[%s11398_s4 + $0x4c0] ss:$16 sps:$4 sm:$0xff]   ;;  %v8376_v49 = vld [vmem:[%s11398_s4 + $0x4c8] ss:$16 sps:$4 sm:$0xff]  }
 0x382   : > { %5965 = vmatpush1.bf16.msra.mxu1 %v8284_v11  ;;  %6373 = vmatpush1.bf16.msra.mxu0 %v8287_v59  ;;  %v8381_v11 = vld [vmem:[%s11398_s4 + $0x4e4] ss:$16 sps:$4 sm:$0xff]   ;;  %v8384_v59 = vld [vmem:[%s11398_s4 + $0x4ec] ss:$16 sps:$4 sm:$0xff]  }
 0x383   : > { %5966 = vmatprep.subr.bf16.mxu1 %v8292_v32  ;;  %6374 = vmatprep.subr.bf16.mxu0 %v8295_v34  ;;  %v8379_v32 = vld [vmem:[%s11398_s4 + $0x4e0] ss:$16 sps:$4 sm:$0xff]   ;;  %v8382_v34 = vld [vmem:[%s11398_s4 + $0x4e8] ss:$16 sps:$4 sm:$0xff]  }
 0x386   : > { %5967 = vmatpush1.bf16.msra.mxu1 %v8290_v35  ;;  %6375 = vmatpush1.bf16.msra.mxu0 %v8293_v14  ;;  %v8387_v35 = vld [vmem:[%s11398_s4 + $0x504] ss:$16 sps:$4 sm:$0xff]   ;;  %v8390_v14 = vld [vmem:[%s11398_s4 + $0x50c] ss:$16 sps:$4 sm:$0xff]  }
 0x387   : > { %5968 = vmatprep.subr.bf16.mxu1 %v8298_v36  ;;  %6376 = vmatprep.subr.bf16.mxu0 %v8301_v38  ;;  %v8385_v36 = vld [vmem:[%s11398_s4 + $0x500] ss:$16 sps:$4 sm:$0xff]   ;;  %v8388_v38 = vld [vmem:[%s11398_s4 + $0x508] ss:$16 sps:$4 sm:$0xff]  }
 0x38a   : > { %5969 = vmatpush1.bf16.msra.mxu1 %v8296_v39  ;;  %6377 = vmatpush1.bf16.msra.mxu0 %v8299_v40  ;;  %v8393_v39 = vld [vmem:[%s11398_s4 + $0x524] ss:$16 sps:$4 sm:$0xff]   ;;  %v8396_v40 = vld [vmem:[%s11398_s4 + $0x52c] ss:$16 sps:$4 sm:$0xff]  }
 0x38b   : > { %5970 = vmatprep.subr.bf16.mxu1 %v8304_v42  ;;  %6378 = vmatprep.subr.bf16.mxu0 %v8307_v44  ;;  %v8391_v42 = vld [vmem:[%s11398_s4 + $0x520] ss:$16 sps:$4 sm:$0xff]   ;;  %v8394_v44 = vld [vmem:[%s11398_s4 + $0x528] ss:$16 sps:$4 sm:$0xff]  }
 0x38e   : > { %5971 = vmatpush1.bf16.msra.mxu1 %v8302_v46  ;;  %6379 = vmatpush1.bf16.msra.mxu0 %v8305_v23  ;;  %v8399_v46 = vld [vmem:[%s11398_s4 + $0x544] ss:$16 sps:$4 sm:$0xff]   ;;  %v8402_v23 = vld [vmem:[%s11398_s4 + $0x54c] ss:$16 sps:$4 sm:$0xff]  }
 0x38f   : > { %5972 = vmatprep.subr.bf16.mxu1 %v8310_v56  ;;  %6380 = vmatprep.subr.bf16.mxu0 %v8313_v37  ;;  %v8397_v56 = vld [vmem:[%s11398_s4 + $0x540] ss:$16 sps:$4 sm:$0xff]   ;;  %v8400_v37 = vld [vmem:[%s11398_s4 + $0x548] ss:$16 sps:$4 sm:$0xff]  }
 0x392   : > { %5973 = vmatpush1.bf16.msra.mxu1 %v8308_v1  ;;  %6381 = vmatpush1.bf16.msra.mxu0 %v8311_v21  ;;  %v8405_v1 = vld [vmem:[%s11398_s4 + $0x564] ss:$16 sps:$4 sm:$0xff]   ;;  %v8408_v21 = vld [vmem:[%s11398_s4 + $0x56c] ss:$16 sps:$4 sm:$0xff]  }
 0x393   : > { %5974 = vmatprep.subr.bf16.mxu1 %v8316_v33  ;;  %6382 = vmatprep.subr.bf16.mxu0 %v8319_v54  ;;  %v8403_v33 = vld [vmem:[%s11398_s4 + $0x560] ss:$16 sps:$4 sm:$0xff]   ;;  %v8406_v54 = vld [vmem:[%s11398_s4 + $0x568] ss:$16 sps:$4 sm:$0xff]  }
 0x396   : > { %5975 = vmatpush1.bf16.msra.mxu1 %v8314_v31  ;;  %6383 = vmatpush1.bf16.msra.mxu0 %v8317_v47  ;;  %v8411_v31 = vld [vmem:[%s11398_s4 + $0x584] ss:$16 sps:$4 sm:$0xff]   ;;  %v8414_v47 = vld [vmem:[%s11398_s4 + $0x58c] ss:$16 sps:$4 sm:$0xff]  }
 0x397   : > { %5976 = vmatprep.subr.bf16.mxu1 %v8322_v48  ;;  %6384 = vmatprep.subr.bf16.mxu0 %v8325_v63  ;;  %v8409_v48 = vld [vmem:[%s11398_s4 + $0x580] ss:$16 sps:$4 sm:$0xff]   ;;  %v8412_v63 = vld [vmem:[%s11398_s4 + $0x588] ss:$16 sps:$4 sm:$0xff]  }
 0x39a   : > { %5977 = vmatpush1.bf16.msra.mxu1 %v8320_v52  ;;  %6385 = vmatpush1.bf16.msra.mxu0 %v8323_v53  ;;  %v8417_v52 = vld [vmem:[%s11398_s4 + $0x5a4] ss:$16 sps:$4 sm:$0xff]   ;;  %v8420_v53 = vld [vmem:[%s11398_s4 + $0x5ac] ss:$16 sps:$4 sm:$0xff]  }
 0x39b   : > { %5978 = vmatprep.subr.bf16.mxu1 %v8328_v55  ;;  %6386 = vmatprep.subr.bf16.mxu0 %v8331_v16  ;;  %v8415_v55 = vld [vmem:[%s11398_s4 + $0x5a0] ss:$16 sps:$4 sm:$0xff]   ;;  %v8418_v16 = vld [vmem:[%s11398_s4 + $0x5a8] ss:$16 sps:$4 sm:$0xff]  }
 0x39e   : > { %5979 = vmatpush1.bf16.msra.mxu1 %v8326_v7  ;;  %6387 = vmatpush1.bf16.msra.mxu0 %v8329_v57  ;;  %v8423_v7 = vld [vmem:[%s11398_s4 + $0x5c4] ss:$16 sps:$4 sm:$0xff]   ;;  %v8426_v57 = vld [vmem:[%s11398_s4 + $0x5cc] ss:$16 sps:$4 sm:$0xff]  }
 0x39f   : > { %5999 = vmatprep.subr.bf16.mxu1 %v8334_v28  ;;  %6407 = vmatprep.subr.bf16.mxu0 %v8337_v58  ;;  %v8421_v28 = vld [vmem:[%s11398_s4 + $0x5c0] ss:$16 sps:$4 sm:$0xff]   ;;  %v8424_v58 = vld [vmem:[%s11398_s4 + $0x5c8] ss:$16 sps:$4 sm:$0xff]  }
 0x3a1   : > { %5981 = vmatmul.mubr.bf16.vlgmr.msra.gmra.mrb[68].mxu1 %v8251_v62  ;;  %6389 = vmatmul.mubr.bf16.vlgmr.msra.gmra.mrb[40].mxu0 %v8251_v62  ;;  %v8427_v62 = vld [vmem:[%s11398_s4 + $0x5e0] ss:$16 sps:$4 sm:$0xff]  }
 0x3a2   : > { %5990 = vmatprep.mubr.bf16.mxu1 %v7112_v60  ;;  %6000 = vmatpush1.bf16.msra.mxu1 %v8332_v43  ;;  %v8432_v43 = vld [vmem:[%s11398_s4 + $0x5ec] ss:$16 sps:$4 sm:$0xff]  }
 0x3a3   : > { %6398 = vmatprep.mubr.bf16.mxu0 %v7112_v60  ;;  %6408 = vmatpush1.bf16.msra.mxu0 %v8335_v45  ;;  %v8430_v45 = vld [vmem:[%s11398_s4 + $0x5e8] ss:$16 sps:$4 sm:$0xff]   ;;  %v8435_v60 = vld [vmem:[%s11398_s4 + $0x604] ss:$16 sps:$4 sm:$0xff]  }
 0x3a4   : > { %6001 = vmatprep.subr.bf16.mxu1 %v8341_v0  ;;  %6409 = vmatprep.subr.bf16.mxu0 %v8344_v3  ;;  %v8438_v0 = vld [vmem:[%s11398_s4 + $0x60c] ss:$16 sps:$4 sm:$0xff]  }
 0x3a5   : > { %v2882_v3 = vld [vmem:[#allocation2 + $0x88] sm:$0x33] }
 0x3a6   : > { %6002 = vmatpush1.bf16.msra.mxu1 %v8339_v4  ;;  %v8352_v4 = vld [vmem:[#allocation2 + $0x10] ss:$60 sps:$4 sm:$0xff]  }
 0x3a7   : > { %6410 = vmatpush1.bf16.msra.mxu0 %v8342_v5  ;;  %6003 = vmatprep.subr.bf16.mxu1 %v8348_v50  ;;  %v8433_v5 = vld [vmem:[%s11398_s4 + $0x600] ss:$16 sps:$4 sm:$0xff]   ;;  %v8436_v50 = vld [vmem:[%s11398_s4 + $0x608] ss:$16 sps:$4 sm:$0xff]  }
 0x3a8   : > { %6411 = vmatprep.subr.bf16.mxu0 %v8351_v6  ;;  %v7114_v6 = vcombine.high %v2882_v3, %v2882_v3 }
 0x3a9   : > { %5991 = vmatmul.mubr.bf16.gmra.mrb[72].mxu1 %v7111_v10  ;;  %6399 = vmatmul.mubr.bf16.gmra.mrb[44].mxu0 %v7111_v10  ;;  %v8445_v10 = vld [vmem:[%s11398_s4 + $0x62c] ss:$16 sps:$4 sm:$0xff]  }
 0x3aa   : > { %6004 = vmatpush1.bf16.msra.mxu1 %v8346_v9  ;;  %6031 = vmatprep.mubr.bf16.mxu1 %v8354_v51  ;;  %v8442_v9 = vld [vmem:[%s11398_s4 + $0x624] ss:$16 sps:$4 sm:$0xff]  }
 0x3ab   : > { %6412 = vmatpush1.bf16.msra.mxu0 %v8349_v8  ;;  %6439 = vmatprep.mubr.bf16.mxu0 %v8354_v51  ;;  %v8440_v8 = vld [vmem:[%s11398_s4 + $0x620] ss:$16 sps:$4 sm:$0xff]   ;;  %v8443_v51 = vld [vmem:[%s11398_s4 + $0x628] ss:$16 sps:$4 sm:$0xff]  }
 0x3ac   : > { %6005 = vmatprep.subr.bf16.mxu1 %v8357_v12  ;;  %6413 = vmatprep.subr.bf16.mxu0 %v8360_v17  ;;  %v8449_v12 = vld [vmem:[%s11398_s4 + $0x644] ss:$16 sps:$4 sm:$0xff]   ;;  %v8452_v17 = vld [vmem:[%s11398_s4 + $0x64c] ss:$16 sps:$4 sm:$0xff]  }
 0x3ae   : > { %6006 = vmatpush1.bf16.msra.mxu1 %v8355_v18  ;;  %v7113_v18 = vcombine.low %v2882_v3, %v2882_v3  ;;  %v8530_v3 = vld [vmem:[%s11398_s4 + $0x7e4] ss:$16 sps:$4 sm:$0xff]  }
 0x3af   : > { %6414 = vmatpush1.bf16.msra.mxu0 %v8358_v19  ;;  %6007 = vmatprep.subr.bf16.mxu1 %v8363_v20  ;;  %v8447_v19 = vld [vmem:[%s11398_s4 + $0x640] ss:$16 sps:$4 sm:$0xff]   ;;  %v8450_v20 = vld [vmem:[%s11398_s4 + $0x648] ss:$16 sps:$4 sm:$0xff]  }
 0x3b0   : > { %6415 = vmatprep.subr.bf16.mxu0 %v8366_v22  ;;  %v8455_v22 = vld [vmem:[#allocation2 + $0x1c] ss:$60 sps:$4 sm:$0xff]  }
 0x3b2   : > { %6008 = vmatpush1.bf16.msra.mxu1 %v8361_v24  ;;  %v8458_v24 = vld [vmem:[%s11398_s4 + $0x664] ss:$16 sps:$4 sm:$0xff]  }
 0x3b3   : > { %6416 = vmatpush1.bf16.msra.mxu0 %v8364_v25  ;;  %6009 = vmatprep.subr.bf16.mxu1 %v8369_v26  ;;  %v8461_v25 = vld [vmem:[%s11398_s4 + $0x66c] ss:$16 sps:$4 sm:$0xff]   ;;  %v8456_v26 = vld [vmem:[%s11398_s4 + $0x660] ss:$16 sps:$4 sm:$0xff]  }
 0x3b4   : > { %6417 = vmatprep.subr.bf16.mxu0 %v8372_v27  ;;  %v8459_v27 = vld [vmem:[%s11398_s4 + $0x668] ss:$16 sps:$4 sm:$0xff]  }
 0x3b6   : > { %6010 = vmatpush1.bf16.msra.mxu1 %v8367_v29  ;;  %v8464_v29 = vld [vmem:[%s11398_s4 + $0x684] ss:$16 sps:$4 sm:$0xff]  }
 0x3b7   : > { %6418 = vmatpush1.bf16.msra.mxu0 %v8370_v41  ;;  %6011 = vmatprep.subr.bf16.mxu1 %v8375_v13  ;;  %v8467_v41 = vld [vmem:[%s11398_s4 + $0x68c] ss:$16 sps:$4 sm:$0xff]   ;;  %v8462_v13 = vld [vmem:[%s11398_s4 + $0x680] ss:$16 sps:$4 sm:$0xff]  }
 0x3b8   : > { %6419 = vmatprep.subr.bf16.mxu0 %v8378_v15  ;;  %v8465_v15 = vld [vmem:[%s11398_s4 + $0x688] ss:$16 sps:$4 sm:$0xff]  }
 0x3ba   : > { %6012 = vmatpush1.bf16.msra.mxu1 %v8373_v30  ;;  %v8470_v30 = vld [vmem:[%s11398_s4 + $0x6a4] ss:$16 sps:$4 sm:$0xff]  }
 0x3bb   : > { %6420 = vmatpush1.bf16.msra.mxu0 %v8376_v49  ;;  %6013 = vmatprep.subr.bf16.mxu1 %v8381_v11  ;;  %v8473_v49 = vld [vmem:[%s11398_s4 + $0x6ac] ss:$16 sps:$4 sm:$0xff]   ;;  %v8468_v11 = vld [vmem:[%s11398_s4 + $0x6a0] ss:$16 sps:$4 sm:$0xff]  }
 0x3bc   : > { %6421 = vmatprep.subr.bf16.mxu0 %v8384_v59  ;;  %v8471_v59 = vld [vmem:[%s11398_s4 + $0x6a8] ss:$16 sps:$4 sm:$0xff]  }
 0x3be   : > { %6014 = vmatpush1.bf16.msra.mxu1 %v8379_v32  ;;  %v8476_v32 = vld [vmem:[%s11398_s4 + $0x6c4] ss:$16 sps:$4 sm:$0xff]  }
 0x3bf   : > { %6422 = vmatpush1.bf16.msra.mxu0 %v8382_v34  ;;  %6015 = vmatprep.subr.bf16.mxu1 %v8387_v35  ;;  %v8479_v34 = vld [vmem:[%s11398_s4 + $0x6cc] ss:$16 sps:$4 sm:$0xff]   ;;  %v8474_v35 = vld [vmem:[%s11398_s4 + $0x6c0] ss:$16 sps:$4 sm:$0xff]  }
 0x3c0   : > { %6423 = vmatprep.subr.bf16.mxu0 %v8390_v14  ;;  %v8477_v14 = vld [vmem:[%s11398_s4 + $0x6c8] ss:$16 sps:$4 sm:$0xff]  }
 0x3c2   : > { %6016 = vmatpush1.bf16.msra.mxu1 %v8385_v36  ;;  %v8482_v36 = vld [vmem:[%s11398_s4 + $0x6e4] ss:$16 sps:$4 sm:$0xff]  }
 0x3c3   : > { %6424 = vmatpush1.bf16.msra.mxu0 %v8388_v38  ;;  %6017 = vmatprep.subr.bf16.mxu1 %v8393_v39  ;;  %v8485_v38 = vld [vmem:[%s11398_s4 + $0x6ec] ss:$16 sps:$4 sm:$0xff]   ;;  %v8480_v39 = vld [vmem:[%s11398_s4 + $0x6e0] ss:$16 sps:$4 sm:$0xff]  }
 0x3c4   : > { %6425 = vmatprep.subr.bf16.mxu0 %v8396_v40  ;;  %v8483_v40 = vld [vmem:[%s11398_s4 + $0x6e8] ss:$16 sps:$4 sm:$0xff]  }
 0x3c6   : > { %6018 = vmatpush1.bf16.msra.mxu1 %v8391_v42  ;;  %v8488_v42 = vld [vmem:[%s11398_s4 + $0x704] ss:$16 sps:$4 sm:$0xff]  }
 0x3c7   : > { %6426 = vmatpush1.bf16.msra.mxu0 %v8394_v44  ;;  %6019 = vmatprep.subr.bf16.mxu1 %v8399_v46  ;;  %v8491_v44 = vld [vmem:[%s11398_s4 + $0x70c] ss:$16 sps:$4 sm:$0xff]   ;;  %v8486_v46 = vld [vmem:[%s11398_s4 + $0x700] ss:$16 sps:$4 sm:$0xff]  }
 0x3c8   : > { %6427 = vmatprep.subr.bf16.mxu0 %v8402_v23  ;;  %v8489_v23 = vld [vmem:[%s11398_s4 + $0x708] ss:$16 sps:$4 sm:$0xff]  }
 0x3ca   : > { %6020 = vmatpush1.bf16.msra.mxu1 %v8397_v56  ;;  %v8494_v56 = vld [vmem:[%s11398_s4 + $0x724] ss:$16 sps:$4 sm:$0xff]  }
 0x3cb   : > { %6428 = vmatpush1.bf16.msra.mxu0 %v8400_v37  ;;  %6021 = vmatprep.subr.bf16.mxu1 %v8405_v1  ;;  %v8497_v37 = vld [vmem:[%s11398_s4 + $0x72c] ss:$16 sps:$4 sm:$0xff]   ;;  %v8492_v1 = vld [vmem:[%s11398_s4 + $0x720] ss:$16 sps:$4 sm:$0xff]  }
 0x3cc   : > { %6429 = vmatprep.subr.bf16.mxu0 %v8408_v21  ;;  %v8495_v21 = vld [vmem:[%s11398_s4 + $0x728] ss:$16 sps:$4 sm:$0xff]  }
 0x3ce   : > { %6022 = vmatpush1.bf16.msra.mxu1 %v8403_v33  ;;  %v8500_v33 = vld [vmem:[%s11398_s4 + $0x744] ss:$16 sps:$4 sm:$0xff]  }
 0x3cf   : > { %6430 = vmatpush1.bf16.msra.mxu0 %v8406_v54  ;;  %6023 = vmatprep.subr.bf16.mxu1 %v8411_v31  ;;  %v8503_v54 = vld [vmem:[%s11398_s4 + $0x74c] ss:$16 sps:$4 sm:$0xff]   ;;  %v8498_v31 = vld [vmem:[%s11398_s4 + $0x740] ss:$16 sps:$4 sm:$0xff]  }
 0x3d0   : > { %6431 = vmatprep.subr.bf16.mxu0 %v8414_v47  ;;  %v8501_v47 = vld [vmem:[%s11398_s4 + $0x748] ss:$16 sps:$4 sm:$0xff]  }
 0x3d2   : > { %6024 = vmatpush1.bf16.msra.mxu1 %v8409_v48  ;;  %v8506_v48 = vld [vmem:[%s11398_s4 + $0x764] ss:$16 sps:$4 sm:$0xff]  }
 0x3d3   : > { %6432 = vmatpush1.bf16.msra.mxu0 %v8412_v63  ;;  %6025 = vmatprep.subr.bf16.mxu1 %v8417_v52  ;;  %v8509_v63 = vld [vmem:[%s11398_s4 + $0x76c] ss:$16 sps:$4 sm:$0xff]   ;;  %v8504_v52 = vld [vmem:[%s11398_s4 + $0x760] ss:$16 sps:$4 sm:$0xff]  }
 0x3d4   : > { %6433 = vmatprep.subr.bf16.mxu0 %v8420_v53  ;;  %v8507_v53 = vld [vmem:[%s11398_s4 + $0x768] ss:$16 sps:$4 sm:$0xff]  }
 0x3d6   : > { %6026 = vmatpush1.bf16.msra.mxu1 %v8415_v55  ;;  %v8512_v55 = vld [vmem:[%s11398_s4 + $0x784] ss:$16 sps:$4 sm:$0xff]  }
 0x3d7   : > { %6434 = vmatpush1.bf16.msra.mxu0 %v8418_v16  ;;  %6027 = vmatprep.subr.bf16.mxu1 %v8423_v7  ;;  %v8515_v16 = vld [vmem:[%s11398_s4 + $0x78c] ss:$16 sps:$4 sm:$0xff]   ;;  %v8510_v7 = vld [vmem:[%s11398_s4 + $0x780] ss:$16 sps:$4 sm:$0xff]  }
 0x3d8   : > { %6435 = vmatprep.subr.bf16.mxu0 %v8426_v57  ;;  %v8513_v57 = vld [vmem:[%s11398_s4 + $0x788] ss:$16 sps:$4 sm:$0xff]  }
 0x3da   : > { %6028 = vmatpush1.bf16.msra.mxu1 %v8421_v28  ;;  %v8518_v28 = vld [vmem:[%s11398_s4 + $0x7a4] ss:$16 sps:$4 sm:$0xff]  }
 0x3db   : > { %6436 = vmatpush1.bf16.msra.mxu0 %v8424_v58  ;;  %6029 = vmatprep.subr.bf16.mxu1 %v8429_v61  ;;  %v8521_v58 = vld [vmem:[%s11398_s4 + $0x7ac] ss:$16 sps:$4 sm:$0xff]   ;;  %v8516_v61 = vld [vmem:[%s11398_s4 + $0x7a0] ss:$16 sps:$4 sm:$0xff]  }
 0x3dc   : > { %6437 = vmatprep.subr.bf16.mxu0 %v8432_v43  ;;  %v8519_v43 = vld [vmem:[%s11398_s4 + $0x7a8] ss:$16 sps:$4 sm:$0xff]  }
 0x3de   : > { %6030 = vmatpush1.bf16.msra.mxu1 %v8427_v62  ;;  %v8524_v62 = vld [vmem:[%s11398_s4 + $0x7c4] ss:$16 sps:$4 sm:$0xff]  }
 0x3df   : > { %6438 = vmatpush1.bf16.msra.mxu0 %v8430_v45  ;;  %6050 = vmatprep.subr.bf16.mxu1 %v8435_v60  ;;  %v8527_v45 = vld [vmem:[%s11398_s4 + $0x7cc] ss:$16 sps:$4 sm:$0xff]   ;;  %v8522_v60 = vld [vmem:[%s11398_s4 + $0x7c0] ss:$16 sps:$4 sm:$0xff]  }
 0x3e0   : > { %6458 = vmatprep.subr.bf16.mxu0 %v8438_v0  ;;  %v8525_v0 = vld [vmem:[%s11398_s4 + $0x7c8] ss:$16 sps:$4 sm:$0xff]  }
 0x3e1   : > { %6032 = vmatmul.mubr.bf16.vlgmr.msra.gmra.mrb[68].mxu1 %v8352_v4 }
 0x3e2   : > { %6440 = vmatmul.mubr.bf16.vlgmr.msra.gmra.mrb[40].mxu0 %v8352_v4  ;;  %6041 = vmatprep.mubr.bf16.mxu1 %v7114_v6  ;;  %v8533_v4 = vld [vmem:[%s11398_s4 + $0x7ec] ss:$16 sps:$4 sm:$0xff]  }
 0x3e3   : > { %6051 = vmatpush1.bf16.msra.mxu1 %v8433_v5  ;;  %6449 = vmatprep.mubr.bf16.mxu0 %v7114_v6  ;;  %v8528_v5 = vld [vmem:[%s11398_s4 + $0x7e0] ss:$16 sps:$4 sm:$0xff]   ;;  %v8536_v6 = vld [vmem:[%s11398_s4 + $0x804] ss:$16 sps:$4 sm:$0xff]  }
 0x3e4   : > { %6459 = vmatpush1.bf16.msra.mxu0 %v8436_v50  ;;  %6052 = vmatprep.subr.bf16.mxu1 %v8442_v9  ;;  %v8531_v50 = vld [vmem:[%s11398_s4 + $0x7e8] ss:$16 sps:$4 sm:$0xff]   ;;  %v8539_v9 = vld [vmem:[%s11398_s4 + $0x80c] ss:$16 sps:$4 sm:$0xff]  }
 0x3e5   : > { %6460 = vmatprep.subr.bf16.mxu0 %v8445_v10  ;;  %v2883_v10 = vld [vmem:[#allocation2 + $0x90] sm:$0x33] }
 0x3e7   : > { %6053 = vmatpush1.bf16.msra.mxu1 %v8440_v8  ;;  %v8453_v8 = vld [vmem:[#allocation2 + $0x18] ss:$60 sps:$4 sm:$0xff]  }
 0x3e8   : > { %6461 = vmatpush1.bf16.msra.mxu0 %v8443_v51  ;;  %6054 = vmatprep.subr.bf16.mxu1 %v8449_v12  ;;  %v8534_v51 = vld [vmem:[%s11398_s4 + $0x800] ss:$16 sps:$4 sm:$0xff]   ;;  %v8537_v12 = vld [vmem:[%s11398_s4 + $0x808] ss:$16 sps:$4 sm:$0xff]  }
 0x3e9   : > { %6042 = vmatmul.mubr.bf16.gmra.mrb[72].mxu1 %v7113_v18  ;;  %6462 = vmatprep.subr.bf16.mxu0 %v8452_v17  ;;  %v7116_v17 = vcombine.high %v2883_v10, %v2883_v10 }
 0x3ea   : > { %6450 = vmatmul.mubr.bf16.gmra.mrb[44].mxu0 %v7113_v18  ;;  %6082 = vmatprep.mubr.bf16.mxu1 %v8455_v22  ;;  %v8543_v18 = vld [vmem:[%s11398_s4 + $0x824] ss:$16 sps:$4 sm:$0xff]  }
 0x3eb   : > { %6055 = vmatpush1.bf16.msra.mxu1 %v8447_v19  ;;  %6490 = vmatprep.mubr.bf16.mxu0 %v8455_v22  ;;  %v8546_v19 = vld [vmem:[%s11398_s4 + $0x82c] ss:$16 sps:$4 sm:$0xff]   ;;  %v8544_v22 = vld [vmem:[%s11398_s4 + $0x828] ss:$16 sps:$4 sm:$0xff]  }
 0x3ec   : > { %6463 = vmatpush1.bf16.msra.mxu0 %v8450_v20  ;;  %6056 = vmatprep.subr.bf16.mxu1 %v8458_v24  ;;  %v8541_v20 = vld [vmem:[%s11398_s4 + $0x820] ss:$16 sps:$4 sm:$0xff]   ;;  %v8550_v24 = vld [vmem:[%s11398_s4 + $0x844] ss:$16 sps:$4 sm:$0xff]  }
 0x3ed   : > { %6464 = vmatprep.subr.bf16.mxu0 %v8461_v25  ;;  %v8553_v25 = vld [vmem:[%s11398_s4 + $0x84c] ss:$16 sps:$4 sm:$0xff]  }
 0x3ef   : > { %6057 = vmatpush1.bf16.msra.mxu1 %v8456_v26  ;;  %v7115_v26 = vcombine.low %v2883_v10, %v2883_v10  ;;  %v8631_v10 = vld [vmem:[%s11398_s4 + $0x9e4] ss:$16 sps:$4 sm:$0xff]  }
 0x3f0   : > { %6465 = vmatpush1.bf16.msra.mxu0 %v8459_v27  ;;  %6058 = vmatprep.subr.bf16.mxu1 %v8464_v29  ;;  %v8548_v27 = vld [vmem:[%s11398_s4 + $0x840] ss:$16 sps:$4 sm:$0xff]   ;;  %v8551_v29 = vld [vmem:[%s11398_s4 + $0x848] ss:$16 sps:$4 sm:$0xff]  }
 0x3f1   : > { %6466 = vmatprep.subr.bf16.mxu0 %v8467_v41  ;;  %v8556_v41 = vld [vmem:[#allocation2 + $0x24] ss:$60 sps:$4 sm:$0xff]  }
 0x3f3   : > { %6059 = vmatpush1.bf16.msra.mxu1 %v8462_v13  ;;  %v8559_v13 = vld [vmem:[%s11398_s4 + $0x864] ss:$16 sps:$4 sm:$0xff]  }
 0x3f4   : > { %6467 = vmatpush1.bf16.msra.mxu0 %v8465_v15  ;;  %6060 = vmatprep.subr.bf16.mxu1 %v8470_v30  ;;  %v8562_v15 = vld [vmem:[%s11398_s4 + $0x86c] ss:$16 sps:$4 sm:$0xff]   ;;  %v8557_v30 = vld [vmem:[%s11398_s4 + $0x860] ss:$16 sps:$4 sm:$0xff]  }
 0x3f5   : > { %6468 = vmatprep.subr.bf16.mxu0 %v8473_v49  ;;  %v8560_v49 = vld [vmem:[%s11398_s4 + $0x868] ss:$16 sps:$4 sm:$0xff]  }
 0x3f7   : > { %6061 = vmatpush1.bf16.msra.mxu1 %v8468_v11  ;;  %v8565_v11 = vld [vmem:[%s11398_s4 + $0x884] ss:$16 sps:$4 sm:$0xff]  }
 0x3f8   : > { %6469 = vmatpush1.bf16.msra.mxu0 %v8471_v59  ;;  %6062 = vmatprep.subr.bf16.mxu1 %v8476_v32  ;;  %v8568_v59 = vld [vmem:[%s11398_s4 + $0x88c] ss:$16 sps:$4 sm:$0xff]   ;;  %v8563_v32 = vld [vmem:[%s11398_s4 + $0x880] ss:$16 sps:$4 sm:$0xff]  }
 0x3f9   : > { %6470 = vmatprep.subr.bf16.mxu0 %v8479_v34  ;;  %v8566_v34 = vld [vmem:[%s11398_s4 + $0x888] ss:$16 sps:$4 sm:$0xff]  }
 0x3fb   : > { %6063 = vmatpush1.bf16.msra.mxu1 %v8474_v35  ;;  %v8571_v35 = vld [vmem:[%s11398_s4 + $0x8a4] ss:$16 sps:$4 sm:$0xff]  }
 0x3fc   : > { %6471 = vmatpush1.bf16.msra.mxu0 %v8477_v14  ;;  %6064 = vmatprep.subr.bf16.mxu1 %v8482_v36  ;;  %v8574_v14 = vld [vmem:[%s11398_s4 + $0x8ac] ss:$16 sps:$4 sm:$0xff]   ;;  %v8569_v36 = vld [vmem:[%s11398_s4 + $0x8a0] ss:$16 sps:$4 sm:$0xff]  }
 0x3fd   : > { %6472 = vmatprep.subr.bf16.mxu0 %v8485_v38  ;;  %v8572_v38 = vld [vmem:[%s11398_s4 + $0x8a8] ss:$16 sps:$4 sm:$0xff]  }
 0x3ff   : > { %6065 = vmatpush1.bf16.msra.mxu1 %v8480_v39  ;;  %v8577_v39 = vld [vmem:[%s11398_s4 + $0x8c4] ss:$16 sps:$4 sm:$0xff]  }
 0x400   : > { %6473 = vmatpush1.bf16.msra.mxu0 %v8483_v40  ;;  %6066 = vmatprep.subr.bf16.mxu1 %v8488_v42  ;;  %v8580_v40 = vld [vmem:[%s11398_s4 + $0x8cc] ss:$16 sps:$4 sm:$0xff]   ;;  %v8575_v42 = vld [vmem:[%s11398_s4 + $0x8c0] ss:$16 sps:$4 sm:$0xff]  }
 0x401   : > { %6474 = vmatprep.subr.bf16.mxu0 %v8491_v44  ;;  %v8578_v44 = vld [vmem:[%s11398_s4 + $0x8c8] ss:$16 sps:$4 sm:$0xff]  }
 0x403   : > { %6067 = vmatpush1.bf16.msra.mxu1 %v8486_v46  ;;  %v8583_v46 = vld [vmem:[%s11398_s4 + $0x8e4] ss:$16 sps:$4 sm:$0xff]  }
 0x404   : > { %6475 = vmatpush1.bf16.msra.mxu0 %v8489_v23  ;;  %6068 = vmatprep.subr.bf16.mxu1 %v8494_v56  ;;  %v8586_v23 = vld [vmem:[%s11398_s4 + $0x8ec] ss:$16 sps:$4 sm:$0xff]   ;;  %v8581_v56 = vld [vmem:[%s11398_s4 + $0x8e0] ss:$16 sps:$4 sm:$0xff]  }
 0x405   : > { %6476 = vmatprep.subr.bf16.mxu0 %v8497_v37  ;;  %v8584_v37 = vld [vmem:[%s11398_s4 + $0x8e8] ss:$16 sps:$4 sm:$0xff]  }
 0x407   : > { %6069 = vmatpush1.bf16.msra.mxu1 %v8492_v1  ;;  %v8589_v1 = vld [vmem:[%s11398_s4 + $0x904] ss:$16 sps:$4 sm:$0xff]  }
 0x408   : > { %6477 = vmatpush1.bf16.msra.mxu0 %v8495_v21  ;;  %6070 = vmatprep.subr.bf16.mxu1 %v8500_v33  ;;  %v8592_v21 = vld [vmem:[%s11398_s4 + $0x90c] ss:$16 sps:$4 sm:$0xff]   ;;  %v8587_v33 = vld [vmem:[%s11398_s4 + $0x900] ss:$16 sps:$4 sm:$0xff]  }
 0x409   : > { %6478 = vmatprep.subr.bf16.mxu0 %v8503_v54  ;;  %v8590_v54 = vld [vmem:[%s11398_s4 + $0x908] ss:$16 sps:$4 sm:$0xff]  }
 0x40b   : > { %6071 = vmatpush1.bf16.msra.mxu1 %v8498_v31  ;;  %v8595_v31 = vld [vmem:[%s11398_s4 + $0x924] ss:$16 sps:$4 sm:$0xff]  }
 0x40c   : > { %6479 = vmatpush1.bf16.msra.mxu0 %v8501_v47  ;;  %6072 = vmatprep.subr.bf16.mxu1 %v8506_v48  ;;  %v8598_v47 = vld [vmem:[%s11398_s4 + $0x92c] ss:$16 sps:$4 sm:$0xff]   ;;  %v8593_v48 = vld [vmem:[%s11398_s4 + $0x920] ss:$16 sps:$4 sm:$0xff]  }
 0x40d   : > { %6480 = vmatprep.subr.bf16.mxu0 %v8509_v63  ;;  %v8596_v63 = vld [vmem:[%s11398_s4 + $0x928] ss:$16 sps:$4 sm:$0xff]  }
 0x40f   : > { %6073 = vmatpush1.bf16.msra.mxu1 %v8504_v52  ;;  %v8601_v52 = vld [vmem:[%s11398_s4 + $0x944] ss:$16 sps:$4 sm:$0xff]  }
 0x410   : > { %6481 = vmatpush1.bf16.msra.mxu0 %v8507_v53  ;;  %6074 = vmatprep.subr.bf16.mxu1 %v8512_v55  ;;  %v8604_v53 = vld [vmem:[%s11398_s4 + $0x94c] ss:$16 sps:$4 sm:$0xff]   ;;  %v8599_v55 = vld [vmem:[%s11398_s4 + $0x940] ss:$16 sps:$4 sm:$0xff]  }
 0x411   : > { %6482 = vmatprep.subr.bf16.mxu0 %v8515_v16  ;;  %v8602_v16 = vld [vmem:[%s11398_s4 + $0x948] ss:$16 sps:$4 sm:$0xff]  }
 0x413   : > { %6075 = vmatpush1.bf16.msra.mxu1 %v8510_v7  ;;  %v8607_v7 = vld [vmem:[%s11398_s4 + $0x964] ss:$16 sps:$4 sm:$0xff]  }
 0x414   : > { %6483 = vmatpush1.bf16.msra.mxu0 %v8513_v57  ;;  %6076 = vmatprep.subr.bf16.mxu1 %v8518_v28  ;;  %v8610_v57 = vld [vmem:[%s11398_s4 + $0x96c] ss:$16 sps:$4 sm:$0xff]   ;;  %v8605_v28 = vld [vmem:[%s11398_s4 + $0x960] ss:$16 sps:$4 sm:$0xff]  }
 0x415   : > { %6484 = vmatprep.subr.bf16.mxu0 %v8521_v58  ;;  %v8608_v58 = vld [vmem:[%s11398_s4 + $0x968] ss:$16 sps:$4 sm:$0xff]  }
 0x417   : > { %6077 = vmatpush1.bf16.msra.mxu1 %v8516_v61  ;;  %v8613_v61 = vld [vmem:[%s11398_s4 + $0x984] ss:$16 sps:$4 sm:$0xff]  }
 0x418   : > { %6485 = vmatpush1.bf16.msra.mxu0 %v8519_v43  ;;  %6078 = vmatprep.subr.bf16.mxu1 %v8524_v62  ;;  %v8616_v43 = vld [vmem:[%s11398_s4 + $0x98c] ss:$16 sps:$4 sm:$0xff]   ;;  %v8611_v62 = vld [vmem:[%s11398_s4 + $0x980] ss:$16 sps:$4 sm:$0xff]  }
 0x419   : > { %6486 = vmatprep.subr.bf16.mxu0 %v8527_v45  ;;  %v8614_v45 = vld [vmem:[%s11398_s4 + $0x988] ss:$16 sps:$4 sm:$0xff]  }
 0x41b   : > { %6079 = vmatpush1.bf16.msra.mxu1 %v8522_v60  ;;  %v8619_v60 = vld [vmem:[%s11398_s4 + $0x9a4] ss:$16 sps:$4 sm:$0xff]  }
 0x41c   : > { %6487 = vmatpush1.bf16.msra.mxu0 %v8525_v0  ;;  %6080 = vmatprep.subr.bf16.mxu1 %v8530_v3  ;;  %v8622_v0 = vld [vmem:[%s11398_s4 + $0x9ac] ss:$16 sps:$4 sm:$0xff]   ;;  %v8617_v3 = vld [vmem:[%s11398_s4 + $0x9a0] ss:$16 sps:$4 sm:$0xff]  }
 0x41d   : > { %6488 = vmatprep.subr.bf16.mxu0 %v8533_v4  ;;  %v8620_v4 = vld [vmem:[%s11398_s4 + $0x9a8] ss:$16 sps:$4 sm:$0xff]  }
 0x41f   : > { %6081 = vmatpush1.bf16.msra.mxu1 %v8528_v5  ;;  %v8625_v5 = vld [vmem:[%s11398_s4 + $0x9c4] ss:$16 sps:$4 sm:$0xff]  }
 0x420   : > { %6489 = vmatpush1.bf16.msra.mxu0 %v8531_v50  ;;  %6101 = vmatprep.subr.bf16.mxu1 %v8536_v6  ;;  %v8628_v50 = vld [vmem:[%s11398_s4 + $0x9cc] ss:$16 sps:$4 sm:$0xff]   ;;  %v8623_v6 = vld [vmem:[%s11398_s4 + $0x9c0] ss:$16 sps:$4 sm:$0xff]  }
 0x421   : > { %6509 = vmatprep.subr.bf16.mxu0 %v8539_v9  ;;  %v8626_v9 = vld [vmem:[%s11398_s4 + $0x9c8] ss:$16 sps:$4 sm:$0xff]  }
 0x422   : > { %6083 = vmatmul.mubr.bf16.vlgmr.msra.gmra.mrb[68].mxu1 %v8453_v8 }
 0x423   : > { %6491 = vmatmul.mubr.bf16.vlgmr.msra.gmra.mrb[40].mxu0 %v8453_v8  ;;  %6092 = vmatprep.mubr.bf16.mxu1 %v7116_v17  ;;  %v8634_v8 = vld [vmem:[%s11398_s4 + $0x9ec] ss:$16 sps:$4 sm:$0xff]  }
 0x424   : > { %6102 = vmatpush1.bf16.msra.mxu1 %v8534_v51  ;;  %6500 = vmatprep.mubr.bf16.mxu0 %v7116_v17  ;;  %v8629_v51 = vld [vmem:[%s11398_s4 + $0x9e0] ss:$16 sps:$4 sm:$0xff]   ;;  %v8637_v17 = vld [vmem:[%s11398_s4 + $0xa04] ss:$16 sps:$4 sm:$0xff]  }
 0x425   : > { %6510 = vmatpush1.bf16.msra.mxu0 %v8537_v12  ;;  %6103 = vmatprep.subr.bf16.mxu1 %v8543_v18  ;;  %v8632_v12 = vld [vmem:[%s11398_s4 + $0x9e8] ss:$16 sps:$4 sm:$0xff]   ;;  %v8640_v18 = vld [vmem:[%s11398_s4 + $0xa0c] ss:$16 sps:$4 sm:$0xff]  }
 0x426   : > { %6511 = vmatprep.subr.bf16.mxu0 %v8546_v19  ;;  %v2884_v19 = vld [vmem:[#allocation2 + $0x98] sm:$0x33] }
 0x428   : > { %6104 = vmatpush1.bf16.msra.mxu1 %v8541_v20  ;;  %v8554_v20 = vld [vmem:[#allocation2 + $0x20] ss:$60 sps:$4 sm:$0xff]  }
 0x429   : > { %6512 = vmatpush1.bf16.msra.mxu0 %v8544_v22  ;;  %6105 = vmatprep.subr.bf16.mxu1 %v8550_v24  ;;  %v8635_v22 = vld [vmem:[%s11398_s4 + $0xa00] ss:$16 sps:$4 sm:$0xff]   ;;  %v8638_v24 = vld [vmem:[%s11398_s4 + $0xa08] ss:$16 sps:$4 sm:$0xff]  }
 0x42a   : > { %6093 = vmatmul.mubr.bf16.gmra.mrb[72].mxu1 %v7115_v26  ;;  %6513 = vmatprep.subr.bf16.mxu0 %v8553_v25  ;;  %v7118_v25 = vcombine.high %v2884_v19, %v2884_v19 }
 0x42b   : > { %6501 = vmatmul.mubr.bf16.gmra.mrb[44].mxu0 %v7115_v26  ;;  %6133 = vmatprep.mubr.bf16.mxu1 %v8556_v41  ;;  %v8644_v26 = vld [vmem:[%s11398_s4 + $0xa24] ss:$16 sps:$4 sm:$0xff]  }
 0x42c   : > { %6106 = vmatpush1.bf16.msra.mxu1 %v8548_v27  ;;  %6541 = vmatprep.mubr.bf16.mxu0 %v8556_v41  ;;  %v8647_v27 = vld [vmem:[%s11398_s4 + $0xa2c] ss:$16 sps:$4 sm:$0xff]   ;;  %v8645_v41 = vld [vmem:[%s11398_s4 + $0xa28] ss:$16 sps:$4 sm:$0xff]  }
 0x42d   : > { %6514 = vmatpush1.bf16.msra.mxu0 %v8551_v29  ;;  %6107 = vmatprep.subr.bf16.mxu1 %v8559_v13  ;;  %v8642_v29 = vld [vmem:[%s11398_s4 + $0xa20] ss:$16 sps:$4 sm:$0xff]   ;;  %v8651_v13 = vld [vmem:[%s11398_s4 + $0xa44] ss:$16 sps:$4 sm:$0xff]  }
 0x42e   : > { %6515 = vmatprep.subr.bf16.mxu0 %v8562_v15  ;;  %v8654_v15 = vld [vmem:[%s11398_s4 + $0xa4c] ss:$16 sps:$4 sm:$0xff]  }
 0x430   : > { %6108 = vmatpush1.bf16.msra.mxu1 %v8557_v30  ;;  %v7117_v30 = vcombine.low %v2884_v19, %v2884_v19  ;;  %v8732_v19 = vld [vmem:[%s11398_s4 + $0xbe4] ss:$16 sps:$4 sm:$0xff]  }
 0x431   : > { %6516 = vmatpush1.bf16.msra.mxu0 %v8560_v49  ;;  %6109 = vmatprep.subr.bf16.mxu1 %v8565_v11  ;;  %v8649_v49 = vld [vmem:[%s11398_s4 + $0xa40] ss:$16 sps:$4 sm:$0xff]   ;;  %v8652_v11 = vld [vmem:[%s11398_s4 + $0xa48] ss:$16 sps:$4 sm:$0xff]  }
 0x432   : > { %6517 = vmatprep.subr.bf16.mxu0 %v8568_v59  ;;  %v8657_v59 = vld [vmem:[#allocation2 + $0x2c] ss:$60 sps:$4 sm:$0xff]  }
 0x434   : > { %6110 = vmatpush1.bf16.msra.mxu1 %v8563_v32  ;;  %v8660_v32 = vld [vmem:[%s11398_s4 + $0xa64] ss:$16 sps:$4 sm:$0xff]  }
 0x435   : > { %6518 = vmatpush1.bf16.msra.mxu0 %v8566_v34  ;;  %6111 = vmatprep.subr.bf16.mxu1 %v8571_v35  ;;  %v8663_v34 = vld [vmem:[%s11398_s4 + $0xa6c] ss:$16 sps:$4 sm:$0xff]   ;;  %v8658_v35 = vld [vmem:[%s11398_s4 + $0xa60] ss:$16 sps:$4 sm:$0xff]  }
 0x436   : > { %6519 = vmatprep.subr.bf16.mxu0 %v8574_v14  ;;  %v8661_v14 = vld [vmem:[%s11398_s4 + $0xa68] ss:$16 sps:$4 sm:$0xff]  }
 0x438   : > { %6112 = vmatpush1.bf16.msra.mxu1 %v8569_v36  ;;  %v8666_v36 = vld [vmem:[%s11398_s4 + $0xa84] ss:$16 sps:$4 sm:$0xff]  }
 0x439   : > { %6520 = vmatpush1.bf16.msra.mxu0 %v8572_v38  ;;  %6113 = vmatprep.subr.bf16.mxu1 %v8577_v39  ;;  %v8669_v38 = vld [vmem:[%s11398_s4 + $0xa8c] ss:$16 sps:$4 sm:$0xff]   ;;  %v8664_v39 = vld [vmem:[%s11398_s4 + $0xa80] ss:$16 sps:$4 sm:$0xff]  }
 0x43a   : > { %6521 = vmatprep.subr.bf16.mxu0 %v8580_v40  ;;  %v8667_v40 = vld [vmem:[%s11398_s4 + $0xa88] ss:$16 sps:$4 sm:$0xff]  }
 0x43c   : > { %6114 = vmatpush1.bf16.msra.mxu1 %v8575_v42  ;;  %v8672_v42 = vld [vmem:[%s11398_s4 + $0xaa4] ss:$16 sps:$4 sm:$0xff]  }
 0x43d   : > { %6522 = vmatpush1.bf16.msra.mxu0 %v8578_v44  ;;  %6115 = vmatprep.subr.bf16.mxu1 %v8583_v46  ;;  %v8675_v44 = vld [vmem:[%s11398_s4 + $0xaac] ss:$16 sps:$4 sm:$0xff]   ;;  %v8670_v46 = vld [vmem:[%s11398_s4 + $0xaa0] ss:$16 sps:$4 sm:$0xff]  }
 0x43e   : > { %6523 = vmatprep.subr.bf16.mxu0 %v8586_v23  ;;  %v8673_v23 = vld [vmem:[%s11398_s4 + $0xaa8] ss:$16 sps:$4 sm:$0xff]  }
 0x440   : > { %6116 = vmatpush1.bf16.msra.mxu1 %v8581_v56  ;;  %v8678_v56 = vld [vmem:[%s11398_s4 + $0xac4] ss:$16 sps:$4 sm:$0xff]  }
 0x441   : > { %6524 = vmatpush1.bf16.msra.mxu0 %v8584_v37  ;;  %6117 = vmatprep.subr.bf16.mxu1 %v8589_v1  ;;  %v8681_v37 = vld [vmem:[%s11398_s4 + $0xacc] ss:$16 sps:$4 sm:$0xff]   ;;  %v8676_v1 = vld [vmem:[%s11398_s4 + $0xac0] ss:$16 sps:$4 sm:$0xff]  }
 0x442   : > { %6525 = vmatprep.subr.bf16.mxu0 %v8592_v21  ;;  %v8679_v21 = vld [vmem:[%s11398_s4 + $0xac8] ss:$16 sps:$4 sm:$0xff]  }
 0x444   : > { %6118 = vmatpush1.bf16.msra.mxu1 %v8587_v33  ;;  %v8684_v33 = vld [vmem:[%s11398_s4 + $0xae4] ss:$16 sps:$4 sm:$0xff]  }
 0x445   : > { %6526 = vmatpush1.bf16.msra.mxu0 %v8590_v54  ;;  %6119 = vmatprep.subr.bf16.mxu1 %v8595_v31  ;;  %v8687_v54 = vld [vmem:[%s11398_s4 + $0xaec] ss:$16 sps:$4 sm:$0xff]   ;;  %v8682_v31 = vld [vmem:[%s11398_s4 + $0xae0] ss:$16 sps:$4 sm:$0xff]  }
 0x446   : > { %6527 = vmatprep.subr.bf16.mxu0 %v8598_v47  ;;  %v8685_v47 = vld [vmem:[%s11398_s4 + $0xae8] ss:$16 sps:$4 sm:$0xff]  }
 0x448   : > { %6120 = vmatpush1.bf16.msra.mxu1 %v8593_v48  ;;  %v8690_v48 = vld [vmem:[%s11398_s4 + $0xb04] ss:$16 sps:$4 sm:$0xff]  }
 0x449   : > { %6528 = vmatpush1.bf16.msra.mxu0 %v8596_v63  ;;  %6121 = vmatprep.subr.bf16.mxu1 %v8601_v52  ;;  %v8693_v63 = vld [vmem:[%s11398_s4 + $0xb0c] ss:$16 sps:$4 sm:$0xff]   ;;  %v8688_v52 = vld [vmem:[%s11398_s4 + $0xb00] ss:$16 sps:$4 sm:$0xff]  }
 0x44a   : > { %6529 = vmatprep.subr.bf16.mxu0 %v8604_v53  ;;  %v8691_v53 = vld [vmem:[%s11398_s4 + $0xb08] ss:$16 sps:$4 sm:$0xff]  }
 0x44c   : > { %6122 = vmatpush1.bf16.msra.mxu1 %v8599_v55  ;;  %v8696_v55 = vld [vmem:[%s11398_s4 + $0xb24] ss:$16 sps:$4 sm:$0xff]  }
 0x44d   : > { %6530 = vmatpush1.bf16.msra.mxu0 %v8602_v16  ;;  %6123 = vmatprep.subr.bf16.mxu1 %v8607_v7  ;;  %v8699_v16 = vld [vmem:[%s11398_s4 + $0xb2c] ss:$16 sps:$4 sm:$0xff]   ;;  %v8694_v7 = vld [vmem:[%s11398_s4 + $0xb20] ss:$16 sps:$4 sm:$0xff]  }
 0x44e   : > { %6531 = vmatprep.subr.bf16.mxu0 %v8610_v57  ;;  %v8697_v57 = vld [vmem:[%s11398_s4 + $0xb28] ss:$16 sps:$4 sm:$0xff]  }
 0x450   : > { %6124 = vmatpush1.bf16.msra.mxu1 %v8605_v28  ;;  %v8702_v28 = vld [vmem:[%s11398_s4 + $0xb44] ss:$16 sps:$4 sm:$0xff]  }
 0x451   : > { %6532 = vmatpush1.bf16.msra.mxu0 %v8608_v58  ;;  %6125 = vmatprep.subr.bf16.mxu1 %v8613_v61  ;;  %v8705_v58 = vld [vmem:[%s11398_s4 + $0xb4c] ss:$16 sps:$4 sm:$0xff]   ;;  %v8700_v61 = vld [vmem:[%s11398_s4 + $0xb40] ss:$16 sps:$4 sm:$0xff]  }
 0x452   : > { %6533 = vmatprep.subr.bf16.mxu0 %v8616_v43  ;;  %v8703_v43 = vld [vmem:[%s11398_s4 + $0xb48] ss:$16 sps:$4 sm:$0xff]  }
 0x454   : > { %6126 = vmatpush1.bf16.msra.mxu1 %v8611_v62  ;;  %v8708_v62 = vld [vmem:[%s11398_s4 + $0xb64] ss:$16 sps:$4 sm:$0xff]  }
 0x455   : > { %6534 = vmatpush1.bf16.msra.mxu0 %v8614_v45  ;;  %6127 = vmatprep.subr.bf16.mxu1 %v8619_v60  ;;  %v8711_v45 = vld [vmem:[%s11398_s4 + $0xb6c] ss:$16 sps:$4 sm:$0xff]   ;;  %v8706_v60 = vld [vmem:[%s11398_s4 + $0xb60] ss:$16 sps:$4 sm:$0xff]  }
 0x456   : > { %6535 = vmatprep.subr.bf16.mxu0 %v8622_v0  ;;  %v8709_v0 = vld [vmem:[%s11398_s4 + $0xb68] ss:$16 sps:$4 sm:$0xff]  }
 0x458   : > { %6128 = vmatpush1.bf16.msra.mxu1 %v8617_v3  ;;  %v8714_v3 = vld [vmem:[%s11398_s4 + $0xb84] ss:$16 sps:$4 sm:$0xff]  }
 0x459   : > { %6536 = vmatpush1.bf16.msra.mxu0 %v8620_v4  ;;  %6129 = vmatprep.subr.bf16.mxu1 %v8625_v5  ;;  %v8717_v4 = vld [vmem:[%s11398_s4 + $0xb8c] ss:$16 sps:$4 sm:$0xff]   ;;  %v8712_v5 = vld [vmem:[%s11398_s4 + $0xb80] ss:$16 sps:$4 sm:$0xff]  }
 0x45a   : > { %6537 = vmatprep.subr.bf16.mxu0 %v8628_v50  ;;  %v8715_v50 = vld [vmem:[%s11398_s4 + $0xb88] ss:$16 sps:$4 sm:$0xff]  }
 0x45c   : > { %6130 = vmatpush1.bf16.msra.mxu1 %v8623_v6  ;;  %v8720_v6 = vld [vmem:[%s11398_s4 + $0xba4] ss:$16 sps:$4 sm:$0xff]  }
 0x45d   : > { %6538 = vmatpush1.bf16.msra.mxu0 %v8626_v9  ;;  %6131 = vmatprep.subr.bf16.mxu1 %v8631_v10  ;;  %v8723_v9 = vld [vmem:[%s11398_s4 + $0xbac] ss:$16 sps:$4 sm:$0xff]   ;;  %v8718_v10 = vld [vmem:[%s11398_s4 + $0xba0] ss:$16 sps:$4 sm:$0xff]  }
 0x45e   : > { %6539 = vmatprep.subr.bf16.mxu0 %v8634_v8  ;;  %v8721_v8 = vld [vmem:[%s11398_s4 + $0xba8] ss:$16 sps:$4 sm:$0xff]  }
 0x460   : > { %6132 = vmatpush1.bf16.msra.mxu1 %v8629_v51  ;;  %v8726_v51 = vld [vmem:[%s11398_s4 + $0xbc4] ss:$16 sps:$4 sm:$0xff]  }
 0x461   : > { %6540 = vmatpush1.bf16.msra.mxu0 %v8632_v12  ;;  %6152 = vmatprep.subr.bf16.mxu1 %v8637_v17  ;;  %v8729_v12 = vld [vmem:[%s11398_s4 + $0xbcc] ss:$16 sps:$4 sm:$0xff]   ;;  %v8724_v17 = vld [vmem:[%s11398_s4 + $0xbc0] ss:$16 sps:$4 sm:$0xff]  }
 0x462   : > { %6560 = vmatprep.subr.bf16.mxu0 %v8640_v18  ;;  %v8727_v18 = vld [vmem:[%s11398_s4 + $0xbc8] ss:$16 sps:$4 sm:$0xff]  }
 0x463   : > { %6134 = vmatmul.mubr.bf16.vlgmr.msra.gmra.mrb[68].mxu1 %v8554_v20 }
 0x464   : > { %6542 = vmatmul.mubr.bf16.vlgmr.msra.gmra.mrb[40].mxu0 %v8554_v20  ;;  %6143 = vmatprep.mubr.bf16.mxu1 %v7118_v25  ;;  %v8735_v20 = vld [vmem:[%s11398_s4 + $0xbec] ss:$16 sps:$4 sm:$0xff]  }
 0x465   : > { %6153 = vmatpush1.bf16.msra.mxu1 %v8635_v22  ;;  %6551 = vmatprep.mubr.bf16.mxu0 %v7118_v25  ;;  %v8730_v22 = vld [vmem:[%s11398_s4 + $0xbe0] ss:$16 sps:$4 sm:$0xff]   ;;  %v8738_v25 = vld [vmem:[%s11398_s4 + $0xc04] ss:$16 sps:$4 sm:$0xff]  }
 0x466   : > { %6561 = vmatpush1.bf16.msra.mxu0 %v8638_v24  ;;  %6154 = vmatprep.subr.bf16.mxu1 %v8644_v26  ;;  %v8733_v24 = vld [vmem:[%s11398_s4 + $0xbe8] ss:$16 sps:$4 sm:$0xff]   ;;  %v8741_v26 = vld [vmem:[%s11398_s4 + $0xc0c] ss:$16 sps:$4 sm:$0xff]  }
 0x467   : > { %6562 = vmatprep.subr.bf16.mxu0 %v8647_v27  ;;  %v2885_v27 = vld [vmem:[#allocation2 + $0xa0] sm:$0x33] }
 0x469   : > { %6155 = vmatpush1.bf16.msra.mxu1 %v8642_v29  ;;  %v8655_v29 = vld [vmem:[#allocation2 + $0x28] ss:$60 sps:$4 sm:$0xff]  }
 0x46a   : > { %6563 = vmatpush1.bf16.msra.mxu0 %v8645_v41  ;;  %6156 = vmatprep.subr.bf16.mxu1 %v8651_v13  ;;  %v8736_v41 = vld [vmem:[%s11398_s4 + $0xc00] ss:$16 sps:$4 sm:$0xff]   ;;  %v8739_v13 = vld [vmem:[%s11398_s4 + $0xc08] ss:$16 sps:$4 sm:$0xff]  }
 0x46b   : > { %6144 = vmatmul.mubr.bf16.gmra.mrb[72].mxu1 %v7117_v30  ;;  %6564 = vmatprep.subr.bf16.mxu0 %v8654_v15  ;;  %v7120_v15 = vcombine.high %v2885_v27, %v2885_v27 }
 0x46c   : > { %6552 = vmatmul.mubr.bf16.gmra.mrb[44].mxu0 %v7117_v30  ;;  %6184 = vmatprep.mubr.bf16.mxu1 %v8657_v59  ;;  %v8745_v30 = vld [vmem:[%s11398_s4 + $0xc24] ss:$16 sps:$4 sm:$0xff]  }
 0x46d   : > { %6157 = vmatpush1.bf16.msra.mxu1 %v8649_v49  ;;  %6592 = vmatprep.mubr.bf16.mxu0 %v8657_v59  ;;  %v8748_v49 = vld [vmem:[%s11398_s4 + $0xc2c] ss:$16 sps:$4 sm:$0xff]   ;;  %v8746_v59 = vld [vmem:[%s11398_s4 + $0xc28] ss:$16 sps:$4 sm:$0xff]  }
 0x46e   : > { %6565 = vmatpush1.bf16.msra.mxu0 %v8652_v11  ;;  %6158 = vmatprep.subr.bf16.mxu1 %v8660_v32  ;;  %v8743_v11 = vld [vmem:[%s11398_s4 + $0xc20] ss:$16 sps:$4 sm:$0xff]   ;;  %v8752_v32 = vld [vmem:[%s11398_s4 + $0xc44] ss:$16 sps:$4 sm:$0xff]  }
 0x46f   : > { %6566 = vmatprep.subr.bf16.mxu0 %v8663_v34  ;;  %v8755_v34 = vld [vmem:[%s11398_s4 + $0xc4c] ss:$16 sps:$4 sm:$0xff]  }
 0x471   : > { %6159 = vmatpush1.bf16.msra.mxu1 %v8658_v35  ;;  %v7119_v35 = vcombine.low %v2885_v27, %v2885_v27  ;;  %v8833_v27 = vld [vmem:[%s11398_s4 + $0xde4] ss:$16 sps:$4 sm:$0xff]  }
 0x472   : > { %6567 = vmatpush1.bf16.msra.mxu0 %v8661_v14  ;;  %6160 = vmatprep.subr.bf16.mxu1 %v8666_v36  ;;  %v8750_v14 = vld [vmem:[%s11398_s4 + $0xc40] ss:$16 sps:$4 sm:$0xff]   ;;  %v8753_v36 = vld [vmem:[%s11398_s4 + $0xc48] ss:$16 sps:$4 sm:$0xff]  }
 0x473   : > { %6568 = vmatprep.subr.bf16.mxu0 %v8669_v38  ;;  %v8758_v38 = vld [vmem:[#allocation2 + $0x34] ss:$60 sps:$4 sm:$0xff]  }
 0x475   : > { %6161 = vmatpush1.bf16.msra.mxu1 %v8664_v39  ;;  %v8761_v39 = vld [vmem:[%s11398_s4 + $0xc64] ss:$16 sps:$4 sm:$0xff]  }
 0x476   : > { %6569 = vmatpush1.bf16.msra.mxu0 %v8667_v40  ;;  %6162 = vmatprep.subr.bf16.mxu1 %v8672_v42  ;;  %v8764_v40 = vld [vmem:[%s11398_s4 + $0xc6c] ss:$16 sps:$4 sm:$0xff]   ;;  %v8759_v42 = vld [vmem:[%s11398_s4 + $0xc60] ss:$16 sps:$4 sm:$0xff]  }
 0x477   : > { %6570 = vmatprep.subr.bf16.mxu0 %v8675_v44  ;;  %v8762_v44 = vld [vmem:[%s11398_s4 + $0xc68] ss:$16 sps:$4 sm:$0xff]  }
 0x479   : > { %6163 = vmatpush1.bf16.msra.mxu1 %v8670_v46  ;;  %v8767_v46 = vld [vmem:[%s11398_s4 + $0xc84] ss:$16 sps:$4 sm:$0xff]  }
 0x47a   : > { %6571 = vmatpush1.bf16.msra.mxu0 %v8673_v23  ;;  %6164 = vmatprep.subr.bf16.mxu1 %v8678_v56  ;;  %v8770_v23 = vld [vmem:[%s11398_s4 + $0xc8c] ss:$16 sps:$4 sm:$0xff]   ;;  %v8765_v56 = vld [vmem:[%s11398_s4 + $0xc80] ss:$16 sps:$4 sm:$0xff]  }
 0x47b   : > { %6572 = vmatprep.subr.bf16.mxu0 %v8681_v37  ;;  %v8768_v37 = vld [vmem:[%s11398_s4 + $0xc88] ss:$16 sps:$4 sm:$0xff]  }
 0x47d   : > { %6165 = vmatpush1.bf16.msra.mxu1 %v8676_v1  ;;  %v8773_v1 = vld [vmem:[%s11398_s4 + $0xca4] ss:$16 sps:$4 sm:$0xff]  }
 0x47e   : > { %6573 = vmatpush1.bf16.msra.mxu0 %v8679_v21  ;;  %6166 = vmatprep.subr.bf16.mxu1 %v8684_v33  ;;  %v8776_v21 = vld [vmem:[%s11398_s4 + $0xcac] ss:$16 sps:$4 sm:$0xff]   ;;  %v8771_v33 = vld [vmem:[%s11398_s4 + $0xca0] ss:$16 sps:$4 sm:$0xff]  }
 0x47f   : > { %6574 = vmatprep.subr.bf16.mxu0 %v8687_v54  ;;  %v8774_v54 = vld [vmem:[%s11398_s4 + $0xca8] ss:$16 sps:$4 sm:$0xff]  }
 0x481   : > { %6167 = vmatpush1.bf16.msra.mxu1 %v8682_v31  ;;  %v8779_v31 = vld [vmem:[%s11398_s4 + $0xcc4] ss:$16 sps:$4 sm:$0xff]  }
 0x482   : > { %6575 = vmatpush1.bf16.msra.mxu0 %v8685_v47  ;;  %6168 = vmatprep.subr.bf16.mxu1 %v8690_v48  ;;  %v8782_v47 = vld [vmem:[%s11398_s4 + $0xccc] ss:$16 sps:$4 sm:$0xff]   ;;  %v8777_v48 = vld [vmem:[%s11398_s4 + $0xcc0] ss:$16 sps:$4 sm:$0xff]  }
 0x483   : > { %6576 = vmatprep.subr.bf16.mxu0 %v8693_v63  ;;  %v8780_v63 = vld [vmem:[%s11398_s4 + $0xcc8] ss:$16 sps:$4 sm:$0xff]  }
 0x485   : > { %6169 = vmatpush1.bf16.msra.mxu1 %v8688_v52  ;;  %v8785_v52 = vld [vmem:[%s11398_s4 + $0xce4] ss:$16 sps:$4 sm:$0xff]  }
 0x486   : > { %6577 = vmatpush1.bf16.msra.mxu0 %v8691_v53  ;;  %6170 = vmatprep.subr.bf16.mxu1 %v8696_v55  ;;  %v8788_v53 = vld [vmem:[%s11398_s4 + $0xcec] ss:$16 sps:$4 sm:$0xff]   ;;  %v8783_v55 = vld [vmem:[%s11398_s4 + $0xce0] ss:$16 sps:$4 sm:$0xff]  }
 0x487   : > { %6578 = vmatprep.subr.bf16.mxu0 %v8699_v16  ;;  %v8786_v16 = vld [vmem:[%s11398_s4 + $0xce8] ss:$16 sps:$4 sm:$0xff]  }
 0x489   : > { %6171 = vmatpush1.bf16.msra.mxu1 %v8694_v7  ;;  %v8791_v7 = vld [vmem:[%s11398_s4 + $0xd04] ss:$16 sps:$4 sm:$0xff]  }
 0x48a   : > { %6579 = vmatpush1.bf16.msra.mxu0 %v8697_v57  ;;  %6172 = vmatprep.subr.bf16.mxu1 %v8702_v28  ;;  %v8794_v57 = vld [vmem:[%s11398_s4 + $0xd0c] ss:$16 sps:$4 sm:$0xff]   ;;  %v8789_v28 = vld [vmem:[%s11398_s4 + $0xd00] ss:$16 sps:$4 sm:$0xff]  }
 0x48b   : > { %6580 = vmatprep.subr.bf16.mxu0 %v8705_v58  ;;  %v8792_v58 = vld [vmem:[%s11398_s4 + $0xd08] ss:$16 sps:$4 sm:$0xff]  }
 0x48d   : > { %6173 = vmatpush1.bf16.msra.mxu1 %v8700_v61  ;;  %v8797_v61 = vld [vmem:[%s11398_s4 + $0xd24] ss:$16 sps:$4 sm:$0xff]  }
 0x48e   : > { %6581 = vmatpush1.bf16.msra.mxu0 %v8703_v43  ;;  %6174 = vmatprep.subr.bf16.mxu1 %v8708_v62  ;;  %v8800_v43 = vld [vmem:[%s11398_s4 + $0xd2c] ss:$16 sps:$4 sm:$0xff]   ;;  %v8795_v62 = vld [vmem:[%s11398_s4 + $0xd20] ss:$16 sps:$4 sm:$0xff]  }
 0x48f   : > { %6582 = vmatprep.subr.bf16.mxu0 %v8711_v45  ;;  %v8798_v45 = vld [vmem:[%s11398_s4 + $0xd28] ss:$16 sps:$4 sm:$0xff]  }
 0x491   : > { %6175 = vmatpush1.bf16.msra.mxu1 %v8706_v60  ;;  %v8803_v60 = vld [vmem:[%s11398_s4 + $0xd44] ss:$16 sps:$4 sm:$0xff]  }
 0x492   : > { %6583 = vmatpush1.bf16.msra.mxu0 %v8709_v0  ;;  %6176 = vmatprep.subr.bf16.mxu1 %v8714_v3  ;;  %v8806_v0 = vld [vmem:[%s11398_s4 + $0xd4c] ss:$16 sps:$4 sm:$0xff]   ;;  %v8801_v3 = vld [vmem:[%s11398_s4 + $0xd40] ss:$16 sps:$4 sm:$0xff]  }
 0x493   : > { %6584 = vmatprep.subr.bf16.mxu0 %v8717_v4  ;;  %v8804_v4 = vld [vmem:[%s11398_s4 + $0xd48] ss:$16 sps:$4 sm:$0xff]  }
 0x495   : > { %6177 = vmatpush1.bf16.msra.mxu1 %v8712_v5  ;;  %v8809_v5 = vld [vmem:[%s11398_s4 + $0xd64] ss:$16 sps:$4 sm:$0xff]  }
 0x496   : > { %6585 = vmatpush1.bf16.msra.mxu0 %v8715_v50  ;;  %6178 = vmatprep.subr.bf16.mxu1 %v8720_v6  ;;  %v8812_v50 = vld [vmem:[%s11398_s4 + $0xd6c] ss:$16 sps:$4 sm:$0xff]   ;;  %v8807_v6 = vld [vmem:[%s11398_s4 + $0xd60] ss:$16 sps:$4 sm:$0xff]  }
 0x497   : > { %6586 = vmatprep.subr.bf16.mxu0 %v8723_v9  ;;  %v8810_v9 = vld [vmem:[%s11398_s4 + $0xd68] ss:$16 sps:$4 sm:$0xff]  }
 0x499   : > { %6179 = vmatpush1.bf16.msra.mxu1 %v8718_v10  ;;  %v8815_v10 = vld [vmem:[%s11398_s4 + $0xd84] ss:$16 sps:$4 sm:$0xff]  }
 0x49a   : > { %6587 = vmatpush1.bf16.msra.mxu0 %v8721_v8  ;;  %6180 = vmatprep.subr.bf16.mxu1 %v8726_v51  ;;  %v8818_v8 = vld [vmem:[%s11398_s4 + $0xd8c] ss:$16 sps:$4 sm:$0xff]   ;;  %v8813_v51 = vld [vmem:[%s11398_s4 + $0xd80] ss:$16 sps:$4 sm:$0xff]  }
 0x49b   : > { %6588 = vmatprep.subr.bf16.mxu0 %v8729_v12  ;;  %v8816_v12 = vld [vmem:[%s11398_s4 + $0xd88] ss:$16 sps:$4 sm:$0xff]  }
 0x49d   : > { %6181 = vmatpush1.bf16.msra.mxu1 %v8724_v17  ;;  %v8821_v17 = vld [vmem:[%s11398_s4 + $0xda4] ss:$16 sps:$4 sm:$0xff]  }
 0x49e   : > { %6589 = vmatpush1.bf16.msra.mxu0 %v8727_v18  ;;  %6182 = vmatprep.subr.bf16.mxu1 %v8732_v19  ;;  %v8824_v18 = vld [vmem:[%s11398_s4 + $0xdac] ss:$16 sps:$4 sm:$0xff]   ;;  %v8819_v19 = vld [vmem:[%s11398_s4 + $0xda0] ss:$16 sps:$4 sm:$0xff]  }
 0x49f   : > { %6590 = vmatprep.subr.bf16.mxu0 %v8735_v20  ;;  %v8822_v20 = vld [vmem:[%s11398_s4 + $0xda8] ss:$16 sps:$4 sm:$0xff]  }
 0x4a1   : > { %6183 = vmatpush1.bf16.msra.mxu1 %v8730_v22  ;;  %v8827_v22 = vld [vmem:[%s11398_s4 + $0xdc4] ss:$16 sps:$4 sm:$0xff]  }
 0x4a2   : > { %6591 = vmatpush1.bf16.msra.mxu0 %v8733_v24  ;;  %6203 = vmatprep.subr.bf16.mxu1 %v8738_v25  ;;  %v8830_v24 = vld [vmem:[%s11398_s4 + $0xdcc] ss:$16 sps:$4 sm:$0xff]   ;;  %v8825_v25 = vld [vmem:[%s11398_s4 + $0xdc0] ss:$16 sps:$4 sm:$0xff]  }
 0x4a3   : > { %6611 = vmatprep.subr.bf16.mxu0 %v8741_v26  ;;  %v8828_v26 = vld [vmem:[%s11398_s4 + $0xdc8] ss:$16 sps:$4 sm:$0xff]  }
 0x4a4   : > { %6185 = vmatmul.mubr.bf16.vlgmr.msra.gmra.mrb[68].mxu1 %v8655_v29 }
 0x4a5   : > { %6593 = vmatmul.mubr.bf16.vlgmr.msra.gmra.mrb[40].mxu0 %v8655_v29  ;;  %6194 = vmatprep.mubr.bf16.mxu1 %v7120_v15  ;;  %v8836_v29 = vld [vmem:[%s11398_s4 + $0xdec] ss:$16 sps:$4 sm:$0xff]  }
 0x4a6   : > { %6204 = vmatpush1.bf16.msra.mxu1 %v8736_v41  ;;  %6602 = vmatprep.mubr.bf16.mxu0 %v7120_v15  ;;  %v8831_v41 = vld [vmem:[%s11398_s4 + $0xde0] ss:$16 sps:$4 sm:$0xff]   ;;  %v8839_v15 = vld [vmem:[%s11398_s4 + $0xe04] ss:$16 sps:$4 sm:$0xff]  }
 0x4a7   : > { %6612 = vmatpush1.bf16.msra.mxu0 %v8739_v13  ;;  %6205 = vmatprep.subr.bf16.mxu1 %v8745_v30  ;;  %v8834_v13 = vld [vmem:[%s11398_s4 + $0xde8] ss:$16 sps:$4 sm:$0xff]   ;;  %v8842_v30 = vld [vmem:[%s11398_s4 + $0xe0c] ss:$16 sps:$4 sm:$0xff]  }
 0x4a8   : > { %6613 = vmatprep.subr.bf16.mxu0 %v8748_v49  ;;  %v2886_v49 = vld [vmem:[#allocation2 + $0xa8] sm:$0x33] }
 0x4aa   : > { %6206 = vmatpush1.bf16.msra.mxu1 %v8743_v11  ;;  %v8756_v11 = vld [vmem:[#allocation2 + $0x30] ss:$60 sps:$4 sm:$0xff]  }
 0x4ab   : > { %6614 = vmatpush1.bf16.msra.mxu0 %v8746_v59  ;;  %6207 = vmatprep.subr.bf16.mxu1 %v8752_v32  ;;  %v8837_v59 = vld [vmem:[%s11398_s4 + $0xe00] ss:$16 sps:$4 sm:$0xff]   ;;  %v8840_v32 = vld [vmem:[%s11398_s4 + $0xe08] ss:$16 sps:$4 sm:$0xff]  }
 0x4ac   : > { %6195 = vmatmul.mubr.bf16.gmra.mrb[72].mxu1 %v7119_v35  ;;  %6615 = vmatprep.subr.bf16.mxu0 %v8755_v34  ;;  %v7122_v34 = vcombine.high %v2886_v49, %v2886_v49 }
 0x4ad   : > { %6603 = vmatmul.mubr.bf16.gmra.mrb[44].mxu0 %v7119_v35  ;;  %6235 = vmatprep.mubr.bf16.mxu1 %v8758_v38  ;;  %v8846_v35 = vld [vmem:[%s11398_s4 + $0xe24] ss:$16 sps:$4 sm:$0xff]  }
 0x4ae   : > { %6208 = vmatpush1.bf16.msra.mxu1 %v8750_v14  ;;  %6643 = vmatprep.mubr.bf16.mxu0 %v8758_v38  ;;  %v8849_v14 = vld [vmem:[%s11398_s4 + $0xe2c] ss:$16 sps:$4 sm:$0xff]   ;;  %v8847_v38 = vld [vmem:[%s11398_s4 + $0xe28] ss:$16 sps:$4 sm:$0xff]  }
 0x4af   : > { %6616 = vmatpush1.bf16.msra.mxu0 %v8753_v36  ;;  %6209 = vmatprep.subr.bf16.mxu1 %v8761_v39  ;;  %v8844_v36 = vld [vmem:[%s11398_s4 + $0xe20] ss:$16 sps:$4 sm:$0xff]   ;;  %v8853_v39 = vld [vmem:[%s11398_s4 + $0xe44] ss:$16 sps:$4 sm:$0xff]  }
 0x4b0   : > { %6617 = vmatprep.subr.bf16.mxu0 %v8764_v40  ;;  %v8856_v40 = vld [vmem:[%s11398_s4 + $0xe4c] ss:$16 sps:$4 sm:$0xff]  }
 0x4b2   : > { %6210 = vmatpush1.bf16.msra.mxu1 %v8759_v42  ;;  %v7121_v42 = vcombine.low %v2886_v49, %v2886_v49 }
 0x4b3   : > { %6618 = vmatpush1.bf16.msra.mxu0 %v8762_v44  ;;  %6211 = vmatprep.subr.bf16.mxu1 %v8767_v46  ;;  %v8851_v44 = vld [vmem:[%s11398_s4 + $0xe40] ss:$16 sps:$4 sm:$0xff]   ;;  %v8854_v46 = vld [vmem:[%s11398_s4 + $0xe48] ss:$16 sps:$4 sm:$0xff]  }
 0x4b4   : > { %6619 = vmatprep.subr.bf16.mxu0 %v8770_v23  ;;  %v8859_v23 = vld [vmem:[%s11398_s4 + $0xe64] ss:$16 sps:$4 sm:$0xff]  }
 0x4b6   : > { %6212 = vmatpush1.bf16.msra.mxu1 %v8765_v56  ;;  %v8862_v56 = vld [vmem:[%s11398_s4 + $0xe6c] ss:$16 sps:$4 sm:$0xff]  }
 0x4b7   : > { %6620 = vmatpush1.bf16.msra.mxu0 %v8768_v37  ;;  %6213 = vmatprep.subr.bf16.mxu1 %v8773_v1  ;;  %v8857_v37 = vld [vmem:[%s11398_s4 + $0xe60] ss:$16 sps:$4 sm:$0xff]   ;;  %v8860_v1 = vld [vmem:[%s11398_s4 + $0xe68] ss:$16 sps:$4 sm:$0xff]  }
 0x4b8   : > { %6621 = vmatprep.subr.bf16.mxu0 %v8776_v21  ;;  %v8865_v21 = vld [vmem:[%s11398_s4 + $0xe84] ss:$16 sps:$4 sm:$0xff]  }
 0x4ba   : > { %6214 = vmatpush1.bf16.msra.mxu1 %v8771_v33  ;;  %v8868_v33 = vld [vmem:[%s11398_s4 + $0xe8c] ss:$16 sps:$4 sm:$0xff]  }
 0x4bb   : > { %6622 = vmatpush1.bf16.msra.mxu0 %v8774_v54  ;;  %6215 = vmatprep.subr.bf16.mxu1 %v8779_v31  ;;  %v8863_v54 = vld [vmem:[%s11398_s4 + $0xe80] ss:$16 sps:$4 sm:$0xff]   ;;  %v8866_v31 = vld [vmem:[%s11398_s4 + $0xe88] ss:$16 sps:$4 sm:$0xff]  }
 0x4bc   : > { %6623 = vmatprep.subr.bf16.mxu0 %v8782_v47  ;;  %v8871_v47 = vld [vmem:[%s11398_s4 + $0xea4] ss:$16 sps:$4 sm:$0xff]  }
 0x4be   : > { %6216 = vmatpush1.bf16.msra.mxu1 %v8777_v48  ;;  %v8874_v48 = vld [vmem:[%s11398_s4 + $0xeac] ss:$16 sps:$4 sm:$0xff]  }
 0x4bf   : > { %6624 = vmatpush1.bf16.msra.mxu0 %v8780_v63  ;;  %6217 = vmatprep.subr.bf16.mxu1 %v8785_v52  ;;  %v8869_v63 = vld [vmem:[%s11398_s4 + $0xea0] ss:$16 sps:$4 sm:$0xff]   ;;  %v8872_v52 = vld [vmem:[%s11398_s4 + $0xea8] ss:$16 sps:$4 sm:$0xff]  }
 0x4c0   : > { %6625 = vmatprep.subr.bf16.mxu0 %v8788_v53  ;;  %v8877_v53 = vld [vmem:[%s11398_s4 + $0xec4] ss:$16 sps:$4 sm:$0xff]  }
 0x4c2   : > { %6218 = vmatpush1.bf16.msra.mxu1 %v8783_v55  ;;  %v8880_v55 = vld [vmem:[%s11398_s4 + $0xecc] ss:$16 sps:$4 sm:$0xff]  }
 0x4c3   : > { %6626 = vmatpush1.bf16.msra.mxu0 %v8786_v16  ;;  %6219 = vmatprep.subr.bf16.mxu1 %v8791_v7  ;;  %v8875_v16 = vld [vmem:[%s11398_s4 + $0xec0] ss:$16 sps:$4 sm:$0xff]   ;;  %v8878_v7 = vld [vmem:[%s11398_s4 + $0xec8] ss:$16 sps:$4 sm:$0xff]  }
 0x4c4   : > { %6627 = vmatprep.subr.bf16.mxu0 %v8794_v57  ;;  %v8883_v57 = vld [vmem:[%s11398_s4 + $0xee4] ss:$16 sps:$4 sm:$0xff]  }
 0x4c6   : > { %6220 = vmatpush1.bf16.msra.mxu1 %v8789_v28  ;;  %v8886_v28 = vld [vmem:[%s11398_s4 + $0xeec] ss:$16 sps:$4 sm:$0xff]  }
 0x4c7   : > { %6628 = vmatpush1.bf16.msra.mxu0 %v8792_v58  ;;  %6221 = vmatprep.subr.bf16.mxu1 %v8797_v61  ;;  %v8881_v58 = vld [vmem:[%s11398_s4 + $0xee0] ss:$16 sps:$4 sm:$0xff]   ;;  %v8884_v61 = vld [vmem:[%s11398_s4 + $0xee8] ss:$16 sps:$4 sm:$0xff]  }
 0x4c8   : > { %6629 = vmatprep.subr.bf16.mxu0 %v8800_v43  ;;  %v8887_v43 = vld [vmem:[#allocation2 + $0x38] ss:$60 sps:$4 sm:$0xff]  }
 0x4ca   : > { %6222 = vmatpush1.bf16.msra.mxu1 %v8795_v62  ;;  %v8888_v62 = vld [vmem:[#allocation2 + $0xb0] ss:$0 sps:$4 sm:$0x33]  }
 0x4cb   : > { %6630 = vmatpush1.bf16.msra.mxu0 %v8798_v45  ;;  %6223 = vmatprep.subr.bf16.mxu1 %v8803_v60 }
 0x4cc   : > { %6631 = vmatprep.subr.bf16.mxu0 %v8806_v0 }
 0x4ce   : > { %6224 = vmatpush1.bf16.msra.mxu1 %v8801_v3 }
 0x4cf   : > { %6632 = vmatpush1.bf16.msra.mxu0 %v8804_v4  ;;  %6225 = vmatprep.subr.bf16.mxu1 %v8809_v5 }
 0x4d0   : > { %6633 = vmatprep.subr.bf16.mxu0 %v8812_v50 }
 0x4d2   : > { %6226 = vmatpush1.bf16.msra.mxu1 %v8807_v6 }
 0x4d3   : > { %6634 = vmatpush1.bf16.msra.mxu0 %v8810_v9  ;;  %6227 = vmatprep.subr.bf16.mxu1 %v8815_v10 }
 0x4d4   : > { %6635 = vmatprep.subr.bf16.mxu0 %v8818_v8 }
 0x4d6   : > { %6228 = vmatpush1.bf16.msra.mxu1 %v8813_v51 }
 0x4d7   : > { %6636 = vmatpush1.bf16.msra.mxu0 %v8816_v12  ;;  %6229 = vmatprep.subr.bf16.mxu1 %v8821_v17 }
 0x4d8   : > { %6637 = vmatprep.subr.bf16.mxu0 %v8824_v18 }
 0x4da   : > { %6230 = vmatpush1.bf16.msra.mxu1 %v8819_v19 }
 0x4db   : > { %6638 = vmatpush1.bf16.msra.mxu0 %v8822_v20  ;;  %6231 = vmatprep.subr.bf16.mxu1 %v8827_v22 }
 0x4dc   : > { %6639 = vmatprep.subr.bf16.mxu0 %v8830_v24 }
 0x4de   : > { %6232 = vmatpush1.bf16.msra.mxu1 %v8825_v25 }
 0x4df   : > { %6640 = vmatpush1.bf16.msra.mxu0 %v8828_v26  ;;  %6233 = vmatprep.subr.bf16.mxu1 %v8833_v27 }
 0x4e0   : > { %6641 = vmatprep.subr.bf16.mxu0 %v8836_v29 }
 0x4e2   : > { %6234 = vmatpush1.bf16.msra.mxu1 %v8831_v41 }
 0x4e3   : > { %6642 = vmatpush1.bf16.msra.mxu0 %v8834_v13  ;;  %6254 = vmatprep.subr.bf16.mxu1 %v8839_v15 }
 0x4e4   : > { %6662 = vmatprep.subr.bf16.mxu0 %v8842_v30 }
 0x4e5   : > { %6236 = vmatmul.mubr.bf16.vlgmr.msra.gmra.mrb[68].mxu1 %v8756_v11 }
 0x4e6   : > { %6644 = vmatmul.mubr.bf16.vlgmr.msra.gmra.mrb[40].mxu0 %v8756_v11  ;;  %6245 = vmatprep.mubr.bf16.mxu1 %v7122_v34 }
 0x4e7   : > { %6255 = vmatpush1.bf16.msra.mxu1 %v8837_v59  ;;  %6653 = vmatprep.mubr.bf16.mxu0 %v7122_v34 }
 0x4e8   : > { %6663 = vmatpush1.bf16.msra.mxu0 %v8840_v32  ;;  %6256 = vmatprep.subr.bf16.mxu1 %v8846_v35 }
 0x4e9   : > { %6664 = vmatprep.subr.bf16.mxu0 %v8849_v14 }
 0x4eb   : > { %6257 = vmatpush1.bf16.msra.mxu1 %v8844_v36 }
 0x4ec   : > { %6665 = vmatpush1.bf16.msra.mxu0 %v8847_v38  ;;  %6258 = vmatprep.subr.bf16.mxu1 %v8853_v39 }
 0x4ed   : > { %6246 = vmatmul.mubr.bf16.gmra.mrb[72].mxu1 %v7121_v42  ;;  %6666 = vmatprep.subr.bf16.mxu0 %v8856_v40 }
 0x4ee   : > { %6654 = vmatmul.mubr.bf16.gmra.mrb[44].mxu0 %v7121_v42  ;;  %6286 = vmatprep.mubr.bf16.mxu1 %v8897_v2 }
 0x4ef   : > { %6259 = vmatpush1.bf16.msra.mxu1 %v8851_v44  ;;  %6694 = vmatprep.mubr.bf16.mxu0 %v8897_v2 }
 0x4f0   : > { %6667 = vmatpush1.bf16.msra.mxu0 %v8854_v46  ;;  %6260 = vmatprep.subr.bf16.mxu1 %v8859_v23 }
 0x4f1   : > { %6668 = vmatprep.subr.bf16.mxu0 %v8862_v56 }
 0x4f3   : > { %6261 = vmatpush1.bf16.msra.mxu1 %v8857_v37 }
 0x4f4   : > { %6669 = vmatpush1.bf16.msra.mxu0 %v8860_v1  ;;  %6262 = vmatprep.subr.bf16.mxu1 %v8865_v21 }
 0x4f5   : > { %6670 = vmatprep.subr.bf16.mxu0 %v8868_v33 }
 0x4f7   : > { %6263 = vmatpush1.bf16.msra.mxu1 %v8863_v54 }
 0x4f8   : > { %6671 = vmatpush1.bf16.msra.mxu0 %v8866_v31  ;;  %6264 = vmatprep.subr.bf16.mxu1 %v8871_v47 }
 0x4f9   : > { %6672 = vmatprep.subr.bf16.mxu0 %v8874_v48 }
 0x4fb   : > { %6265 = vmatpush1.bf16.msra.mxu1 %v8869_v63 }
 0x4fc   : > { %6673 = vmatpush1.bf16.msra.mxu0 %v8872_v52  ;;  %6266 = vmatprep.subr.bf16.mxu1 %v8877_v53 }
 0x4fd   : > { %6674 = vmatprep.subr.bf16.mxu0 %v8880_v55 }
 0x4ff   : > { %6267 = vmatpush1.bf16.msra.mxu1 %v8875_v16 }
 0x500   : > { %6675 = vmatpush1.bf16.msra.mxu0 %v8878_v7  ;;  %6268 = vmatprep.subr.bf16.mxu1 %v8883_v57 }
 0x501   : > { %6676 = vmatprep.subr.bf16.mxu0 %v8886_v28 }
 0x503   : > { %6269 = vmatpush1.bf16.msra.mxu1 %v8881_v58 }
 0x504   : > { %6677 = vmatpush1.bf16.msra.mxu0 %v8884_v61 }
 0x506   : > { %6287 = vmatmul.mubr.bf16.vlgmr.msra.gmra.mrb[68].mxu1 %v8887_v43 }
 0x507   : > { %6695 = vmatmul.mubr.bf16.vlgmr.msra.gmra.mrb[40].mxu0 %v8887_v43  ;;  %6296 = vmatprep.mubr.bf16.mxu1 %v8897_v2 }
 0x508   : > { %6704 = vmatprep.mubr.bf16.mxu0 %v8897_v2 }
 0x50e   : > { %6297 = vmatmul.mubr.bf16.gmra.mrb[72].mxu1 %v8888_v62 }
 0x50f   : > { %6705 = vmatmul.mubr.bf16.gmra.mrb[44].mxu0 %v8888_v62 }
 0x5d9   : > { %v6288_v45 = vpop.f32.mrb[68].mxu1 }
 0x5da   : > { %6713 = vst [vmem:[%s264_s26] sm:$0xff] %v6288_v45  ;;  %v6696_v60 = vpop.f32.mrb[40].mxu0  ;;  %v6290_v0 = vpop.f32.mrb[69].mxu1 }
 0x5db   : > { %6715 = vst [vmem:[%s264_s26 + $0x10] sm:$0xff] %v6696_v60  ;;  %6714 = vst [vmem:[%s264_s26 + $0x8] sm:$0xff] %v6290_v0  ;;  %v6698_v3 = vpop.f32.mrb[41].mxu0  ;;  %v6292_v4 = vpop.f32.mrb[70].mxu1 }
 0x5dc   : > { %6716 = vst [vmem:[%s264_s26 + $0x18] sm:$0xff] %v6698_v3  ;;  %6717 = vst [vmem:[%s264_s26 + $0x20] sm:$0xff] %v6292_v4  ;;  %v6700_v5 = vpop.f32.mrb[42].mxu0  ;;  %v6294_v2 = vpop.f32.mrb[71].mxu1 }
 0x5dd   : > { %6719 = vst [vmem:[%s264_s26 + $0x30] sm:$0xff] %v6700_v5  ;;  %6718 = vst [vmem:[%s264_s26 + $0x28] sm:$0xff] %v6294_v2  ;;  %v6702_v50 = vpop.f32.mrb[43].mxu0 }
 0x5de   : > { %6720 = vst [vmem:[%s264_s26 + $0x38] sm:$0xff] %v6702_v50 }
 0x5e1   : > { %v6298_v6 = vpop.f32.mrb[72].mxu1 }
 0x5e2   : > { %6721 = vst [vmem:[%s264_s26 + $0x40] sm:$0xf] %v6298_v6  ;;  %v6706_v9 = vpop.f32.mrb[44].mxu0  ;;  %v6300_v10 = vpop.f32.mrb[73].mxu1 }
 0x5e3   : > { %6723 = vst [vmem:[%s264_s26 + $0x50] sm:$0xf] %v6706_v9  ;;  %6722 = vst [vmem:[%s264_s26 + $0x48] sm:$0xf] %v6300_v10  ;;  %v6708_v8 = vpop.f32.mrb[45].mxu0  ;;  %v6302_v51 = vpop.f32.mrb[74].mxu1 }
 0x5e4   : > { %6724 = vst [vmem:[%s264_s26 + $0x58] sm:$0xf] %v6708_v8  ;;  %v6710_v12 = vpop.f32.mrb[46].mxu0  ;;  %v6303_v17 = vpop.f32.mrb[75].mxu1 }
 0x5e5   : > { %v6711_v18 = vpop.f32.mrb[47].mxu0 }
 0x5e6 PF: > { %s17_s21 = sadd.s32 1, %s8895_s21  }
 0x5e7   : > { %p14_p4 = scmp.ge.s32.totalorder %s17_s21, 4  }
 0x5e9   :  { %16 = sbr.rel (!%p14_p4) target bundleno = 1 (0x1), region = 82 }

</bundles_post_ra>
